<compile_context>
chip_gen: v7x
topology: tpu7x:2x2x1
jax: 0.10.0
libtpu: 0.0.40
codegen_flags: <defaults>
</compile_context>

<pallas_src>
import math
import functools

import jax
import jax.numpy as jnp
from jax import lax
from jax.experimental import pallas as pl
from jax.experimental.pallas import tpu as pltpu


# ---------------------------------------------------------------------------
# Fused kernel: QKV projection + per-head softmax(QK^T * 1/sqrt(H)) V
# ---------------------------------------------------------------------------
def _self_attention_kernel(x_ref, w_ref, b_ref, o_ref, *, num_heads):
    # x_ref: (1, S, H) f32 | w_ref: (H, 3H) bf16 (Q cols pre-scaled)
    # b_ref: (1, 3H) f32 (Q bias pre-scaled) | o_ref: (1, S, H) f32
    x = x_ref[0].astype(jnp.bfloat16)                               # (S, H) bf16
    qkv = jnp.dot(x, w_ref[...], preferred_element_type=jnp.float32)
    # One full-tile bf16 cast after the bias add; all q/k/v slices come from
    # this single bf16 buffer.
    qkv = (qkv + b_ref[...]).astype(jnp.bfloat16)                   # (S, 3H) bf16

    S, H3 = qkv.shape
    H = H3 // 3
    D = H // num_heads

    # Unrolled static head loop: LLO can overlap head h+1's MXU work with head
    # h's softmax. Context is written directly into the output columns so no
    # per-head f32 tiles or concat temp stay live across iterations.
    for h in range(num_heads):
        q = qkv[:, h * D:(h + 1) * D]              # scale already folded into W/b
        k = qkv[:, H + h * D:H + (h + 1) * D]
        v = qkv[:, 2 * H + h * D:2 * H + (h + 1) * D]

        # q @ k^T expressed as a contraction on D (no transposed K copy).
        scores = lax.dot_general(
            q, k, dimension_numbers=(((1,), (1,)), ((), ())),
            preferred_element_type=jnp.float32)                     # (S, S) f32

        # Numerically-stable softmax, f32 throughout (safe on v5e's f32-only EUP;
        # on v6e/v7x a bf16 exp could be considered if the EUP binds).
        m = jnp.max(scores, axis=-1, keepdims=True)
        e = jnp.exp(scores - m)
        inv = pl.reciprocal(jnp.sum(e, axis=-1, keepdims=True), approx=True)
        probs = (e * inv).astype(jnp.bfloat16)                      # (S, S) bf16

        ctx = jnp.dot(probs, v, preferred_element_type=jnp.float32)  # (S, D) f32
        o_ref[0, :, h * D:(h + 1) * D] = ctx.astype(o_ref.dtype)


# ---------------------------------------------------------------------------
# One-time parameter prep (hoisted out of the forward path)
# ---------------------------------------------------------------------------
def fuse_qkv_params(wq, bq, wk, bk, wv, bv, *, hidden_size):
    """Fused [H, 3H] bf16 weight and [1, 3H] f32 bias.

    The module's 1/sqrt(hidden_size) attention scale (its intentional quirk —
    sqrt(hidden), not sqrt(head_dim)) is folded into the Q columns here, in
    f32, BEFORE the bf16 cast (single rounding)."""
    scale = jnp.float32(1.0 / math.sqrt(hidden_size))
    wq_s = wq.astype(jnp.float32) * scale
    bq_s = bq.astype(jnp.float32) * scale
    w_qkv = jnp.concatenate([wq_s, wk.astype(jnp.float32),
                             wv.astype(jnp.float32)], axis=1).astype(jnp.bfloat16)
    b_qkv = jnp.concatenate([bq_s, bk.astype(jnp.float32),
                             bv.astype(jnp.float32)], axis=0)[None, :]
    return w_qkv, b_qkv.astype(jnp.float32)


# ---------------------------------------------------------------------------
# Forward: SelfAttention(x)
# ---------------------------------------------------------------------------
def self_attention(x, w_qkv, b_qkv, *, num_heads):
    B, S, H = x.shape
    assert w_qkv.shape == (H, 3 * H) and b_qkv.shape == (1, 3 * H)
    assert H % num_heads == 0

    kern = functools.partial(_self_attention_kernel, num_heads=num_heads)
    return pl.pallas_call(
        kern,
        out_shape=jax.ShapeDtypeStruct((B, S, H), jnp.float32),
        grid_spec=pltpu.PrefetchScalarGridSpec(
            num_scalar_prefetch=0,
            grid=(B,),
            in_specs=[
                pl.BlockSpec((1, S, H), lambda b: (b, 0, 0)),      # activations (f32)
                # Constant block index -> fetched once; (double-buffer VMEM cost of
                # the resident weight is the remaining, minor, VMEM overhead.)
                pl.BlockSpec((H, 3 * H), lambda b: (0, 0)),        # fused W_qkv (bf16)
                pl.BlockSpec((1, 3 * H), lambda b: (0, 0)),        # fused bias (f32)
            ],
            out_specs=pl.BlockSpec((1, S, H), lambda b: (b, 0, 0)),
        ),
        compiler_params=pltpu.CompilerParams(
            # Batch axis shards across the 2 TensorCores on v7x; no-op on v5e/v6e.
            dimension_semantics=("parallel",),
            # Explicit scoped-VMEM budget: above v5e's 16 MiB default, below every
            # chip's physical VMEM (incl. v7x's 64 MiB per TC).
            vmem_limit_bytes=48 << 20,
        ),
    )(x, w_qkv, b_qkv)


# ---------------------------------------------------------------------------
# Pure-JAX f32 reference for correctness check
# ---------------------------------------------------------------------------
def self_attention_ref(x, wq, bq, wk, bk, wv, bv, *, num_heads):
    B, S, H = x.shape
    D = H // num_heads

    def proj(w, b):
        t = x @ w + b
        return t.reshape(B, S, num_heads, D).transpose(0, 2, 1, 3)

    q, k, v = proj(wq, bq), proj(wk, bk), proj(wv, bv)
    scores = jnp.einsum("bhqd,bhkd->bhqk", q, k) / math.sqrt(H)
    probs = jax.nn.softmax(scores, axis=-1)
    ctx = jnp.einsum("bhqk,bhkd->bhqd", probs, v)
    return ctx.transpose(0, 2, 1, 3).reshape(B, S, H)


if __name__ == "__main__":
    # Scaled-down version of the real (B=2, S=512, H=768, 12 heads, D=64):
    # same head_dim (64), fewer heads / shorter sequence.
    B, S, H, NH = 2, 128, 256, 4

    key = jax.random.PRNGKey(0)
    kx, kwq, kbq, kwk, kbk, kwv, kbv = jax.random.split(key, 7)

    x = jax.random.normal(kx, (B, S, H), dtype=jnp.float32)
    lim = 1.0 / math.sqrt(H)  # nn.Linear default init range
    wq = jax.random.uniform(kwq, (H, H), jnp.float32, -lim, lim)
    bq = jax.random.uniform(kbq, (H,), jnp.float32, -lim, lim)
    wk = jax.random.uniform(kwk, (H, H), jnp.float32, -lim, lim)
    bk = jax.random.uniform(kbk, (H,), jnp.float32, -lim, lim)
    wv = jax.random.uniform(kwv, (H, H), jnp.float32, -lim, lim)
    bv = jax.random.uniform(kbv, (H,), jnp.float32, -lim, lim)

    # Parameter fusion (and 1/sqrt(H) scale folding) happens once, offline.
    w_qkv, b_qkv = fuse_qkv_params(wq, bq, wk, bk, wv, bv, hidden_size=H)

    out = self_attention(x, w_qkv, b_qkv, num_heads=NH)
    out = jax.block_until_ready(out)

    ref = self_attention_ref(x, wq, bq, wk, bk, wv, bv, num_heads=NH)
    assert out.shape == (B, S, H)
    # bf16 matmul inputs + approx reciprocal -> looser tolerance vs f32 ref.
    assert jnp.allclose(out, ref, atol=3e-2, rtol=3e-2), "mismatch vs reference"

    print("KERNEL_OK")
</pallas_src>

<mosaic_0001>
module attributes {stable_mosaic.version = 11 : i64} {
  func.func @_self_attention_kernel(%arg0: i32, %arg1: memref<1x128x256xf32, #tpu.memory_space<vmem>>, %arg2: memref<256x768xbf16, #tpu.memory_space<vmem>>, %arg3: memref<1x768xf32, #tpu.memory_space<vmem>>, %arg4: memref<1x128x256xf32, #tpu.memory_space<vmem>>) attributes {dimension_semantics = [#tpu.dimension_semantics<parallel>], iteration_bounds = array<i64: 2>, scalar_prefetch = 0 : i64, scratch_operands = 0 : i64, tpu.core_type = #tpu.core_type<tc>, window_params = [{transform_indices = @transform_0, window_bounds = array<i64: 1, 128, 256>}, {pipeline_mode = #tpu.pipeline_mode<synchronous>, transform_indices = @transform_1, window_bounds = array<i64: 256, 768>}, {pipeline_mode = #tpu.pipeline_mode<synchronous>, transform_indices = @transform_2, window_bounds = array<i64: 1, 768>}, {transform_indices = @transform_3, window_bounds = array<i64: 1, 128, 256>}]} {
    %c0 = arith.constant 0 : index
    %c0_0 = arith.constant 0 : index
    %c0_1 = arith.constant 0 : index
    %0 = vector.load %arg1[%c0, %c0_0, %c0_1] : memref<1x128x256xf32, #tpu.memory_space<vmem>>, vector<1x128x256xf32>
    %1 = vector.shape_cast %0 : vector<1x128x256xf32> to vector<128x256xf32>
    %2 = arith.truncf %1 : vector<128x256xf32> to vector<128x256xbf16>
    %c0_2 = arith.constant 0 : index
    %c0_3 = arith.constant 0 : index
    %3 = vector.load %arg2[%c0_2, %c0_3] : memref<256x768xbf16, #tpu.memory_space<vmem>>, vector<256x768xbf16>
    %cst = arith.constant dense<0.000000e+00> : vector<128x768xf32>
    %4 = tpu.matmul %2, %3, %cst {dimension_numbers = #tpu.dot_dimension_numbers<[1], [0], [0], [1], [0, 0, 1, 1], [], []>} : vector<128x256xbf16>, vector<256x768xbf16>, vector<128x768xf32> -> vector<128x768xf32>
    %c0_4 = arith.constant 0 : index
    %c0_5 = arith.constant 0 : index
    %5 = vector.load %arg3[%c0_4, %c0_5] : memref<1x768xf32, #tpu.memory_space<vmem>>, vector<1x768xf32>
    %6 = vector.broadcast %5 : vector<1x768xf32> to vector<128x768xf32>
    %7 = arith.addf %4, %6 : vector<128x768xf32>
    %8 = arith.truncf %7 : vector<128x768xf32> to vector<128x768xbf16>
    %9 = vector.extract_strided_slice %8 {offsets = [0, 0], sizes = [128, 64], strides = [1, 1]} : vector<128x768xbf16> to vector<128x64xbf16>
    %10 = vector.extract_strided_slice %8 {offsets = [0, 256], sizes = [128, 64], strides = [1, 1]} : vector<128x768xbf16> to vector<128x64xbf16>
    %11 = vector.extract_strided_slice %8 {offsets = [0, 512], sizes = [128, 64], strides = [1, 1]} : vector<128x768xbf16> to vector<128x64xbf16>
    %cst_6 = arith.constant dense<0.000000e+00> : vector<128x128xf32>
    %12 = tpu.matmul %9, %10, %cst_6 {dimension_numbers = #tpu.dot_dimension_numbers<[1], [1], [0], [0], [0, 0, 1, 0], [], []>} : vector<128x64xbf16>, vector<128x64xbf16>, vector<128x128xf32> -> vector<128x128xf32>
    %cst_7 = arith.constant dense<0xFF800000> : vector<128xf32>
    %13 = vector.multi_reduction <maximumf>, %12, %cst_7 [1] : vector<128x128xf32> to vector<128xf32>
    %14 = vector.shape_cast %13 : vector<128xf32> to vector<128x1xf32>
    %15 = vector.broadcast %14 : vector<128x1xf32> to vector<128x128xf32>
    %16 = arith.subf %12, %15 : vector<128x128xf32>
    %17 = math.exp %16 : vector<128x128xf32>
    %cst_8 = arith.constant dense<0.000000e+00> : vector<128xf32>
    %18 = vector.multi_reduction <add>, %17, %cst_8 [1] : vector<128x128xf32> to vector<128xf32>
    %19 = vector.shape_cast %18 : vector<128xf32> to vector<128x1xf32>
    %20 = tpu.reciprocal %19 {approx = true} : vector<128x1xf32> -> vector<128x1xf32>
    %21 = vector.broadcast %20 : vector<128x1xf32> to vector<128x128xf32>
    %22 = arith.mulf %17, %21 : vector<128x128xf32>
    %23 = arith.truncf %22 : vector<128x128xf32> to vector<128x128xbf16>
    %cst_9 = arith.constant dense<0.000000e+00> : vector<128x64xf32>
    %24 = tpu.matmul %23, %11, %cst_9 {dimension_numbers = #tpu.dot_dimension_numbers<[1], [0], [0], [1], [0, 0, 1, 1], [], []>} : vector<128x128xbf16>, vector<128x64xbf16>, vector<128x64xf32> -> vector<128x64xf32>
    %c0_10 = arith.constant 0 : index
    %c0_11 = arith.constant 0 : index
    %c0_12 = arith.constant 0 : index
    %25 = vector.load %arg4[%c0_10, %c0_11, %c0_12] : memref<1x128x256xf32, #tpu.memory_space<vmem>>, vector<1x128x64xf32>
    %26 = vector.shape_cast %25 : vector<1x128x64xf32> to vector<128x64xf32>
    %27 = vector.shape_cast %24 : vector<128x64xf32> to vector<1x128x64xf32>
    tpu.vector_store %arg4[%c0_10, %c0_11, %c0_12], %27 {strides = array<i32>} : memref<1x128x256xf32, #tpu.memory_space<vmem>>, vector<1x128x64xf32>,
    %28 = vector.extract_strided_slice %8 {offsets = [0, 64], sizes = [128, 64], strides = [1, 1]} : vector<128x768xbf16> to vector<128x64xbf16>
    %29 = vector.extract_strided_slice %8 {offsets = [0, 320], sizes = [128, 64], strides = [1, 1]} : vector<128x768xbf16> to vector<128x64xbf16>
    %30 = vector.extract_strided_slice %8 {offsets = [0, 576], sizes = [128, 64], strides = [1, 1]} : vector<128x768xbf16> to vector<128x64xbf16>
    %cst_13 = arith.constant dense<0.000000e+00> : vector<128x128xf32>
    %31 = tpu.matmul %28, %29, %cst_13 {dimension_numbers = #tpu.dot_dimension_numbers<[1], [1], [0], [0], [0, 0, 1, 0], [], []>} : vector<128x64xbf16>, vector<128x64xbf16>, vector<128x128xf32> -> vector<128x128xf32>
    %cst_14 = arith.constant dense<0xFF800000> : vector<128xf32>
    %32 = vector.multi_reduction <maximumf>, %31, %cst_14 [1] : vector<128x128xf32> to vector<128xf32>
    %33 = vector.shape_cast %32 : vector<128xf32> to vector<128x1xf32>
    %34 = vector.broadcast %33 : vector<128x1xf32> to vector<128x128xf32>
    %35 = arith.subf %31, %34 : vector<128x128xf32>
    %36 = math.exp %35 : vector<128x128xf32>
    %cst_15 = arith.constant dense<0.000000e+00> : vector<128xf32>
    %37 = vector.multi_reduction <add>, %36, %cst_15 [1] : vector<128x128xf32> to vector<128xf32>
    %38 = vector.shape_cast %37 : vector<128xf32> to vector<128x1xf32>
    %39 = tpu.reciprocal %38 {approx = true} : vector<128x1xf32> -> vector<128x1xf32>
    %40 = vector.broadcast %39 : vector<128x1xf32> to vector<128x128xf32>
    %41 = arith.mulf %36, %40 : vector<128x128xf32>
    %42 = arith.truncf %41 : vector<128x128xf32> to vector<128x128xbf16>
    %cst_16 = arith.constant dense<0.000000e+00> : vector<128x64xf32>
    %43 = tpu.matmul %42, %30, %cst_16 {dimension_numbers = #tpu.dot_dimension_numbers<[1], [0], [0], [1], [0, 0, 1, 1], [], []>} : vector<128x128xbf16>, vector<128x64xbf16>, vector<128x64xf32> -> vector<128x64xf32>
    %c0_17 = arith.constant 0 : index
    %c0_18 = arith.constant 0 : index
    %c64 = arith.constant 64 : index
    %44 = vector.load %arg4[%c0_17, %c0_18, %c64] : memref<1x128x256xf32, #tpu.memory_space<vmem>>, vector<1x128x64xf32>
    %45 = vector.shape_cast %44 : vector<1x128x64xf32> to vector<128x64xf32>
    %46 = vector.shape_cast %43 : vector<128x64xf32> to vector<1x128x64xf32>
    tpu.vector_store %arg4[%c0_17, %c0_18, %c64], %46 {strides = array<i32>} : memref<1x128x256xf32, #tpu.memory_space<vmem>>, vector<1x128x64xf32>,
    %47 = vector.extract_strided_slice %8 {offsets = [0, 128], sizes = [128, 64], strides = [1, 1]} : vector<128x768xbf16> to vector<128x64xbf16>
    %48 = vector.extract_strided_slice %8 {offsets = [0, 384], sizes = [128, 64], strides = [1, 1]} : vector<128x768xbf16> to vector<128x64xbf16>
    %49 = vector.extract_strided_slice %8 {offsets = [0, 640], sizes = [128, 64], strides = [1, 1]} : vector<128x768xbf16> to vector<128x64xbf16>
    %cst_19 = arith.constant dense<0.000000e+00> : vector<128x128xf32>
    %50 = tpu.matmul %47, %48, %cst_19 {dimension_numbers = #tpu.dot_dimension_numbers<[1], [1], [0], [0], [0, 0, 1, 0], [], []>} : vector<128x64xbf16>, vector<128x64xbf16>, vector<128x128xf32> -> vector<128x128xf32>
    %cst_20 = arith.constant dense<0xFF800000> : vector<128xf32>
    %51 = vector.multi_reduction <maximumf>, %50, %cst_20 [1] : vector<128x128xf32> to vector<128xf32>
    %52 = vector.shape_cast %51 : vector<128xf32> to vector<128x1xf32>
    %53 = vector.broadcast %52 : vector<128x1xf32> to vector<128x128xf32>
    %54 = arith.subf %50, %53 : vector<128x128xf32>
    %55 = math.exp %54 : vector<128x128xf32>
    %cst_21 = arith.constant dense<0.000000e+00> : vector<128xf32>
    %56 = vector.multi_reduction <add>, %55, %cst_21 [1] : vector<128x128xf32> to vector<128xf32>
    %57 = vector.shape_cast %56 : vector<128xf32> to vector<128x1xf32>
    %58 = tpu.reciprocal %57 {approx = true} : vector<128x1xf32> -> vector<128x1xf32>
    %59 = vector.broadcast %58 : vector<128x1xf32> to vector<128x128xf32>
    %60 = arith.mulf %55, %59 : vector<128x128xf32>
    %61 = arith.truncf %60 : vector<128x128xf32> to vector<128x128xbf16>
    %cst_22 = arith.constant dense<0.000000e+00> : vector<128x64xf32>
    %62 = tpu.matmul %61, %49, %cst_22 {dimension_numbers = #tpu.dot_dimension_numbers<[1], [0], [0], [1], [0, 0, 1, 1], [], []>} : vector<128x128xbf16>, vector<128x64xbf16>, vector<128x64xf32> -> vector<128x64xf32>
    %c0_23 = arith.constant 0 : index
    %c0_24 = arith.constant 0 : index
    %c128 = arith.constant 128 : index
    %63 = vector.load %arg4[%c0_23, %c0_24, %c128] : memref<1x128x256xf32, #tpu.memory_space<vmem>>, vector<1x128x64xf32>
    %64 = vector.shape_cast %63 : vector<1x128x64xf32> to vector<128x64xf32>
    %65 = vector.shape_cast %62 : vector<128x64xf32> to vector<1x128x64xf32>
    tpu.vector_store %arg4[%c0_23, %c0_24, %c128], %65 {strides = array<i32>} : memref<1x128x256xf32, #tpu.memory_space<vmem>>, vector<1x128x64xf32>,
    %66 = vector.extract_strided_slice %8 {offsets = [0, 192], sizes = [128, 64], strides = [1, 1]} : vector<128x768xbf16> to vector<128x64xbf16>
    %67 = vector.extract_strided_slice %8 {offsets = [0, 448], sizes = [128, 64], strides = [1, 1]} : vector<128x768xbf16> to vector<128x64xbf16>
    %68 = vector.extract_strided_slice %8 {offsets = [0, 704], sizes = [128, 64], strides = [1, 1]} : vector<128x768xbf16> to vector<128x64xbf16>
    %cst_25 = arith.constant dense<0.000000e+00> : vector<128x128xf32>
    %69 = tpu.matmul %66, %67, %cst_25 {dimension_numbers = #tpu.dot_dimension_numbers<[1], [1], [0], [0], [0, 0, 1, 0], [], []>} : vector<128x64xbf16>, vector<128x64xbf16>, vector<128x128xf32> -> vector<128x128xf32>
    %cst_26 = arith.constant dense<0xFF800000> : vector<128xf32>
    %70 = vector.multi_reduction <maximumf>, %69, %cst_26 [1] : vector<128x128xf32> to vector<128xf32>
    %71 = vector.shape_cast %70 : vector<128xf32> to vector<128x1xf32>
    %72 = vector.broadcast %71 : vector<128x1xf32> to vector<128x128xf32>
    %73 = arith.subf %69, %72 : vector<128x128xf32>
    %74 = math.exp %73 : vector<128x128xf32>
    %cst_27 = arith.constant dense<0.000000e+00> : vector<128xf32>
    %75 = vector.multi_reduction <add>, %74, %cst_27 [1] : vector<128x128xf32> to vector<128xf32>
    %76 = vector.shape_cast %75 : vector<128xf32> to vector<128x1xf32>
    %77 = tpu.reciprocal %76 {approx = true} : vector<128x1xf32> -> vector<128x1xf32>
    %78 = vector.broadcast %77 : vector<128x1xf32> to vector<128x128xf32>
    %79 = arith.mulf %74, %78 : vector<128x128xf32>
    %80 = arith.truncf %79 : vector<128x128xf32> to vector<128x128xbf16>
    %cst_28 = arith.constant dense<0.000000e+00> : vector<128x64xf32>
    %81 = tpu.matmul %80, %68, %cst_28 {dimension_numbers = #tpu.dot_dimension_numbers<[1], [0], [0], [1], [0, 0, 1, 1], [], []>} : vector<128x128xbf16>, vector<128x64xbf16>, vector<128x64xf32> -> vector<128x64xf32>
    %c0_29 = arith.constant 0 : index
    %c0_30 = arith.constant 0 : index
    %c192 = arith.constant 192 : index
    %82 = vector.load %arg4[%c0_29, %c0_30, %c192] : memref<1x128x256xf32, #tpu.memory_space<vmem>>, vector<1x128x64xf32>
    %83 = vector.shape_cast %82 : vector<1x128x64xf32> to vector<128x64xf32>
    %84 = vector.shape_cast %81 : vector<128x64xf32> to vector<1x128x64xf32>
    tpu.vector_store %arg4[%c0_29, %c0_30, %c192], %84 {strides = array<i32>} : memref<1x128x256xf32, #tpu.memory_space<vmem>>, vector<1x128x64xf32>,
    return
  }
  func.func @transform_0(%arg0: i32) -> (i32, i32, i32) {
    %c0_i32 = arith.constant 0 : i32
    %c0_i32_0 = arith.constant 0 : i32
    %c0_i32_1 = arith.constant 0 : i32
    return %arg0, %c0_i32, %c0_i32_0 : i32, i32, i32
  }
  func.func @transform_1(%arg0: i32) -> (i32, i32) {
    %c0_i32 = arith.constant 0 : i32
    %c0_i32_0 = arith.constant 0 : i32
    %c0_i32_1 = arith.constant 0 : i32
    return %c0_i32, %c0_i32_0 : i32, i32
  }
  func.func @transform_2(%arg0: i32) -> (i32, i32) {
    %c0_i32 = arith.constant 0 : i32
    %c0_i32_0 = arith.constant 0 : i32
    %c0_i32_1 = arith.constant 0 : i32
    return %c0_i32, %c0_i32_0 : i32, i32
  }
  func.func @transform_3(%arg0: i32) -> (i32, i32, i32) {
    %c0_i32 = arith.constant 0 : i32
    %c0_i32_0 = arith.constant 0 : i32
    %c0_i32_1 = arith.constant 0 : i32
    return %arg0, %c0_i32, %c0_i32_0 : i32, i32, i32
  }
}

</mosaic_0001>

<bundles_post_ra>
// kernel: tpu_custom_call.1
= control target key start
LH: loop header
LB: loop body
LE: loop exit
PB: predicated region body
PF: predicated region fallthrough
CT: control target
= control target key end

     0   :  { %8 = vsyncpa [#allocation3], 0  ;;  %s5908_s0 = inlined_call_operand.hbm [shape: f32[2,128,256], index: 0, kind: input, shape index: {}]   ;;  %s5909_s1 = inlined_call_operand.hbm [shape: bf16[256,768], index: 1, kind: input, shape index: {}]   ;;  %s5910_s2 = inlined_call_operand.vmem [shape: f32[1,768], index: 2, kind: input, shape index: {}]   ;;  %s5911_s3 = inlined_call_operand.hbm [shape: f32[2,128,256], index: 3, kind: output, shape index: {}]  }
   0x1   :  { %10 = vsyncpa [#allocation3 + $0x1], 0 }
   0x2   :  { %11 = vsyncpa [#allocation6], 0 }
   0x3   :  { %12 = vsyncpa [#allocation4], 0 }
   0x4   :  { %14 = vsyncpa [#allocation4 + $0x1], 0  ;;  %s4461_s12 = smov 0   ;;  %s4463_s13 = smov 0  }
   0x5   :  { %s4465_s14 = smov 0   ;;  %s4467_s15 = smov 0  }
   0x6 LB: > { %s4482_s16 = sadd.s32 4294967295, %s4429_s15   ;;  %s3275_s17 = sadd.s32 4294967294, %s4429_s15   ;;  %s4429_s15 = sphi %s4467_s15, %s6030_s15   ;;  %s4425_s14 = sphi %s4465_s14, %s6029_s14   ;;  %s4421_s13 = sphi %s4463_s13, %s6028_s13   ;;  %s4417_s12 = sphi %s4461_s12, %s6027_s12  }
   0x7   : > { %p40_p0 = scmp.ne.s32.totalorder %s4421_s13, %s4417_s12  ;;  %p5912_p1 = scmp.eq.s32.totalorder %s4482_s16, 0 }
   0x8   : > { %p112_p3 = scmp.eq.s32.totalorder %s3275_s17, 1  ;;  %p3276_p5 = scmp.ge.s32.totalorder %s4429_s15, 1 }
   0x9   : > { %p4491_p4 = por %p5912_p1, %p40_p0  ;;  %p119_p7 = scmp.lt.s32.totalorder %s4429_s15, 3 }
   0xa   : > { %p4496_p6 = por %p112_p3, %p40_p0  ;;  %s4431_s21 = smov [#allocation5]  }
   0xb   : > { %s5948_s18 = scalar_select %p4491_p4, 1, 0 }
   0xc   : > { %s5949_s19 = scalar_select %p4496_p6, 1, 0 }
   0xd   : > { %p4501_p8 = pnand %p3276_p5, %p119_p7  ;;  %s131_s22 = sshll.u32 %s4431_s21, 4  ;;  %s4505_s22 = int_to_ptr.vmem [resolvable:$true] %s131_s22 }
   0xe   : > { %s4517_s24 = sadd.s32 1, %s4429_s15   ;;  %s27_s25 = sadd.s32 1, %s4425_s14 }
   0xf   : > { %s5950_s20 = scalar_select %p4501_p8, 1, 0 }
  0x10   : > { %p3845_p9 = pneg %p4501_p8  ;;  %s24_s26 = ssub.s32 %s4429_s15, %s4517_s24 }
  0x11   : > { %s4301_s29 = scalar_lea.hbm %s5909_s1, 12288 }
  0x12   : > { %p4512_p11 = pnand %p3845_p9, %p5912_p1  ;;  %p4302_p12 = scmp.ne.s32.totalorder %s5909_s1, %s4301_s29 }
  0x13   : > { %p4308_p5 = scmp.lt.u32.totalorder %s4301_s29, %s5909_s1 }
  0x14   : > { %p4303_p13 = pneg %p4512_p11 }
  0x16   : > { %p4304_p0 = pnand %p4303_p13, %p4302_p12 }
  0x18   : > { %p4305_p3 = pneg %p4304_p0 }
  0x1a   : > { %p4310_p7 = pnand %p4308_p5, %p4305_p3 }
  0x1c   : > { %4313 = shalt.err (!%p4310_p7)
}
  0x1d   : > { %s4314_s7 = scalar_lea.vmem %s4505_s22, 12288  ;;  %p4322_p2 = scmp.lt.s32.totalorder %s4505_s22, %s4505_s22 }
  0x1e   : > { %p4315_p9 = scmp.ne.s32.totalorder %s4505_s22, %s4314_s7  ;;  %p4323_p6 = scmp.lt.s32.totalorder %s4314_s7, %s4314_s7 }
  0x20   : > { %p4317_p10 = pnand %p4315_p9, %p4303_p13  ;;  %p4324_p4 = por %p4323_p6, %p4322_p2 }
  0x22   : > { %p4318_p1 = pneg %p4317_p10 }
  0x24   : > { %p4325_p8 = pnand %p4324_p4, %p4318_p1 }
  0x26   : > { %4328 = shalt.err (!%p4325_p8)
}
  0x27   : > { %s4432_s8 = smov 384   ;;  %s4433_s9 = smov 24  }
  0x28   : > { %3848 = dma.hbm_to_vmem [thread:$0]  (!%p4512_p11), %s5909_s1, 12288, %s4505_s22, [#allocation6], %s4432_s8, %s4432_s8, %s4433_s9  }
  0x29   : > { %p25_p2 = scmp.eq.s32.totalorder %s24_s26, 0  ;;  %p34_p1 = scmp.ne.s32.totalorder %s4425_s14, %s4421_s13 }
  0x2a   : > { %p35_p4 = scmp.eq.s32.totalorder %s4429_s15, 0  ;;  %p3858_p6 = scmp.lt.s32.totalorder %s4429_s15, 2 }
  0x2b   : > { %s4548_s17 = scalar_select %p25_p2, %s4425_s14, %s27_s25  }
  0x2c   : > { %p36_p8 = por %p35_p4, %p34_p1  ;;  %p5952_p10 = scmp.eq.s32.totalorder %s4482_s16, 1 }
  0x2d   : > { %s148_s27 = sand.u32 1, %s4425_s14   ;;  %s3419_s28 = sshll.u32 %s4429_s15, 12 }
  0x2e   : > { %p4552_p12 = por %p5952_p10, %p34_p1  ;;  %s3279_s29 = sshll.u32 %s148_s27, 8 }
  0x2f   : > { %s4561_s4 = scalar_lea.hbm %s5908_s0, %s3419_s28  ;;  %s152_s22 = scalar_lea.vmem [#allocation2], %s3279_s29 }
  0x30   : > { %s159_s25 = sshll.u32 %s152_s22, 4  ;;  %p4563_p11 = pnand %p3858_p6, %p36_p8  ;;  %s4567_s25 = int_to_ptr.vmem [resolvable:$true] %s159_s25 }
  0x31   : > { %s4569_s5 = scalar_lea.sflag [#allocation3], %s148_s27  ;;  %s4329_s6 = scalar_lea.hbm %s4561_s4, 4096 }
  0x32   : > { %p4330_p13 = scmp.ne.s32.totalorder %s4561_s4, %s4329_s6  ;;  %p4331_p0 = pneg %p4563_p11 }
  0x33   : > { %s4334_s9 = scalar_lea.hbm %s5908_s0, 8192  ;;  %p4335_p7 = scmp.lt.u32.totalorder %s4561_s4, %s5908_s0 }
  0x34   : > { %p4332_p3 = pnand %p4331_p0, %p4330_p13  ;;  %p4336_p9 = scmp.lt.u32.totalorder %s4334_s9, %s4329_s6 }
  0x35   : > { %p4338_p1 = scmp.lt.u32.totalorder %s4329_s6, %s4561_s4 }
  0x36   : > { %p4333_p5 = pneg %p4332_p3  ;;  %p4337_p2 = por %p4336_p9, %p4335_p7 }
  0x38   : > { %p4339_p4 = por %p4338_p1, %p4337_p2 }
  0x3a   : > { %p4340_p6 = pnand %p4339_p4, %p4333_p5 }
  0x3c   : > { %4343 = shalt.err (!%p4340_p6)
}
  0x3d   : > { %s4344_s27 = scalar_lea.vmem %s4567_s25, 4096  ;;  %s4434_s28 = smov [#allocation2]  }
  0x3e   : > { %p4345_p8 = scmp.ne.s32.totalorder %s4567_s25, %s4344_s27  ;;  %s4349_s29 = sshll.u32 %s4434_s28, 4  ;;  %s4350_s29 = int_to_ptr.vmem [resolvable:$false] %s4349_s29 }
  0x3f   : > { %s4351_s23 = scalar_lea.vmem %s4350_s29, 8192  ;;  %p4352_p3 = scmp.lt.s32.totalorder %s4567_s25, %s4350_s29 }
  0x40   : > { %p4347_p10 = pnand %p4345_p8, %p4331_p0  ;;  %p4353_p7 = scmp.lt.s32.totalorder %s4351_s23, %s4344_s27 }
  0x42   : > { %p4348_p13 = pneg %p4347_p10  ;;  %p4354_p9 = por %p4353_p7, %p4352_p3 }
  0x44   : > { %p4355_p2 = pnand %p4354_p9, %p4348_p13 }
  0x46   : > { %4358 = shalt.err (!%p4355_p2)
}
  0x47   : > { %s4435_s30 = smov 256   ;;  %s4436_s22 = smov 16  }
  0x48   : > { %3852 = dma.hbm_to_vmem [thread:$0]  (!%p4563_p11), %s4561_s4, 4096, %s4567_s25, %s4569_s5, %s4435_s30, %s4435_s30, %s4436_s22  }
  0x49   : > { %p5955_p0 = scmp.ne.s32.totalorder %s5950_s20, 0 }
  0x4b   : > { %171 = sbr.rel (%p5955_p0) target bundleno = 2196 (0x894), region = 32 }
  0x52   : > { %s4600_s6 = sand.u32 1, %s4421_s13   ;;  %p5956_p5 = scmp.ne.s32.totalorder %s5948_s18, 0 }
  0x53   : > { %s3283_s7 = sshll.u32 %s4600_s6, 8  ;;  %s174_s8 = scalar_lea.sflag [#allocation3], %s4600_s6 }
  0x54   : > { %s4606_s9 = scalar_lea.vmem [#allocation2], %s3283_s7 }
  0x55   : > { %4404 = dma.done.wait (%p5956_p5), %s174_s8, 4096  }
  0x56   : > { %4406 = vsyncadd (%p5956_p5), %s174_s8, 4294963200  ;;  %p5957_p11 = scmp.eq.s32.totalorder %s4482_s16, 0 }
  0x58   : > { %4408 = dma.done.wait (%p5957_p11), [#allocation6], 12288   ;;  %p5958_p1 = pmov %p5957_p11 }
  0x59   : > { %v3901_v0 = vld [vmem:[#allocation5 + $0xc] ss:$24 sps:$4 sm:$0xff]   ;;  %v3903_v1 = vld [vmem:[#allocation5 + $0x8] ss:$24 sps:$4 sm:$0xff]   ;;  %v3904_v2 = vld [vmem:[#allocation5 + $0x3c] ss:$24 sps:$4 sm:$0xff]  }
  0x5a   : > { %4410 = vsyncadd (%p5958_p1), [#allocation6], 4294955008  ;;  %974 = vmatprep.subr.bf16.mxu1 %v3901_v0  ;;  %v3906_v3 = vld [vmem:[#allocation5 + $0x38] ss:$24 sps:$4 sm:$0xff]   ;;  %v3907_v4 = vld [vmem:[#allocation5 + $0x6c] ss:$24 sps:$4 sm:$0xff]  }
  0x5b   : > { %975 = vmatpush1.bf16.msra.mxu1 %v3903_v1  ;;  %v3913_v5 = vld [vmem:[#allocation5 + $0x4] ss:$24 sps:$4 sm:$0xff]   ;;  %v3909_v6 = vld [vmem:[#allocation5 + $0x68] ss:$24 sps:$4 sm:$0xff]   ;;  %v3919_v9 = vld [vmem:[#allocation5 + $0x34] ss:$24 sps:$4 sm:$0xff]  }
  0x5c   : > { %976 = vmatprep.subr.bf16.mxu1 %v3904_v2  ;;  %v3910_v7 = vld [vmem:[#allocation5 + $0x9c] ss:$24 sps:$4 sm:$0xff]   ;;  %v3917_v8 = vld [vmem:[#allocation5] ss:$24 sps:$4 sm:$0xff]   ;;  %861 = vmatprep.subr.bf16.mxu0 %v3913_v5  ;;  %v3923_v11 = vld [vmem:[#allocation5 + $0x30] ss:$24 sps:$4 sm:$0xff]  }
  0x5d   : > { %862 = vmatpush1.bf16.msra.mxu0 %v3917_v8  ;;  %v3912_v10 = vld [vmem:[#allocation5 + $0x98] ss:$24 sps:$4 sm:$0xff]   ;;  %v3925_v12 = vld [vmem:[#allocation5 + $0x64] ss:$24 sps:$4 sm:$0xff]   ;;  %v3931_v15 = vld [vmem:[#allocation5 + $0x94] ss:$24 sps:$4 sm:$0xff]  }
  0x5e   : > { %863 = vmatprep.subr.bf16.mxu0 %v3919_v9  ;;  %v3915_v13 = vld [vmem:[#allocation5 + $0xcc] ss:$24 sps:$4 sm:$0xff]   ;;  %v3929_v14 = vld [vmem:[#allocation5 + $0x60] ss:$24 sps:$4 sm:$0xff]   ;;  %v3921_v17 = vld [vmem:[#allocation5 + $0xfc] ss:$24 sps:$4 sm:$0xff]  }
  0x5f   : > { %977 = vmatpush1.bf16.msra.mxu1 %v3906_v3  ;;  %v3918_v16 = vld [vmem:[#allocation5 + $0xc8] ss:$24 sps:$4 sm:$0xff]   ;;  %v3937_v19 = vld [vmem:[#allocation5 + $0xc4] ss:$24 sps:$4 sm:$0xff]   ;;  %v3924_v20 = vld [vmem:[#allocation5 + $0xf8] ss:$24 sps:$4 sm:$0xff]  }
  0x60   : > { %978 = vmatprep.subr.bf16.mxu1 %v3907_v4  ;;  %v3935_v18 = vld [vmem:[#allocation5 + $0x90] ss:$24 sps:$4 sm:$0xff]   ;;  %v3927_v21 = vld [vmem:[#allocation5 + $0x12c] ss:$24 sps:$4 sm:$0xff]   ;;  %v3941_v22 = vld [vmem:[#allocation5 + $0xc0] ss:$24 sps:$4 sm:$0xff]  }
  0x61   : > { %864 = vmatpush1.bf16.msra.mxu0 %v3923_v11  ;;  %v3943_v23 = vld [vmem:[#allocation5 + $0xf4] ss:$24 sps:$4 sm:$0xff]   ;;  %v3930_v24 = vld [vmem:[#allocation5 + $0x128] ss:$24 sps:$4 sm:$0xff]   ;;  %v3949_v27 = vld [vmem:[#allocation5 + $0x124] ss:$24 sps:$4 sm:$0xff]  }
  0x62   : > { %865 = vmatprep.subr.bf16.mxu0 %v3925_v12  ;;  %v3933_v25 = vld [vmem:[#allocation5 + $0x15c] ss:$24 sps:$4 sm:$0xff]   ;;  %v3947_v26 = vld [vmem:[#allocation5 + $0xf0] ss:$24 sps:$4 sm:$0xff]   ;;  %v3939_v29 = vld [vmem:[#allocation5 + $0x18c] ss:$24 sps:$4 sm:$0xff]  }
  0x63   : > { %979 = vmatpush1.bf16.msra.mxu1 %v3909_v6  ;;  %v3936_v28 = vld [vmem:[#allocation5 + $0x158] ss:$24 sps:$4 sm:$0xff]   ;;  %v3955_v31 = vld [vmem:[#allocation5 + $0x154] ss:$24 sps:$4 sm:$0xff]   ;;  %v3942_v32 = vld [vmem:[#allocation5 + $0x188] ss:$24 sps:$4 sm:$0xff]  }
  0x64   : > { %980 = vmatprep.subr.bf16.mxu1 %v3910_v7  ;;  %v3953_v30 = vld [vmem:[#allocation5 + $0x120] ss:$24 sps:$4 sm:$0xff]   ;;  %v3945_v33 = vld [vmem:[#allocation5 + $0x1bc] ss:$24 sps:$4 sm:$0xff]   ;;  %v3959_v34 = vld [vmem:[#allocation5 + $0x150] ss:$24 sps:$4 sm:$0xff]  }
  0x65   : > { %866 = vmatpush1.bf16.msra.mxu0 %v3929_v14  ;;  %v3961_v35 = vld [vmem:[#allocation5 + $0x184] ss:$24 sps:$4 sm:$0xff]   ;;  %v3948_v36 = vld [vmem:[#allocation5 + $0x1b8] ss:$24 sps:$4 sm:$0xff]   ;;  %v206_v39 = vld [vmem:[%s4606_s9 + $0x8] sm:$0xff]  ;;  %vm1248_vm0 = vcmask 523264  }
  0x66   : > { %867 = vmatprep.subr.bf16.mxu0 %v3931_v15  ;;  %v3951_v37 = vld [vmem:[#allocation5 + $0x1ec] ss:$24 sps:$4 sm:$0xff]   ;;  %v3965_v38 = vld [vmem:[#allocation5 + $0x180] ss:$24 sps:$4 sm:$0xff]   ;;  %v3957_v44 = vld [vmem:[#allocation5 + $0x21c] ss:$24 sps:$4 sm:$0xff]  }
  0x67   : > { %981 = vmatpush1.bf16.msra.mxu1 %v3912_v10  ;;  %v208_v40 = vld [vmem:[%s4606_s9 + $0x18] sm:$0xff]  ;;  %v3967_v41 = vld [vmem:[#allocation5 + $0x1b4] ss:$24 sps:$4 sm:$0xff]   ;;  %v3954_v43 = vld [vmem:[#allocation5 + $0x1e8] ss:$24 sps:$4 sm:$0xff]   ;;  %s4437_s4 = smov 64  }
  0x68   : > { %982 = vmatprep.subr.bf16.mxu1 %v3915_v13  ;;  %v4618_v42 = vpack.c.bf16 %v208_v40, %v206_v39  ;;  %v3971_v45 = vld [vmem:[#allocation5 + $0x1b0] ss:$24 sps:$4 sm:$0xff]   ;;  %v3973_v46 = vld [vmem:[#allocation5 + $0x1e4] ss:$24 sps:$4 sm:$0xff]   ;;  %v3977_v49 = vld [vmem:[#allocation5 + $0x1e0] ss:$24 sps:$4 sm:$0xff]  }
  0x69   : > { %868 = vmatpush1.bf16.msra.mxu0 %v3935_v18  ;;  %v3960_v47 = vld [vmem:[#allocation5 + $0x218] ss:$24 sps:$4 sm:$0xff]   ;;  %v3963_v48 = vld [vmem:[#allocation5 + $0x24c] ss:$24 sps:$4 sm:$0xff]   ;;  %v3966_v51 = vld [vmem:[#allocation5 + $0x248] ss:$24 sps:$4 sm:$0xff]  }
  0x6a   : > { %869 = vmatprep.subr.bf16.mxu0 %v3937_v19  ;;  %1006 = vmatprep.mubr.bf16.mxu1 %v4618_v42  ;;  %v3979_v50 = vld [vmem:[#allocation5 + $0x214] ss:$24 sps:$4 sm:$0xff]   ;;  %v3983_v53 = vld [vmem:[#allocation5 + $0x210] ss:$24 sps:$4 sm:$0xff]   ;;  %v3985_v54 = vld [vmem:[#allocation5 + $0x244] ss:$24 sps:$4 sm:$0xff]  }
  0x6b   : > { %983 = vmatpush1.bf16.msra.mxu1 %v3918_v16  ;;  %893 = vmatprep.mubr.bf16.mxu0 %v4618_v42  ;;  %v3969_v52 = vld [vmem:[#allocation5 + $0x27c] ss:$24 sps:$4 sm:$0xff]   ;;  %v3972_v55 = vld [vmem:[#allocation5 + $0x278] ss:$24 sps:$4 sm:$0xff]   ;;  %v3975_v56 = vld [vmem:[#allocation5 + $0x2ac] ss:$24 sps:$4 sm:$0xff]  }
  0x6c   : > { %984 = vmatprep.subr.bf16.mxu1 %v3921_v17  ;;  %v3987_v57 = vld [vmem:[#allocation5 + $0x240] ss:$24 sps:$4 sm:$0xff]   ;;  %v3988_v58 = vld [vmem:[#allocation5 + $0x274] ss:$24 sps:$4 sm:$0xff]   ;;  %v3990_v62 = vld [vmem:[#allocation5 + $0x270] ss:$24 sps:$4 sm:$0xff]  }
  0x6d   : > { %870 = vmatpush1.bf16.msra.mxu0 %v3941_v22  ;;  %v3978_v59 = vld [vmem:[#allocation5 + $0x2a8] ss:$24 sps:$4 sm:$0xff]   ;;  %v3981_v60 = vld [vmem:[#allocation5 + $0x2dc] ss:$24 sps:$4 sm:$0xff]   ;;  %v3984_v61 = vld [vmem:[#allocation5 + $0x2d8] ss:$24 sps:$4 sm:$0xff]  }
  0x6e   : > { %871 = vmatprep.subr.bf16.mxu0 %v3943_v23  ;;  %v205_v63 = vld [vmem:[%s4606_s9] sm:$0xff]  ;;  %v207_v1 = vld [vmem:[%s4606_s9 + $0x10] sm:$0xff]  ;;  %v210_v2 = vld [vmem:[%s4606_s9 + $0x28] sm:$0xff]  ;;  %s5513_s25 = scalar_lea.vmem [#allocation7], %s3283_s7  ;;  %vm2197_vm1 = vcmask 1048064   ;;  %s3420_s26 = sshll.u32 %s4482_s16, 12 }
  0x6f   : > { %985 = vmatpush1.bf16.msra.mxu1 %v3924_v20  ;;  %v3991_v0 = vld [vmem:[#allocation5 + $0x2a4] ss:$24 sps:$4 sm:$0xff]   ;;  %v3993_v4 = vld [vmem:[#allocation5 + $0x2a0] ss:$24 sps:$4 sm:$0xff]   ;;  %v4626_v5 = vpack.c.bf16 %v207_v1, %v205_v63  ;;  %v3994_v6 = vld [vmem:[#allocation5 + $0x2d4] ss:$24 sps:$4 sm:$0xff]   ;;  %s5858_s27 = scalar_lea.hbm %s5911_s3, %s3420_s26 }
  0x70   : > { %986 = vmatprep.subr.bf16.mxu1 %v3927_v21  ;;  %v212_v3 = vld [vmem:[%s4606_s9 + $0x38] sm:$0xff]  ;;  %v3996_v8 = vld [vmem:[#allocation5 + $0x2d0] ss:$24 sps:$4 sm:$0xff]   ;;  %v209_v9 = vld [vmem:[%s4606_s9 + $0x20] sm:$0xff]  ;;  %s3192_s5 = sshll.u32 %s5513_s25, 4  ;;  %s3179_s16 = scalar_lea.sflag [#allocation4], %s4600_s6  ;;  %s5860_s5 = int_to_ptr.vmem [resolvable:$true] %s3192_s5 }
  0x71   : > { %872 = vmatpush1.bf16.msra.mxu0 %v3947_v26  ;;  %v4628_v7 = vpack.c.bf16 %v212_v3, %v210_v2  ;;  %v3999_v10 = vld [vmem:[#allocation5 + $0x14] ss:$24 sps:$4 sm:$0xff]   ;;  %v216_v13 = vld [vmem:[%s4606_s9 + $0x58] sm:$0xff]  ;;  %v3997_v14 = vld [vmem:[#allocation5 + $0x10] ss:$24 sps:$4 sm:$0xff]   ;;  %s4359_s28 = scalar_lea.vmem %s5860_s5, 4096 }
  0x72   : > { %873 = vmatprep.subr.bf16.mxu0 %v3949_v27  ;;  %v211_v11 = vld [vmem:[%s4606_s9 + $0x30] sm:$0xff]  ;;  %v214_v12 = vld [vmem:[%s4606_s9 + $0x48] sm:$0xff]  ;;  %v4002_v16 = vld [vmem:[#allocation5 + $0x44] ss:$24 sps:$4 sm:$0xff]   ;;  %p4360_p4 = scmp.ne.s32.totalorder %s5860_s5, %s4359_s28  ;;  %s4438_s29 = smov [#allocation7]  }
  0x73   : > { %987 = vmatpush1.bf16.msra.mxu1 %v3930_v24  ;;  %v4636_v15 = vpack.c.bf16 %v211_v11, %v209_v9  ;;  %v4638_v17 = vpack.c.bf16 %v216_v13, %v214_v12  ;;  %v4000_v18 = vld [vmem:[#allocation5 + $0x40] ss:$24 sps:$4 sm:$0xff]   ;;  %v4005_v19 = vld [vmem:[#allocation5 + $0x74] ss:$24 sps:$4 sm:$0xff]   ;;  %v4003_v24 = vld [vmem:[#allocation5 + $0x70] ss:$24 sps:$4 sm:$0xff]  }
  0x74   : > { %988 = vmatprep.subr.bf16.mxu1 %v3933_v25  ;;  %v213_v20 = vld [vmem:[%s4606_s9 + $0x40] sm:$0xff]  ;;  %v215_v21 = vld [vmem:[%s4606_s9 + $0x50] sm:$0xff]  ;;  %v218_v22 = vld [vmem:[%s4606_s9 + $0x68] sm:$0xff]  ;;  %p4361_p6 = pnand %p4360_p4, %p4552_p12  ;;  %s4363_s23 = sshll.u32 %s4438_s29, 4  ;;  %s4364_s23 = int_to_ptr.vmem [resolvable:$false] %s4363_s23 }
  0x75   : > { %874 = vmatpush1.bf16.msra.mxu0 %v3953_v30  ;;  %v220_v23 = vld [vmem:[%s4606_s9 + $0x78] sm:$0xff]  ;;  %v4648_v25 = vpack.c.bf16 %v215_v21, %v213_v20  ;;  %v217_v30 = vld [vmem:[%s4606_s9 + $0x60] sm:$0xff]  ;;  %v4017_v39 = vld [vmem:[#allocation5 + $0x134] ss:$24 sps:$4 sm:$0xff]   ;;  %s4365_s30 = scalar_lea.vmem %s4364_s23, 8192  ;;  %p4366_p10 = scmp.lt.s32.totalorder %s5860_s5, %s4364_s23 }
  0x76   : > { %875 = vmatprep.subr.bf16.mxu0 %v3955_v31  ;;  %v4008_v26 = vld [vmem:[#allocation5 + $0xa4] ss:$24 sps:$4 sm:$0xff]   ;;  %v4650_v27 = vpack.c.bf16 %v220_v23, %v218_v22  ;;  %v219_v31 = vld [vmem:[%s4606_s9 + $0x70] sm:$0xff]  ;;  %v234_v63 = vld [vmem:[%s4606_s9 + $0xe8] sm:$0xff]  ;;  %p4362_p8 = pneg %p4361_p6  ;;  %p4367_p13 = scmp.lt.s32.totalorder %s4365_s30, %s4359_s28 }
  0x77   : > { %989 = vmatpush1.bf16.msra.mxu1 %v3936_v28  ;;  %v4006_v28 = vld [vmem:[#allocation5 + $0xa0] ss:$24 sps:$4 sm:$0xff]   ;;  %v4027_v1 = vld [vmem:[#allocation5 + $0x1f0] ss:$24 sps:$4 sm:$0xff]   ;;  %v4032_v3 = vld [vmem:[#allocation5 + $0x224] ss:$24 sps:$4 sm:$0xff]  }
  0x78   : > { %990 = vmatprep.subr.bf16.mxu1 %v3939_v29  ;;  %v4011_v29 = vld [vmem:[#allocation5 + $0xd4] ss:$24 sps:$4 sm:$0xff]   ;;  %v221_v40 = vld [vmem:[%s4606_s9 + $0x80] sm:$0xff]  ;;  %v4033_v11 = vld [vmem:[#allocation5 + $0x250] ss:$24 sps:$4 sm:$0xff]   ;;  %p4368_p3 = por %p4367_p13, %p4366_p10 }
  0x79   : > { %876 = vmatpush1.bf16.msra.mxu0 %v3959_v34  ;;  %v4009_v34 = vld [vmem:[#allocation5 + $0xd0] ss:$24 sps:$4 sm:$0xff]   ;;  %v233_v9 = vld [vmem:[%s4606_s9 + $0xe0] sm:$0xff] }
  0x7a   : > { %877 = vmatprep.subr.bf16.mxu0 %v3961_v35  ;;  %v4660_v35 = vpack.c.bf16 %v219_v31, %v217_v30  ;;  %v4038_v13 = vld [vmem:[#allocation5 + $0x284] ss:$24 sps:$4 sm:$0xff]   ;;  %v4042_v20 = vld [vmem:[#allocation5 + $0x2e0] ss:$24 sps:$4 sm:$0xff]   ;;  %p4369_p7 = pnand %p4368_p3, %p4362_p8 }
  0x7b   : > { %991 = vmatpush1.bf16.msra.mxu1 %v3942_v32  ;;  %v222_v32 = vld [vmem:[%s4606_s9 + $0x88] sm:$0xff] }
  0x7c   : > { %992 = vmatprep.subr.bf16.mxu1 %v3945_v33  ;;  %v224_v33 = vld [vmem:[%s4606_s9 + $0x98] sm:$0xff] }
  0x7d   : > { %878 = vmatpush1.bf16.msra.mxu0 %v3965_v38  ;;  %v4012_v38 = vld [vmem:[#allocation5 + $0x100] ss:$24 sps:$4 sm:$0xff]  }
  0x7e   : > { %879 = vmatprep.subr.bf16.mxu0 %v3967_v41  ;;  %v223_v41 = vld [vmem:[%s4606_s9 + $0x90] sm:$0xff] }
  0x7f   : > { %993 = vmatpush1.bf16.msra.mxu1 %v3948_v36  ;;  %v4014_v36 = vld [vmem:[#allocation5 + $0x104] ss:$24 sps:$4 sm:$0xff]  }
  0x80   : > { %994 = vmatprep.subr.bf16.mxu1 %v3951_v37  ;;  %v4662_v37 = vpack.c.bf16 %v224_v33, %v222_v32 }
  0x81   : > { %880 = vmatpush1.bf16.msra.mxu0 %v3971_v45  ;;  %v4015_v45 = vld [vmem:[#allocation5 + $0x130] ss:$24 sps:$4 sm:$0xff]  }
  0x82   : > { %881 = vmatprep.subr.bf16.mxu0 %v3973_v46  ;;  %v4672_v46 = vpack.c.bf16 %v223_v41, %v221_v40 }
  0x83   : > { %995 = vmatpush1.bf16.msra.mxu1 %v3954_v43  ;;  %v226_v43 = vld [vmem:[%s4606_s9 + $0xa8] sm:$0xff] }
  0x84   : > { %996 = vmatprep.subr.bf16.mxu1 %v3957_v44  ;;  %v228_v44 = vld [vmem:[%s4606_s9 + $0xb8] sm:$0xff] }
  0x85   : > { %882 = vmatpush1.bf16.msra.mxu0 %v3977_v49  ;;  %v4018_v49 = vld [vmem:[#allocation5 + $0x160] ss:$24 sps:$4 sm:$0xff]  }
  0x86   : > { %883 = vmatprep.subr.bf16.mxu0 %v3979_v50  ;;  %v4023_v50 = vld [vmem:[#allocation5 + $0x194] ss:$24 sps:$4 sm:$0xff]  }
  0x87   : > { %997 = vmatpush1.bf16.msra.mxu1 %v3960_v47  ;;  %v4020_v47 = vld [vmem:[#allocation5 + $0x164] ss:$24 sps:$4 sm:$0xff]  }
  0x88   : > { %998 = vmatprep.subr.bf16.mxu1 %v3963_v48  ;;  %v4674_v48 = vpack.c.bf16 %v228_v44, %v226_v43 }
  0x89   : > { %884 = vmatpush1.bf16.msra.mxu0 %v3983_v53  ;;  %v230_v53 = vld [vmem:[%s4606_s9 + $0xc8] sm:$0xff] }
  0x8a   : > { %885 = vmatprep.subr.bf16.mxu0 %v3985_v54  ;;  %v232_v54 = vld [vmem:[%s4606_s9 + $0xd8] sm:$0xff] }
  0x8b   : > { %999 = vmatpush1.bf16.msra.mxu1 %v3966_v51  ;;  %v225_v51 = vld [vmem:[%s4606_s9 + $0xa0] sm:$0xff] }
  0x8c   : > { %1000 = vmatprep.subr.bf16.mxu1 %v3969_v52  ;;  %v227_v52 = vld [vmem:[%s4606_s9 + $0xb0] sm:$0xff] }
  0x8d   : > { %886 = vmatpush1.bf16.msra.mxu0 %v3987_v57  ;;  %v4026_v57 = vld [vmem:[#allocation5 + $0x1c4] ss:$24 sps:$4 sm:$0xff]  }
  0x8e   : > { %887 = vmatprep.subr.bf16.mxu0 %v3988_v58  ;;  %v250_v58 = vpack.c.bf16 %v232_v54, %v230_v53 }
  0x8f   : > { %1001 = vmatpush1.bf16.msra.mxu1 %v3972_v55  ;;  %v4021_v55 = vld [vmem:[#allocation5 + $0x190] ss:$24 sps:$4 sm:$0xff]  }
  0x90   : > { %1002 = vmatprep.subr.bf16.mxu1 %v3975_v56  ;;  %v4684_v56 = vpack.c.bf16 %v227_v52, %v225_v51 }
  0x91   : > { %888 = vmatpush1.bf16.msra.mxu0 %v3990_v62  ;;  %v231_v62 = vld [vmem:[%s4606_s9 + $0xd0] sm:$0xff] }
  0x92   : > { %889 = vmatprep.subr.bf16.mxu0 %v3991_v0  ;;  %v236_v0 = vld [vmem:[%s4606_s9 + $0xf8] sm:$0xff] }
  0x93   : > { %1003 = vmatpush1.bf16.msra.mxu1 %v3978_v59  ;;  %v4024_v59 = vld [vmem:[#allocation5 + $0x1c0] ss:$24 sps:$4 sm:$0xff]  }
  0x94   : > { %1004 = vmatprep.subr.bf16.mxu1 %v3981_v60  ;;  %v4029_v60 = vld [vmem:[#allocation5 + $0x1f4] ss:$24 sps:$4 sm:$0xff]  }
  0x95   : > { %890 = vmatpush1.bf16.msra.mxu0 %v3993_v4  ;;  %v252_v4 = vpack.c.bf16 %v236_v0, %v234_v63 }
  0x96   : > { %891 = vmatprep.subr.bf16.mxu0 %v3994_v6  ;;  %v4030_v6 = vld [vmem:[#allocation5 + $0x220] ss:$24 sps:$4 sm:$0xff]  }
  0x97   : > { %1005 = vmatpush1.bf16.msra.mxu1 %v3984_v61  ;;  %v229_v61 = vld [vmem:[%s4606_s9 + $0xc0] sm:$0xff] }
  0x98   : > { %v249_v2 = vpack.c.bf16 %v231_v62, %v229_v61 }
  0x99   : > { %892 = vmatpush1.bf16.msra.mxu0 %v3996_v8  ;;  %v4035_v8 = vld [vmem:[#allocation5 + $0x254] ss:$24 sps:$4 sm:$0xff]  }
  0x9a   : > { %1007 = vmatmul.mubr.bf16.vlgmr.msra.gmra.mrb[0].mxu1 %v4626_v5  ;;  %1087 = vmatprep.subr.bf16.mxu0 %v3999_v10  ;;  %v235_v10 = vld [vmem:[%s4606_s9 + $0xf0] sm:$0xff] }
  0x9b   : > { %1016 = vmatprep.mubr.bf16.mxu1 %v4628_v7  ;;  %v251_v12 = vpack.c.bf16 %v235_v10, %v233_v9 }
  0x9c   : > { %894 = vmatmul.mubr.bf16.vlgmr.msra.gmra.mrb[0].mxu0 %v4626_v5 }
  0x9d   : > { %903 = vmatprep.mubr.bf16.mxu0 %v4628_v7  ;;  %1088 = vmatpush1.bf16.msra.mxu0 %v3997_v14  ;;  %v4036_v14 = vld [vmem:[#allocation5 + $0x280] ss:$24 sps:$4 sm:$0xff]  }
  0x9e   : > { %1089 = vmatprep.subr.bf16.mxu0 %v4002_v16  ;;  %v4041_v16 = vld [vmem:[#allocation5 + $0x2b4] ss:$24 sps:$4 sm:$0xff]  }
  0xa1   : > { %1090 = vmatpush1.bf16.msra.mxu0 %v4000_v18  ;;  %v4039_v18 = vld [vmem:[#allocation5 + $0x2b0] ss:$24 sps:$4 sm:$0xff]  }
  0xa2   : > { %1017 = vmatmul.mubr.bf16.gmra.mrb[4].mxu1 %v4636_v15  ;;  %1091 = vmatprep.subr.bf16.mxu0 %v4005_v19  ;;  %v4044_v19 = vld [vmem:[#allocation5 + $0x2e4] ss:$24 sps:$4 sm:$0xff]  }
  0xa3   : > { %1026 = vmatprep.mubr.bf16.mxu1 %v4638_v17 }
  0xa4   : > { %904 = vmatmul.mubr.bf16.gmra.mrb[4].mxu0 %v4636_v15 }
  0xa5   : > { %913 = vmatprep.mubr.bf16.mxu0 %v4638_v17  ;;  %1092 = vmatpush1.bf16.msra.mxu0 %v4003_v24 }
  0xa6   : > { %1093 = vmatprep.subr.bf16.mxu0 %v4008_v26 }
  0xa9   : > { %1094 = vmatpush1.bf16.msra.mxu0 %v4006_v28 }
  0xaa   : > { %1027 = vmatmul.mubr.bf16.gmra.mrb[8].mxu1 %v4648_v25  ;;  %1095 = vmatprep.subr.bf16.mxu0 %v4011_v29 }
  0xab   : > { %1036 = vmatprep.mubr.bf16.mxu1 %v4650_v27 }
  0xac   : > { %914 = vmatmul.mubr.bf16.gmra.mrb[8].mxu0 %v4648_v25 }
  0xad   : > { %923 = vmatprep.mubr.bf16.mxu0 %v4650_v27  ;;  %1096 = vmatpush1.bf16.msra.mxu0 %v4009_v34 }
  0xae   : > { %1097 = vmatprep.subr.bf16.mxu0 %v4014_v36 }
  0xb1   : > { %1098 = vmatpush1.bf16.msra.mxu0 %v4012_v38 }
  0xb2   : > { %1037 = vmatmul.mubr.bf16.gmra.mrb[12].mxu1 %v4660_v35  ;;  %1099 = vmatprep.subr.bf16.mxu0 %v4017_v39 }
  0xb3   : > { %1046 = vmatprep.mubr.bf16.mxu1 %v4662_v37 }
  0xb4   : > { %924 = vmatmul.mubr.bf16.gmra.mrb[12].mxu0 %v4660_v35 }
  0xb5   : > { %933 = vmatprep.mubr.bf16.mxu0 %v4662_v37  ;;  %1100 = vmatpush1.bf16.msra.mxu0 %v4015_v45 }
  0xb6   : > { %1101 = vmatprep.subr.bf16.mxu0 %v4020_v47 }
  0xb9   : > { %1102 = vmatpush1.bf16.msra.mxu0 %v4018_v49 }
  0xba   : > { %1047 = vmatmul.mubr.bf16.gmra.mrb[16].mxu1 %v4672_v46  ;;  %1103 = vmatprep.subr.bf16.mxu0 %v4023_v50 }
  0xbb   : > { %1056 = vmatprep.mubr.bf16.mxu1 %v4674_v48 }
  0xbc   : > { %934 = vmatmul.mubr.bf16.gmra.mrb[16].mxu0 %v4672_v46 }
  0xbd   : > { %943 = vmatprep.mubr.bf16.mxu0 %v4674_v48  ;;  %1104 = vmatpush1.bf16.msra.mxu0 %v4021_v55 }
  0xbe   : > { %1105 = vmatprep.subr.bf16.mxu0 %v4026_v57 }
  0xc1   : > { %1106 = vmatpush1.bf16.msra.mxu0 %v4024_v59 }
  0xc2   : > { %1057 = vmatmul.mubr.bf16.gmra.mrb[20].mxu1 %v4684_v56  ;;  %1107 = vmatprep.subr.bf16.mxu0 %v4029_v60 }
  0xc3   : > { %1066 = vmatprep.mubr.bf16.mxu1 %v250_v58 }
  0xc4   : > { %944 = vmatmul.mubr.bf16.gmra.mrb[20].mxu0 %v4684_v56 }
  0xc5   : > { %953 = vmatprep.mubr.bf16.mxu0 %v250_v58  ;;  %1108 = vmatpush1.bf16.msra.mxu0 %v4027_v1 }
  0xc6   : > { %1109 = vmatprep.subr.bf16.mxu0 %v4032_v3 }
  0xc9   : > { %1110 = vmatpush1.bf16.msra.mxu0 %v4030_v6 }
  0xca   : > { %1067 = vmatmul.mubr.bf16.gmra.mrb[24].mxu1 %v249_v2  ;;  %1111 = vmatprep.subr.bf16.mxu0 %v4035_v8 }
  0xcb   : > { %1076 = vmatprep.mubr.bf16.mxu1 %v252_v4 }
  0xcc   : > { %954 = vmatmul.mubr.bf16.gmra.mrb[24].mxu0 %v249_v2 }
  0xcd   : > { %963 = vmatprep.mubr.bf16.mxu0 %v252_v4  ;;  %1112 = vmatpush1.bf16.msra.mxu0 %v4033_v11 }
  0xce   : > { %1113 = vmatprep.subr.bf16.mxu0 %v4038_v13 }
  0xd1   : > { %1114 = vmatpush1.bf16.msra.mxu0 %v4036_v14 }
  0xd2   : > { %1077 = vmatmul.mubr.bf16.gmra.mrb[28].mxu1 %v251_v12  ;;  %1115 = vmatprep.subr.bf16.mxu0 %v4041_v16 }
  0xd4   : > { %964 = vmatmul.mubr.bf16.gmra.mrb[28].mxu0 %v251_v12 }
  0xd5   : > { %1116 = vmatpush1.bf16.msra.mxu0 %v4039_v18  ;;  %1119 = vmatprep.mubr.bf16.mxu0 %v4618_v42  ;;  %v351_v42 = vlaneseq }
  0xd6   : > { %1117 = vmatprep.subr.bf16.mxu0 %v4044_v19 }
  0xd9   : > { %1118 = vmatpush1.bf16.msra.mxu0 %v4042_v20 }
  0xdc   : > { %1120 = vmatmul.mubr.bf16.vlgmr.msra.gmra.mrb[32].mxu0 %v4626_v5  ;;  %v4708_v5 = vshrl.u32 %v351_v42, 7 }
  0xdd   : > { %1129 = vmatprep.mubr.bf16.mxu0 %v4628_v7 }
  0xde   : > { %v361_v7 = vsub.s32 2, %v4708_v5  ;;  %v353_v22 = vsub.s32 0, %v4708_v5 }
  0xe4   : > { %1130 = vmatmul.mubr.bf16.gmra.mrb[36].mxu0 %v4636_v15  ;;  %v4714_v15 = vld [vmem:[%s5910_s2] sm:$0x3f] }
  0xe5   : > { %1139 = vmatprep.mubr.bf16.mxu0 %v4638_v17  ;;  %v365_v17 = vsub.s32 3, %v4708_v5  ;;  %v4718_v21 = vrot.slane %v4714_v15, %v361_v7  ;;  %v4728_v31 = vrot.slane %v4714_v15, %v353_v22 }
  0xe7   : > { %v4722_v24 = vrot.slane %v4714_v15, %v365_v17 }
  0xec   : > { %1140 = vmatmul.mubr.bf16.gmra.mrb[40].mxu0 %v4648_v25  ;;  %v357_v25 = vsub.s32 1, %v4708_v5 }
  0xed   : > { %1149 = vmatprep.mubr.bf16.mxu0 %v4650_v27 }
  0xee   : > { %v4733_v34 = vrot.slane %v4714_v15, %v357_v25 }
  0xf4   : > { %1150 = vmatmul.mubr.bf16.gmra.mrb[44].mxu0 %v4660_v35 }
  0xf5   : > { %1159 = vmatprep.mubr.bf16.mxu0 %v4662_v37 }
  0xfc   : > { %1160 = vmatmul.mubr.bf16.gmra.mrb[48].mxu0 %v4672_v46 }
  0xfd   : > { %1169 = vmatprep.mubr.bf16.mxu0 %v4674_v48 }
 0x104   : > { %1170 = vmatmul.mubr.bf16.gmra.mrb[52].mxu0 %v4684_v56 }
 0x105   : > { %1179 = vmatprep.mubr.bf16.mxu0 %v250_v58 }
 0x10c   : > { %1180 = vmatmul.mubr.bf16.gmra.mrb[56].mxu0 %v249_v2 }
 0x10d   : > { %1189 = vmatprep.mubr.bf16.mxu0 %v252_v4 }
 0x114   : > { %1190 = vmatmul.mubr.bf16.gmra.mrb[60].mxu0 %v251_v12 }
 0x16d   : > { %v1008_v23 = vpop.f32.mrb[0].mxu1 }
 0x16e   : > { %v1010_v26 = vpop.f32.mrb[1].mxu1  ;;  %v1009_v28 = vadd.f32 %v1008_v23, %v4718_v21 }
 0x16f   : > { %v1012_v27 = vpop.f32.mrb[2].mxu1  ;;  %v1011_v32 = vadd.f32 %v1010_v26, %v4722_v24  ;;  %v895_v37 = vpop.f32.mrb[0].mxu0 }
 0x170   : > { %v1013_v29 = vadd.f32 %v1012_v27, %v4718_v21  ;;  %v1014_v30 = vpop.f32.mrb[3].mxu1  ;;  %v896_v39 = vadd.f32 %v895_v37, %v4728_v31  ;;  %v897_v40 = vpop.f32.mrb[1].mxu0 }
 0x171   : > { %v1015_v33 = vadd.f32 %v1014_v30, %v4722_v24  ;;  %v898_v43 = vadd.f32 %v897_v40, %v4733_v34  ;;  %v899_v44 = vpop.f32.mrb[2].mxu0 }
 0x172   : > { %v1202_v35 = vpack.c.bf16 %v1013_v29, %v1009_v28  ;;  %v900_v46 = vadd.f32 %v899_v44, %v4728_v31  ;;  %v901_v47 = vpop.f32.mrb[3].mxu0 }
 0x173   : > { %v4735_v36 = vpack.c.bf16 %v1015_v33, %v1011_v32  ;;  %v902_v49 = vadd.f32 %v901_v47, %v4733_v34 }
 0x174   : > { %1691 = vrot.lane.b32.xlu0 %v1202_v35, %s4437_s4  ;;  %3805 = vmatprep.subr.msk.bf16.mxu1 %vm1248_vm0, %v1202_v35  ;;  %v1274_v38 = vsel %vm1248_vm0, %v1202_v35, 0  ;;  %v4746_v53 = vpack.c.bf16 %v900_v46, %v896_v39 }
 0x175   : > { %v1018_v41 = vpop.f32.mrb[4].mxu1  ;;  %3550 = vmatpush3.bf16.xpose.msra.mxu1 %v1274_v38  ;;  %v4750_v56 = vpack.c.bf16 %v902_v49, %v898_v43 }
 0x176   : > { %v1020_v45 = vpop.f32.mrb[5].mxu1  ;;  %v1019_v50 = vadd.f32 %v1018_v41, %v4718_v21  ;;  %3565 = vmatprep.mubr.msk.bf16.mxu1 %vm1248_vm0, %v4746_v53 }
 0x177   : > { %v1022_v48 = vpop.f32.mrb[6].mxu1  ;;  %v1021_v54 = vadd.f32 %v1020_v45, %v4722_v24  ;;  %5959 = vst [vmem:[#allocation11_spill] sm:$0xff] %v4750_v56  ;;  %v905_v59 = vpop.f32.mrb[4].mxu0 }
 0x178   : > { %v1023_v51 = vadd.f32 %v1022_v48, %v4718_v21  ;;  %v1024_v52 = vpop.f32.mrb[7].mxu1  ;;  %v906_v61 = vadd.f32 %v905_v59, %v4728_v31  ;;  %v907_v62 = vpop.f32.mrb[5].mxu0 }
 0x179   : > { %v1025_v55 = vadd.f32 %v1024_v52, %v4722_v24  ;;  %v908_v0 = vadd.f32 %v907_v62, %v4733_v34  ;;  %v909_v1 = vpop.f32.mrb[6].mxu0 }
 0x17a   : > { %v1208_v57 = vpack.c.bf16 %v1023_v51, %v1019_v50  ;;  %v910_v3 = vadd.f32 %v909_v1, %v4728_v31  ;;  %v911_v4 = vpop.f32.mrb[7].mxu0 }
 0x17b   : > { %v4754_v58 = vpack.c.bf16 %v1025_v55, %v1021_v54  ;;  %v912_v8 = vadd.f32 %v911_v4, %v4733_v34 }
 0x17c   : > { %1693 = vrot.lane.b32.xlu0 %v1208_v57, %s4437_s4  ;;  %3806 = vmatprep.subr.msk.bf16.mxu1 %vm1248_vm0, %v1208_v57  ;;  %v1277_v60 = vsel %vm1248_vm0, %v1208_v57, 0  ;;  %v4765_v12 = vpack.c.bf16 %v910_v3, %v906_v61 }
 0x17d   : > { %v1028_v63 = vpop.f32.mrb[8].mxu1  ;;  %3552 = vmatpush3.bf16.xpose.msra.mxu1 %v1277_v60  ;;  %v4769_v16 = vpack.c.bf16 %v912_v8, %v908_v0 }
 0x17e   : > { %v1030_v2 = vpop.f32.mrb[9].mxu1  ;;  %v1029_v9 = vadd.f32 %v1028_v63, %v4718_v21 }
 0x17f   : > { %v1032_v6 = vpop.f32.mrb[10].mxu1  ;;  %v1031_v13 = vadd.f32 %v1030_v2, %v4722_v24  ;;  %5960 = vst [vmem:[#allocation12_spill] sm:$0xff] %v4769_v16  ;;  %v915_v20 = vpop.f32.mrb[8].mxu0 }
 0x180   : > { %v1033_v10 = vadd.f32 %v1032_v6, %v4718_v21  ;;  %v1034_v11 = vpop.f32.mrb[11].mxu1  ;;  %v916_v7 = vadd.f32 %v915_v20, %v4728_v31  ;;  %v917_v17 = vpop.f32.mrb[9].mxu0 }
 0x181   : > { %v1035_v14 = vadd.f32 %v1034_v11, %v4722_v24  ;;  %v918_v23 = vadd.f32 %v917_v17, %v4733_v34  ;;  %v919_v25 = vpop.f32.mrb[10].mxu0 }
 0x182   : > { %v1214_v18 = vpack.c.bf16 %v1033_v10, %v1029_v9  ;;  %v920_v27 = vadd.f32 %v919_v25, %v4728_v31  ;;  %v921_v28 = vpop.f32.mrb[11].mxu0 }
 0x183   : > { %v4771_v19 = vpack.c.bf16 %v1035_v14, %v1031_v13  ;;  %v922_v32 = vadd.f32 %v921_v28, %v4733_v34 }
 0x184   : > { %1695 = vrot.lane.b32.xlu1 %v1214_v18, %s4437_s4  ;;  %3807 = vmatprep.subr.msk.bf16.mxu1 %vm1248_vm0, %v1214_v18  ;;  %v1280_v42 = vsel %vm1248_vm0, %v1214_v18, 0  ;;  %v4783_v38 = vpack.c.bf16 %v920_v27, %v916_v7 }
 0x185   : > { %v1038_v22 = vpop.f32.mrb[12].mxu1  ;;  %3554 = vmatpush3.bf16.xpose.msra.mxu1 %v1280_v42  ;;  %v4786_v40 = vpack.c.bf16 %v922_v32, %v918_v23 }
 0x186   : > { %v1040_v26 = vpop.f32.mrb[13].mxu1  ;;  %v1039_v33 = vadd.f32 %v1038_v22, %v4718_v21 }
 0x187   : > { %v1041_v29 = vadd.f32 %v1040_v26, %v4722_v24  ;;  %v1042_v30 = vpop.f32.mrb[14].mxu1  ;;  %5961 = vst [vmem:[#allocation13_spill] sm:$0xff] %v4786_v40  ;;  %v925_v44 = vpop.f32.mrb[12].mxu0 }
 0x188   : > { %v1043_v35 = vadd.f32 %v1042_v30, %v4718_v21  ;;  %v1044_v37 = vpop.f32.mrb[15].mxu1  ;;  %v926_v46 = vadd.f32 %v925_v44, %v4728_v31  ;;  %v927_v47 = vpop.f32.mrb[13].mxu0 }
 0x189   : > { %v1045_v39 = vadd.f32 %v1044_v37, %v4722_v24  ;;  %v928_v49 = vadd.f32 %v927_v47, %v4733_v34  ;;  %v929_v50 = vpop.f32.mrb[14].mxu0 }
 0x18a   : > { %v1220_v41 = vpack.c.bf16 %v1043_v35, %v1039_v33  ;;  %v930_v52 = vadd.f32 %v929_v50, %v4728_v31  ;;  %v931_v54 = vpop.f32.mrb[15].mxu0 }
 0x18b   : > { %v4788_v43 = vpack.c.bf16 %v1045_v39, %v1041_v29  ;;  %v932_v59 = vadd.f32 %v931_v54, %v4733_v34 }
 0x18c   : > { %1697 = vrot.lane.b32.xlu1 %v1220_v41, %s4437_s4  ;;  %3808 = vmatprep.subr.msk.bf16.mxu1 %vm1248_vm0, %v1220_v41  ;;  %v1283_v45 = vsel %vm1248_vm0, %v1220_v41, 0  ;;  %v4800_v63 = vpack.c.bf16 %v930_v52, %v926_v46 }
 0x18d   : > { %v1048_v48 = vpop.f32.mrb[16].mxu1  ;;  %3556 = vmatpush3.bf16.xpose.msra.mxu1 %v1283_v45  ;;  %v4803_v1 = vpack.c.bf16 %v932_v59, %v928_v49 }
 0x18e   : > { %v1050_v51 = vpop.f32.mrb[17].mxu1  ;;  %v1049_v60 = vadd.f32 %v1048_v48, %v4718_v21 }
 0x18f   : > { %v1051_v55 = vadd.f32 %v1050_v51, %v4722_v24  ;;  %v1052_v57 = vpop.f32.mrb[18].mxu1  ;;  %5962 = vst [vmem:[#allocation14_spill] sm:$0xff] %v4803_v1  ;;  %v935_v4 = vpop.f32.mrb[16].mxu0 }
 0x190   : > { %v1053_v61 = vadd.f32 %v1052_v57, %v4718_v21  ;;  %v1054_v62 = vpop.f32.mrb[19].mxu1  ;;  %v936_v8 = vadd.f32 %v935_v4, %v4728_v31  ;;  %v937_v9 = vpop.f32.mrb[17].mxu0 }
 0x191   : > { %v1055_v0 = vadd.f32 %v1054_v62, %v4722_v24  ;;  %v938_v11 = vadd.f32 %v937_v9, %v4733_v34  ;;  %v939_v13 = vpop.f32.mrb[18].mxu0 }
 0x192   : > { %v1226_v2 = vpack.c.bf16 %v1053_v61, %v1049_v60  ;;  %v940_v18 = vadd.f32 %v939_v13, %v4728_v31  ;;  %v941_v20 = vpop.f32.mrb[19].mxu0 }
 0x193   : > { %v4805_v3 = vpack.c.bf16 %v1055_v0, %v1051_v55  ;;  %v942_v17 = vadd.f32 %v941_v20, %v4733_v34 }
 0x194   : > { %1699 = vrot.lane.b32.xlu0 %v1226_v2, %s4437_s4  ;;  %3809 = vmatprep.subr.msk.bf16.mxu1 %vm1248_vm0, %v1226_v2  ;;  %v1286_v6 = vsel %vm1248_vm0, %v1226_v2, 0  ;;  %v4817_v26 = vpack.c.bf16 %v940_v18, %v936_v8 }
 0x195   : > { %5963 = vst [vmem:[#allocation15_spill] sm:$0xff] %v4805_v3  ;;  %v1058_v10 = vpop.f32.mrb[20].mxu1  ;;  %3558 = vmatpush3.bf16.xpose.msra.mxu1 %v1286_v6  ;;  %v4820_v28 = vpack.c.bf16 %v942_v17, %v938_v11 }
 0x196   : > { %v1060_v14 = vpop.f32.mrb[21].mxu1  ;;  %v1059_v22 = vadd.f32 %v1058_v10, %v4718_v21 }
 0x197   : > { %v1061_v42 = vadd.f32 %v1060_v14, %v4722_v24  ;;  %v1062_v7 = vpop.f32.mrb[22].mxu1  ;;  %5964 = vst [vmem:[#allocation16_spill] sm:$0xff] %v4820_v28  ;;  %v945_v32 = vpop.f32.mrb[20].mxu0 }
 0x198   : > { %v1063_v23 = vadd.f32 %v1062_v7, %v4718_v21  ;;  %v1064_v25 = vpop.f32.mrb[23].mxu1  ;;  %v946_v35 = vadd.f32 %v945_v32, %v4728_v31  ;;  %v947_v37 = vpop.f32.mrb[21].mxu0 }
 0x199   : > { %v1065_v27 = vadd.f32 %v1064_v25, %v4722_v24  ;;  %v948_v41 = vadd.f32 %v947_v37, %v4733_v34  ;;  %v949_v44 = vpop.f32.mrb[22].mxu0 }
 0x19a   : > { %v1232_v29 = vpack.c.bf16 %v1063_v23, %v1059_v22  ;;  %v950_v46 = vadd.f32 %v949_v44, %v4728_v31  ;;  %v951_v47 = vpop.f32.mrb[23].mxu0 }
 0x19b   : > { %v4822_v30 = vpack.c.bf16 %v1065_v27, %v1061_v42  ;;  %v952_v50 = vadd.f32 %v951_v47, %v4733_v34 }
 0x19c   : > { %1701 = vrot.lane.b32.xlu1 %v1232_v29, %s4437_s4  ;;  %3810 = vmatprep.subr.msk.bf16.mxu1 %vm1248_vm0, %v1232_v29  ;;  %v1289_v33 = vsel %vm1248_vm0, %v1232_v29, 0  ;;  %v4834_v55 = vpack.c.bf16 %v950_v46, %v946_v35 }
 0x19d   : > { %5965 = vst [vmem:[#allocation17_spill] sm:$0xff] %v4822_v30  ;;  %v1068_v39 = vpop.f32.mrb[24].mxu1  ;;  %3560 = vmatpush3.bf16.xpose.msra.mxu1 %v1289_v33  ;;  %v4837_v59 = vpack.c.bf16 %v952_v50, %v948_v41 }
 0x19e   : > { %v1070_v45 = vpop.f32.mrb[25].mxu1  ;;  %v1069_v51 = vadd.f32 %v1068_v39, %v4718_v21  ;;  %v373_v39 = vsub.s32 5, %v4708_v5 }
 0x19f   : > { %v1071_v48 = vadd.f32 %v1070_v45, %v4722_v24  ;;  %v1072_v49 = vpop.f32.mrb[26].mxu1  ;;  %5966 = vst [vmem:[#allocation18_spill] sm:$0xff] %v4837_v59  ;;  %v955_v62 = vpop.f32.mrb[24].mxu0 }
 0x1a0   : > { %v1073_v52 = vadd.f32 %v1072_v49, %v4718_v21  ;;  %v1074_v54 = vpop.f32.mrb[27].mxu1  ;;  %v956_v2 = vadd.f32 %v955_v62, %v4728_v31  ;;  %v957_v4 = vpop.f32.mrb[25].mxu0  ;;  %v4881_v49 = vrot.slane %v4714_v15, %v373_v39 }
 0x1a1   : > { %v1075_v57 = vadd.f32 %v1074_v54, %v4722_v24  ;;  %v958_v8 = vadd.f32 %v957_v4, %v4733_v34  ;;  %v959_v9 = vpop.f32.mrb[26].mxu0 }
 0x1a2   : > { %v1238_v60 = vpack.c.bf16 %v1073_v52, %v1069_v51  ;;  %v960_v11 = vadd.f32 %v959_v9, %v4728_v31  ;;  %v961_v13 = vpop.f32.mrb[27].mxu0 }
 0x1a3   : > { %v4839_v61 = vpack.c.bf16 %v1075_v57, %v1071_v48  ;;  %v962_v20 = vadd.f32 %v961_v13, %v4733_v34 }
 0x1a4   : > { %1703 = vrot.lane.b32.xlu0 %v1238_v60, %s4437_s4  ;;  %3811 = vmatprep.subr.msk.bf16.mxu1 %vm1248_vm0, %v1238_v60  ;;  %v1292_v0 = vsel %vm1248_vm0, %v1238_v60, 0  ;;  %v4853_v22 = vpack.c.bf16 %v960_v11, %v956_v2 }
 0x1a5   : > { %5967 = vst [vmem:[#allocation19_spill] sm:$0xff] %v4839_v61  ;;  %v1078_v6 = vpop.f32.mrb[28].mxu1  ;;  %3562 = vmatpush3.bf16.xpose.msra.mxu1 %v1292_v0  ;;  %v4856_v25 = vpack.c.bf16 %v962_v20, %v958_v8 }
 0x1a6   : > { %v1080_v10 = vpop.f32.mrb[29].mxu1  ;;  %v1079_v42 = vadd.f32 %v1078_v6, %v4718_v21 }
 0x1a7   : > { %v1081_v14 = vadd.f32 %v1080_v10, %v4722_v24  ;;  %v1082_v18 = vpop.f32.mrb[30].mxu1  ;;  %5968 = vst [vmem:[#allocation20_spill] sm:$0xff] %v4856_v25  ;;  %v965_v32 = vpop.f32.mrb[28].mxu0 }
 0x1a8   : > { %v1083_v7 = vadd.f32 %v1082_v18, %v4718_v21  ;;  %v1084_v17 = vpop.f32.mrb[31].mxu1  ;;  %1667 = vrot.lane.b32.xlu0 %v4746_v53, %s4437_s4  ;;  %v966_v33 = vadd.f32 %v965_v32, %v4728_v31  ;;  %v967_v35 = vpop.f32.mrb[29].mxu0  ;;  %v369_v53 = vsub.s32 4, %v4708_v5 }
 0x1a9   : > { %v1085_v23 = vadd.f32 %v1084_v17, %v4722_v24  ;;  %v968_v24 = vadd.f32 %v967_v35, %v4733_v34  ;;  %v969_v37 = vpop.f32.mrb[30].mxu0 }
 0x1aa   : > { %v1244_v27 = vpack.c.bf16 %v1083_v7, %v1079_v42  ;;  %v970_v41 = vadd.f32 %v969_v37, %v4728_v31  ;;  %v971_v44 = vpop.f32.mrb[31].mxu0  ;;  %v4874_v47 = vrot.slane %v4714_v15, %v369_v53 }
 0x1ab   : > { %v4858_v29 = vpack.c.bf16 %v1085_v23, %v1081_v14  ;;  %v972_v45 = vadd.f32 %v971_v44, %v4733_v34 }
 0x1ac   : > { %1705 = vrot.lane.b32.xlu1 %v1244_v27, %s4437_s4  ;;  %3812 = vmatprep.subr.msk.bf16.mxu1 %vm1248_vm0, %v1244_v27  ;;  %v1295_v21 = vsel %vm1248_vm0, %v1244_v27, 0  ;;  %v1242_v46 = vpack.c.bf16 %v970_v41, %v966_v33 }
 0x1ad   : > { %5969 = vst [vmem:[#allocation21_spill] sm:$0xff] %v4858_v29  ;;  %1671 = vrot.lane.b32.xlu0 %v4783_v38, %s4437_s4  ;;  %3564 = vmatpush3.bf16.xpose.msra.mxu1 %v1295_v21  ;;  %v4878_v48 = vpack.c.bf16 %v972_v45, %v968_v24 }
 0x1af   : > { %5970 = vst [vmem:[#allocation22_spill] sm:$0xff] %v4878_v48  ;;  %v1121_v5 = vpop.f32.mrb[32].mxu0 }
 0x1b0   : > { %1669 = vrot.lane.b32.xlu1 %v4765_v12, %s4437_s4  ;;  %v1122_v31 = vadd.f32 %v1121_v5, %v4874_v47  ;;  %v1123_v34 = vpop.f32.mrb[33].mxu0 }
 0x1b1   : > { %1675 = vrot.lane.b32.xlu0 %v4817_v26, %s4437_s4  ;;  %v1124_v50 = vadd.f32 %v1123_v34, %v4881_v49  ;;  %v1125_v15 = vpop.f32.mrb[34].mxu0 }
 0x1b2   : > { %v1126_v51 = vadd.f32 %v1125_v15, %v4874_v47  ;;  %v1127_v52 = vpop.f32.mrb[35].mxu0 }
 0x1b3   : > { %v1128_v54 = vadd.f32 %v1127_v52, %v4881_v49 }
 0x1b4   : > { %1673 = vrot.lane.b32.xlu1 %v4800_v63, %s4437_s4  ;;  %3566 = vmatmul.mubr.msk.bf16.vlgmr.msra.gmra.mrb[32].mxu1 %vm1248_vm0, %v4765_v12  ;;  %v1204_v12 = vpack.c.bf16 %v1126_v51, %v1122_v31 }
 0x1b5   : > { %1679 = vrot.lane.b32.xlu0 %v4853_v22, %s4437_s4  ;;  %3569 = vmatprep.mubr.msk.bf16.mxu1 %vm1248_vm0, %v4783_v38  ;;  %v4899_v57 = vpack.c.bf16 %v1128_v54, %v1124_v50 }
 0x1b6   : > { %3581 = vmatprep.subr.bf16.mxu1 %v1204_v12 }
 0x1b7   : > { %v1131_v60 = vpop.f32.mrb[36].mxu0  ;;  %3582 = vmatpush3.bf16.msra.mxu1 %v1204_v12 }
 0x1b8   : > { %1677 = vrot.lane.b32.xlu1 %v4834_v55, %s4437_s4  ;;  %v1132_v38 = vadd.f32 %v1131_v60, %v4874_v47  ;;  %v1133_v62 = vpop.f32.mrb[37].mxu0 }
 0x1b9   : > { %2656 = vrot.lane.b32.xlu0 %v4735_v36, %s4437_s4  ;;  %v1134_v0 = vadd.f32 %v1133_v62, %v4881_v49  ;;  %v1135_v2 = vpop.f32.mrb[38].mxu0 }
 0x1ba   : > { %v1136_v4 = vadd.f32 %v1135_v2, %v4874_v47  ;;  %v1137_v6 = vpop.f32.mrb[39].mxu0 }
 0x1bb   : > { %v1138_v8 = vadd.f32 %v1137_v6, %v4881_v49 }
 0x1bc   : > { %1681 = vrot.lane.b32.xlu1 %v1242_v46, %s4437_s4  ;;  %3570 = vmatmul.mubr.msk.bf16.gmra.mrb[36].mxu1 %vm1248_vm0, %v4800_v63  ;;  %v1210_v63 = vpack.c.bf16 %v1136_v4, %v1132_v38 }
 0x1bd   : > { %2660 = vrot.lane.b32.xlu0 %v4771_v19, %s4437_s4  ;;  %3573 = vmatprep.mubr.msk.bf16.mxu1 %vm1248_vm0, %v4817_v26  ;;  %v4914_v9 = vpack.c.bf16 %v1138_v8, %v1134_v0 }
 0x1be   : > { %3583 = vmatprep.subr.bf16.mxu1 %v1210_v63 }
 0x1bf   : > { %5971 = vst [vmem:[#allocation23_spill] sm:$0xff] %v4914_v9  ;;  %v1141_v10 = vpop.f32.mrb[40].mxu0  ;;  %3584 = vmatpush3.bf16.msra.mxu1 %v1210_v63 }
 0x1c0   : > { %2658 = vrot.lane.b32.xlu1 %v4754_v58, %s4437_s4  ;;  %v1142_v26 = vadd.f32 %v1141_v10, %v4874_v47  ;;  %v1143_v11 = vpop.f32.mrb[41].mxu0 }
 0x1c1   : > { %2014 = vrot.lane.b32.xlu0 %v1210_v63, %s4437_s4  ;;  %v1144_v13 = vadd.f32 %v1143_v11, %v4881_v49  ;;  %v1145_v14 = vpop.f32.mrb[42].mxu0 }
 0x1c2   : > { %v1146_v18 = vadd.f32 %v1145_v14, %v4874_v47  ;;  %v1147_v20 = vpop.f32.mrb[43].mxu0 }
 0x1c3   : > { %v1148_v42 = vadd.f32 %v1147_v20, %v4881_v49 }
 0x1c4   : > { %3574 = vmatmul.mubr.msk.bf16.gmra.mrb[40].mxu1 %vm1248_vm0, %v4834_v55  ;;  %2012 = vrot.lane.b32.xlu1 %v1204_v12, %s4437_s4  ;;  %v1216_v7 = vpack.c.bf16 %v1146_v18, %v1142_v26 }
 0x1c5   : > { %3577 = vmatprep.mubr.msk.bf16.mxu1 %vm1248_vm0, %v4853_v22  ;;  %v4926_v17 = vpack.c.bf16 %v1148_v42, %v1144_v13 }
 0x1c6   : > { %3585 = vmatprep.subr.bf16.mxu1 %v1216_v7  ;;  %2016 = vrot.lane.b32.xlu0 %v1216_v7, %s4437_s4 }
 0x1c7   : > { %5972 = vst [vmem:[#allocation24_spill] sm:$0xff] %v4926_v17  ;;  %v1151_v55 = vpop.f32.mrb[44].mxu0  ;;  %3586 = vmatpush3.bf16.msra.mxu1 %v1216_v7 }
 0x1c8   : > { %v1152_v22 = vadd.f32 %v1151_v55, %v4874_v47  ;;  %v1153_v23 = vpop.f32.mrb[45].mxu0 }
 0x1c9   : > { %v1154_v27 = vadd.f32 %v1153_v23, %v4881_v49  ;;  %v1155_v32 = vpop.f32.mrb[46].mxu0 }
 0x1ca   : > { %v1156_v21 = vadd.f32 %v1155_v32, %v4874_v47  ;;  %v1157_v33 = vpop.f32.mrb[47].mxu0 }
 0x1cb   : > { %v1158_v35 = vadd.f32 %v1157_v33, %v4881_v49 }
 0x1cc   : > { %3578 = vmatmul.mubr.msk.bf16.gmra.mrb[44].mxu1 %vm1248_vm0, %v1242_v46  ;;  %v1222_v53 = vpack.c.bf16 %v1156_v21, %v1152_v22 }
 0x1cd   : > { %v4934_v24 = vpack.c.bf16 %v1158_v35, %v1154_v27 }
 0x1ce   : > { %3587 = vmatprep.subr.bf16.mxu1 %v1222_v53  ;;  %2018 = vrot.lane.b32.xlu1 %v1222_v53, %s4437_s4 }
 0x1cf   : > { %5973 = vst [vmem:[#allocation25_spill] sm:$0xff] %v4934_v24  ;;  %v1161_v37 = vpop.f32.mrb[48].mxu0  ;;  %3588 = vmatpush3.bf16.msra.mxu1 %v1222_v53 }
 0x1d0   : > { %v1162_v39 = vadd.f32 %v1161_v37, %v4874_v47  ;;  %v1163_v41 = vpop.f32.mrb[49].mxu0 }
 0x1d1   : > { %v1164_v44 = vadd.f32 %v1163_v41, %v4881_v49  ;;  %v1165_v45 = vpop.f32.mrb[50].mxu0 }
 0x1d2   : > { %v1166_v46 = vadd.f32 %v1165_v45, %v4874_v47  ;;  %v1167_v5 = vpop.f32.mrb[51].mxu0 }
 0x1d3   : > { %v1168_v31 = vadd.f32 %v1167_v5, %v4881_v49 }
 0x1d4   : > { %v1228_v34 = vpack.c.bf16 %v1166_v46, %v1162_v39 }
 0x1d5   : > { %v4941_v50 = vpack.c.bf16 %v1168_v31, %v1164_v44 }
 0x1d6   : > { %3589 = vmatprep.subr.bf16.mxu1 %v1228_v34  ;;  %2020 = vrot.lane.b32.xlu0 %v1228_v34, %s4437_s4 }
 0x1d7   : > { %5974 = vst [vmem:[#allocation26_spill] sm:$0xff] %v4941_v50  ;;  %v1171_v15 = vpop.f32.mrb[52].mxu0  ;;  %3590 = vmatpush3.bf16.msra.mxu1 %v1228_v34 }
 0x1d8   : > { %v1172_v51 = vadd.f32 %v1171_v15, %v4874_v47  ;;  %v1173_v52 = vpop.f32.mrb[53].mxu0 }
 0x1d9   : > { %v1174_v54 = vadd.f32 %v1173_v52, %v4881_v49  ;;  %v1175_v12 = vpop.f32.mrb[54].mxu0 }
 0x1da   : > { %v1176_v60 = vadd.f32 %v1175_v12, %v4874_v47  ;;  %v1177_v38 = vpop.f32.mrb[55].mxu0 }
 0x1db   : > { %v1178_v62 = vadd.f32 %v1177_v38, %v4881_v49 }
 0x1dc   : > { %v1234_v0 = vpack.c.bf16 %v1176_v60, %v1172_v51 }
 0x1dd   : > { %v4948_v2 = vpack.c.bf16 %v1178_v62, %v1174_v54  ;;  %v2239_v62 = vsel %vm1248_vm0, %v4735_v36, 0 }
 0x1de   : > { %3591 = vmatprep.subr.bf16.mxu1 %v1234_v0  ;;  %2022 = vrot.lane.b32.xlu1 %v1234_v0, %s4437_s4 }
 0x1df   : > { %5975 = vst [vmem:[#allocation27_spill] sm:$0xff] %v4948_v2  ;;  %v1181_v4 = vpop.f32.mrb[56].mxu0  ;;  %3592 = vmatpush3.bf16.msra.mxu1 %v1234_v0 }
 0x1e0   : > { %v1182_v6 = vadd.f32 %v1181_v4, %v4874_v47  ;;  %v1183_v8 = vpop.f32.mrb[57].mxu0 }
 0x1e1   : > { %v1184_v63 = vadd.f32 %v1183_v8, %v4881_v49  ;;  %v1185_v10 = vpop.f32.mrb[58].mxu0  ;;  %v2242_v8 = vsel %vm1248_vm0, %v4754_v58, 0 }
 0x1e2   : > { %v1186_v11 = vadd.f32 %v1185_v10, %v4874_v47  ;;  %v1187_v13 = vpop.f32.mrb[59].mxu0 }
 0x1e3   : > { %v1188_v18 = vadd.f32 %v1187_v13, %v4881_v49  ;;  %v2257_v13 = vsel %vm1248_vm0, %v4839_v61, 0 }
 0x1e4   : > { %v1240_v20 = vpack.c.bf16 %v1186_v11, %v1182_v6  ;;  %v2254_v11 = vsel %vm1248_vm0, %v4822_v30, 0 }
 0x1e5   : > { %v4957_v42 = vpack.c.bf16 %v1188_v18, %v1184_v63 }
 0x1e6   : > { %v1692_v26 = vpop.permute.xlu0 %1691  ;;  %3593 = vmatprep.subr.bf16.mxu1 %v1240_v20  ;;  %2024 = vrot.lane.b32.xlu0 %v1240_v20, %s4437_s4 }
 0x1e7   : > { %3813 = vmatprep.subr.msk.bf16.mxu0 %vm1248_vm0, %v1692_v26  ;;  %v1732_v14 = vsel %vm1248_vm0, %v1692_v26, 0  ;;  %5976 = vst [vmem:[#allocation28_spill] sm:$0xff] %v4957_v42  ;;  %v1191_v7 = vpop.f32.mrb[60].mxu0  ;;  %3594 = vmatpush3.bf16.msra.mxu1 %v1240_v20  ;;  %v2245_v26 = vsel %vm1248_vm0, %v4771_v19, 0 }
 0x1e8   : > { %3614 = vmatpush3.bf16.xpose.msra.mxu0 %v1732_v14  ;;  %v1192_v55 = vadd.f32 %v1191_v7, %v4874_v47  ;;  %v1193_v22 = vpop.f32.mrb[61].mxu0  ;;  %v2260_v14 = vsel %vm1248_vm0, %v4858_v29, 0 }
 0x1e9   : > { %v1194_v23 = vadd.f32 %v1193_v22, %v4881_v49  ;;  %v1195_v27 = vpop.f32.mrb[62].mxu0 }
 0x1ea   : > { %v1196_v21 = vadd.f32 %v1195_v27, %v4874_v47  ;;  %v1197_v33 = vpop.f32.mrb[63].mxu0 }
 0x1eb   : > { %v1198_v53 = vadd.f32 %v1197_v33, %v4881_v49 }
 0x1ec   : > { %v1246_v37 = vpack.c.bf16 %v1196_v21, %v1192_v55 }
 0x1ed   : > { %v4966_v39 = vpack.c.bf16 %v1198_v53, %v1194_v23 }
 0x1ee   : > { %v1694_v32 = vpop.permute.xlu0 %1693  ;;  %3595 = vmatprep.subr.bf16.mxu1 %v1246_v37  ;;  %2026 = vrot.lane.b32.xlu1 %v1246_v37, %s4437_s4 }
 0x1ef   : > { %3814 = vmatprep.subr.msk.bf16.mxu0 %vm1248_vm0, %v1694_v32  ;;  %v1735_v35 = vsel %vm1248_vm0, %v1694_v32, 0  ;;  %5977 = vst [vmem:[#allocation29_spill] sm:$0xff] %v4966_v39  ;;  %3596 = vmatpush3.bf16.msra.mxu1 %v1246_v37 }
 0x1f0   : > { %3616 = vmatpush3.bf16.xpose.msra.mxu0 %v1735_v35 }
 0x1f6   : > { %v1696_v41 = vpop.permute.xlu1 %1695 }
 0x1f7   : > { %3815 = vmatprep.subr.msk.bf16.mxu0 %vm1248_vm0, %v1696_v41  ;;  %v1738_v47 = vsel %vm1248_vm0, %v1696_v41, 0 }
 0x1f8   : > { %3618 = vmatpush3.bf16.xpose.msra.mxu0 %v1738_v47 }
 0x1fe   : > { %v1698_v44 = vpop.permute.xlu1 %1697 }
 0x1ff   : > { %3816 = vmatprep.subr.msk.bf16.mxu0 %vm1248_vm0, %v1698_v44  ;;  %v1741_v45 = vsel %vm1248_vm0, %v1698_v44, 0 }
 0x200   : > { %3620 = vmatpush3.bf16.xpose.msra.mxu0 %v1741_v45 }
 0x206   : > { %v1700_v49 = vpop.permute.xlu0 %1699 }
 0x207   : > { %3817 = vmatprep.subr.msk.bf16.mxu0 %vm1248_vm0, %v1700_v49  ;;  %v1744_v46 = vsel %vm1248_vm0, %v1700_v49, 0 }
 0x208   : > { %3622 = vmatpush3.bf16.xpose.msra.mxu0 %v1744_v46 }
 0x20e   : > { %v1702_v5 = vpop.permute.xlu1 %1701 }
 0x20f   : > { %3818 = vmatprep.subr.msk.bf16.mxu0 %vm1248_vm0, %v1702_v5  ;;  %v1747_v31 = vsel %vm1248_vm0, %v1702_v5, 0 }
 0x210   : > { %3624 = vmatpush3.bf16.xpose.msra.mxu0 %v1747_v31 }
 0x216   : > { %v1704_v34 = vpop.permute.xlu0 %1703 }
 0x217   : > { %3819 = vmatprep.subr.msk.bf16.mxu0 %vm1248_vm0, %v1704_v34  ;;  %v1750_v15 = vsel %vm1248_vm0, %v1704_v34, 0 }
 0x218   : > { %3626 = vmatpush3.bf16.xpose.msra.mxu0 %v1750_v15 }
 0x21a   : > { %v1668_v51 = vpop.permute.xlu0 %1667 }
 0x21b   : > { %3629 = vmatprep.mubr.msk.bf16.mxu0 %vm1248_vm0, %v1668_v51 }
 0x21e   : > { %v1706_v52 = vpop.permute.xlu1 %1705 }
 0x21f   : > { %3820 = vmatprep.subr.msk.bf16.mxu0 %vm1248_vm0, %v1706_v52  ;;  %v1753_v54 = vsel %vm1248_vm0, %v1706_v52, 0  ;;  %v1672_v38 = vpop.permute.xlu0 %1671 }
 0x220   : > { %3628 = vmatpush3.bf16.xpose.msra.mxu0 %v1753_v54 }
 0x221   : > { %3821 = vmatprep.subr.msk.bf16.mxu0 %vm1248_vm0, %v4735_v36 }
 0x222   : > { %v1670_v12 = vpop.permute.xlu1 %1669 }
 0x223   : > { %v1676_v6 = vpop.permute.xlu0 %1675 }
 0x226   : > { %v1674_v60 = vpop.permute.xlu1 %1673 }
 0x227   : > { %3630 = vmatmul.mubr.msk.bf16.vlgmr.msra.gmra.mrb[64].mxu0 %vm1248_vm0, %v1670_v12  ;;  %v1680_v10 = vpop.permute.xlu0 %1679 }
 0x228   : > { %3633 = vmatprep.mubr.msk.bf16.mxu0 %vm1248_vm0, %v1672_v38  ;;  %3678 = vmatpush3.bf16.xpose.msra.mxu0 %v2239_v62 }
 0x229   : > { %3822 = vmatprep.subr.msk.bf16.mxu0 %vm1248_vm0, %v4754_v58  ;;  %v2248_v58 = vsel %vm1248_vm0, %v4788_v43, 0 }
 0x22a   : > { %v1678_v0 = vpop.permute.xlu1 %1677 }
 0x22b   : > { %v5092_v49 = vpop.permute.xlu0 %2656 }
 0x22c   : > { %5979 = vst [vmem:[#allocation31_spill] sm:$0xff] %v5092_v49 }
 0x22e   : > { %v1682_v4 = vpop.permute.xlu1 %1681 }
 0x22f   : > { %3634 = vmatmul.mubr.msk.bf16.gmra.mrb[68].mxu0 %vm1248_vm0, %v1674_v60  ;;  %v5103_v34 = vpop.permute.xlu0 %2660 }
 0x230   : > { %3637 = vmatprep.mubr.msk.bf16.mxu0 %vm1248_vm0, %v1676_v6  ;;  %3680 = vmatpush3.bf16.xpose.msra.mxu0 %v2242_v8  ;;  %5980 = vst [vmem:[#allocation32_spill] sm:$0xff] %v5103_v34 }
 0x231   : > { %3823 = vmatprep.subr.msk.bf16.mxu0 %vm1248_vm0, %v4771_v19  ;;  %v2251_v19 = vsel %vm1248_vm0, %v4805_v3, 0 }
 0x232   : > { %v4996_v36 = vpop.permute.xlu1 %2658 }
 0x233   : > { %5978 = vst [vmem:[#allocation30_spill] sm:$0xff] %v4996_v36  ;;  %v5113_v54 = vpop.permute.xlu0 %2014 }
 0x236   : > { %v4998_v63 = vpop.permute.xlu1 %2012 }
 0x237   : > { %3638 = vmatmul.mubr.msk.bf16.gmra.mrb[72].mxu0 %vm1248_vm0, %v1678_v0  ;;  %3645 = vmatprep.subr.bf16.mxu1 %v4998_v63 }
 0x238   : > { %3682 = vmatpush3.bf16.xpose.msra.mxu0 %v2245_v26  ;;  %3641 = vmatprep.mubr.msk.bf16.mxu0 %vm1248_vm0, %v1680_v10  ;;  %v5119_v60 = vpop.permute.xlu0 %2016 }
 0x239   : > { %3824 = vmatprep.subr.msk.bf16.mxu0 %vm1248_vm0, %v4788_v43 }
 0x23f   : > { %3642 = vmatmul.mubr.msk.bf16.gmra.mrb[76].mxu0 %vm1248_vm0, %v1682_v4 }
 0x240   : > { %3684 = vmatpush3.bf16.xpose.msra.mxu0 %v2248_v58  ;;  %3693 = vmatprep.mubr.msk.bf16.mxu0 %vm1248_vm0, %v4750_v56  ;;  %v5127_v0 = vpop.permute.xlu1 %2018 }
 0x241   : > { %3825 = vmatprep.subr.msk.bf16.mxu0 %vm1248_vm0, %v4805_v3 }
 0x248   : > { %3686 = vmatpush3.bf16.xpose.msra.mxu0 %v2251_v19  ;;  %v5131_v6 = vpop.permute.xlu0 %2020 }
 0x249   : > { %3826 = vmatprep.subr.msk.bf16.mxu0 %vm1248_vm0, %v4822_v30 }
 0x250   : > { %3688 = vmatpush3.bf16.xpose.msra.mxu0 %v2254_v11  ;;  %v5137_v10 = vpop.permute.xlu1 %2022 }
 0x251   : > { %3827 = vmatprep.subr.msk.bf16.mxu0 %vm1248_vm0, %v4839_v61 }
 0x258   : > { %3690 = vmatpush3.bf16.xpose.msra.mxu0 %v2257_v13  ;;  %v5139_v26 = vpop.permute.xlu0 %2024 }
 0x259   : > { %3828 = vmatprep.subr.msk.bf16.mxu0 %vm1248_vm0, %v4858_v29 }
 0x260   : > { %3692 = vmatpush3.bf16.xpose.msra.mxu0 %v2260_v14  ;;  %v5147_v11 = vpop.permute.xlu1 %2026 }
 0x267   : > { %3694 = vmatmul.mubr.msk.bf16.vlgmr.msra.gmra.mrb[80].mxu0 %vm1248_vm0, %v4769_v16 }
 0x268   : > { %3697 = vmatprep.mubr.msk.bf16.mxu0 %vm1248_vm0, %v4786_v40 }
 0x26f   : > { %3698 = vmatmul.mubr.msk.bf16.gmra.mrb[84].mxu0 %vm1248_vm0, %v4803_v1 }
 0x270   : > { %3701 = vmatprep.mubr.msk.bf16.mxu0 %vm1248_vm0, %v4820_v28 }
 0x277   : > { %3702 = vmatmul.mubr.msk.bf16.gmra.mrb[88].mxu0 %vm1248_vm0, %v4837_v59 }
 0x278   : > { %3705 = vmatprep.mubr.msk.bf16.mxu0 %vm1248_vm0, %v4856_v25 }
 0x27f   : > { %3706 = vmatmul.mubr.msk.bf16.gmra.mrb[92].mxu0 %vm1248_vm0, %v4878_v48 }
 0x287   : > { %v5042_v18 = vpop.f32.mrb[32].mxu1 }
 0x288   : > { %1398 = vmax.xlane.f32.xlu0 %v5042_v18  ;;  %v5045_v20 = vpop.f32.mrb[33].mxu1 }
 0x289   : > { %v5047_v7 = vpop.f32.mrb[34].mxu1 }
 0x28a   : > { %v5049_v55 = vpop.f32.mrb[35].mxu1 }
 0x28b   : > { %1396 = vmax.xlane.f32.xlu1 %v5049_v55 }
 0x28c   : > { %1394 = vmax.xlane.f32.xlu0 %v5045_v20 }
 0x28f   : > { %v5053_v22 = vpop.f32.mrb[36].mxu1 }
 0x290   : > { %1400 = vmax.xlane.f32.xlu0 %v5047_v7  ;;  %1406 = vmax.xlane.f32.xlu1 %v5053_v22  ;;  %v5057_v23 = vpop.f32.mrb[37].mxu1 }
 0x291   : > { %v5059_v27 = vpop.f32.mrb[38].mxu1 }
 0x292   : > { %v5061_v32 = vpop.f32.mrb[39].mxu1 }
 0x294   : > { %1402 = vmax.xlane.f32.xlu1 %v5057_v23  ;;  %1408 = vmax.xlane.f32.xlu0 %v5059_v27 }
 0x297   : > { %v5065_v21 = vpop.f32.mrb[40].mxu1 }
 0x298   : > { %1404 = vmax.xlane.f32.xlu0 %v5061_v32  ;;  %1414 = vmax.xlane.f32.xlu1 %v5065_v21  ;;  %v5069_v33 = vpop.f32.mrb[41].mxu1 }
 0x299   : > { %v5071_v35 = vpop.f32.mrb[42].mxu1 }
 0x29a   : > { %v5073_v53 = vpop.f32.mrb[43].mxu1 }
 0x29c   : > { %1410 = vmax.xlane.f32.xlu1 %v5069_v33  ;;  %1416 = vmax.xlane.f32.xlu0 %v5071_v35 }
 0x29f   : > { %v5077_v37 = vpop.f32.mrb[44].mxu1 }
 0x2a0   : > { %1412 = vmax.xlane.f32.xlu0 %v5073_v53  ;;  %1422 = vmax.xlane.f32.xlu1 %v5077_v37  ;;  %v5081_v41 = vpop.f32.mrb[45].mxu1 }
 0x2a1   : > { %v5083_v47 = vpop.f32.mrb[46].mxu1 }
 0x2a2   : > { %v5085_v44 = vpop.f32.mrb[47].mxu1 }
 0x2a4   : > { %1418 = vmax.xlane.f32.xlu1 %v5081_v41  ;;  %1424 = vmax.xlane.f32.xlu0 %v5083_v47 }
 0x2a8   : > { %1420 = vmax.xlane.f32.xlu0 %v5085_v44 }
 0x2fa   : > { %v5090_v45 = vpop.f32.mrb[64].mxu0 }
 0x2fb   : > { %v5094_v46 = vpop.f32.mrb[65].mxu0  ;;  %1856 = vmax.xlane.f32.xlu1 %v5090_v45 }
 0x2fc   : > { %v5097_v5 = vpop.f32.mrb[66].mxu0 }
 0x2fd   : > { %v5099_v31 = vpop.f32.mrb[67].mxu0  ;;  %1858 = vmax.xlane.f32.xlu0 %v5097_v5 }
 0x2ff   : > { %1852 = vmax.xlane.f32.xlu1 %v5094_v46 }
 0x301   : > { %1854 = vmax.xlane.f32.xlu0 %v5099_v31 }
 0x302   : > { %v5106_v15 = vpop.f32.mrb[68].mxu0 }
 0x303   : > { %v5108_v51 = vpop.f32.mrb[69].mxu0  ;;  %1864 = vmax.xlane.f32.xlu1 %v5106_v15 }
 0x304   : > { %v5111_v52 = vpop.f32.mrb[70].mxu0 }
 0x305   : > { %v5115_v12 = vpop.f32.mrb[71].mxu0  ;;  %1866 = vmax.xlane.f32.xlu0 %v5111_v52 }
 0x307   : > { %1860 = vmax.xlane.f32.xlu1 %v5108_v51 }
 0x309   : > { %1862 = vmax.xlane.f32.xlu0 %v5115_v12 }
 0x30a   : > { %v5122_v38 = vpop.f32.mrb[72].mxu0 }
 0x30b   : > { %v5124_v62 = vpop.f32.mrb[73].mxu0  ;;  %1872 = vmax.xlane.f32.xlu1 %v5122_v38 }
 0x30c   : > { %v5129_v4 = vpop.f32.mrb[74].mxu0 }
 0x30d   : > { %v5133_v8 = vpop.f32.mrb[75].mxu0  ;;  %1874 = vmax.xlane.f32.xlu0 %v5129_v4 }
 0x30f   : > { %1868 = vmax.xlane.f32.xlu1 %v5124_v62 }
 0x311   : > { %1870 = vmax.xlane.f32.xlu0 %v5133_v8 }
 0x312   : > { %v5142_v58 = vpop.f32.mrb[76].mxu0 }
 0x313   : > { %v5144_v19 = vpop.f32.mrb[77].mxu0  ;;  %1880 = vmax.xlane.f32.xlu1 %v5142_v58 }
 0x314   : > { %v5149_v13 = vpop.f32.mrb[78].mxu0 }
 0x315   : > { %v1399_v14 = vpop.xlane.xlu0 %1398  ;;  %1882 = vmax.xlane.f32.xlu0 %v5149_v13  ;;  %v5152_v34 = vpop.f32.mrb[79].mxu0 }
 0x316   : > { %v1428_v36 = vsub.f32 %v5042_v18, %v1399_v14 }
 0x317   : > { %1876 = vmax.xlane.f32.xlu1 %v5144_v19 }
 0x318   : > { %v1446_v49 = vmul.f32 1.442695, %v1428_v36  ;;  %v1397_v39 = vpop.xlane.xlu1 %1396 }
 0x319   : > { %v1395_v48 = vpop.xlane.xlu0 %1394  ;;  %1878 = vmax.xlane.f32.xlu0 %v5152_v34  ;;  %v1427_v2 = vsub.f32 %v5049_v55, %v1397_v39 }
 0x31a   : > { %4045 = vpow2.f32 %v1446_v49  ;;  %v1426_v42 = vsub.f32 %v5045_v20, %v1395_v48 }
 0x31b   : > { %v1444_v36 = vmul.f32 1.442695, %v1427_v2 }
 0x31c   : > { %v1442_v59 = vmul.f32 1.442695, %v1426_v42 }
 0x31d   : > { %v1401_v1 = vpop.xlane.xlu0 %1400  ;;  %v1407_v50 = vpop.xlane.xlu1 %1406 }
 0x31e   : > { %4047 = vpow2.f32 %v1442_v59  ;;  %v1429_v16 = vsub.f32 %v5047_v7, %v1401_v1  ;;  %v1432_v18 = vsub.f32 %v5053_v22, %v1407_v50 }
 0x320   : > { %v1448_v14 = vmul.f32 1.442695, %v1429_v16  ;;  %v1454_v24 = vmul.f32 1.442695, %v1432_v18 }
 0x321   : > { %v1403_v29 = vpop.xlane.xlu1 %1402  ;;  %v1409_v17 = vpop.xlane.xlu0 %1408 }
 0x322   : > { %4049 = vpow2.f32 %v1448_v14  ;;  %v1430_v49 = vsub.f32 %v5057_v23, %v1403_v29  ;;  %v1433_v48 = vsub.f32 %v5059_v27, %v1409_v17 }
 0x323   : > { %4051 = vpow2.f32 %v1454_v24 }
 0x324   : > { %v5163_v42 = vpop.eup %4045  ;;  %v1450_v39 = vmul.f32 1.442695, %v1430_v49  ;;  %4053 = vpow2.f32 %v1444_v36  ;;  %v1456_v16 = vmul.f32 1.442695, %v1433_v48 }
 0x325   : > { %v1405_v59 = vpop.xlane.xlu0 %1404  ;;  %v1415_v20 = vpop.xlane.xlu1 %1414  ;;  %1478 = vadd.xlane.f32.xlu1 %v5163_v42 }
 0x326   : > { %4055 = vpow2.f32 %v1450_v39  ;;  %v1431_v1 = vsub.f32 %v5061_v32, %v1405_v59  ;;  %v1436_v50 = vsub.f32 %v5065_v21, %v1415_v20 }
 0x327   : > { %4057 = vpow2.f32 %v1456_v16 }
 0x328   : > { %v5168_v2 = vpop.eup %4047  ;;  %v1462_v29 = vmul.f32 1.442695, %v1436_v50  ;;  %v1452_v7 = vmul.f32 1.442695, %v1431_v1 }
 0x329   : > { %v1411_v17 = vpop.xlane.xlu1 %1410  ;;  %v1417_v24 = vpop.xlane.xlu0 %1416  ;;  %1474 = vadd.xlane.f32.xlu1 %v5168_v2 }
 0x32a   : > { %v1434_v55 = vsub.f32 %v5069_v33, %v1411_v17  ;;  %v1437_v22 = vsub.f32 %v5071_v35, %v1417_v24  ;;  %4059 = vpow2.f32 %v1462_v29 }
 0x32b   : > { %4061 = vpow2.f32 %v1452_v7 }
 0x32c   : > { %v5173_v23 = vpop.eup %4049  ;;  %v1458_v27 = vmul.f32 1.442695, %v1434_v55  ;;  %v1464_v18 = vmul.f32 1.442695, %v1437_v22 }
 0x32d   : > { %v5175_v32 = vpop.eup %4051  ;;  %v1413_v21 = vpop.xlane.xlu0 %1412  ;;  %1480 = vadd.xlane.f32.xlu0 %v5173_v23 }
 0x32e   : > { %4063 = vpow2.f32 %v1458_v27  ;;  %v1435_v14 = vsub.f32 %v5073_v53, %v1413_v21  ;;  %v1423_v36 = vpop.xlane.xlu1 %1422  ;;  %1486 = vadd.xlane.f32.xlu1 %v5175_v32  ;;  %v5180_v33 = vpop.eup %4053 }
 0x32f   : > { %4065 = vpow2.f32 %v1464_v18  ;;  %v1440_v48 = vsub.f32 %v5077_v37, %v1423_v36 }
 0x330   : > { %v5182_v35 = vpop.eup %4055  ;;  %v1460_v49 = vmul.f32 1.442695, %v1435_v14 }
 0x331   : > { %1476 = vadd.xlane.f32.xlu0 %v5180_v33  ;;  %v5187_v39 = vpop.eup %4057  ;;  %v1425_v53 = vpop.xlane.xlu0 %1424  ;;  %v1470_v1 = vmul.f32 1.442695, %v1440_v48 }
 0x332   : > { %1482 = vadd.xlane.f32.xlu1 %v5182_v35  ;;  %v1419_v59 = vpop.xlane.xlu1 %1418  ;;  %4067 = vpow2.f32 %v1460_v49  ;;  %v1441_v37 = vsub.f32 %v5083_v47, %v1425_v53 }
 0x333   : > { %v1438_v50 = vsub.f32 %v5081_v41, %v1419_v59  ;;  %4069 = vpow2.f32 %v1470_v1 }
 0x334   : > { %v5189_v20 = vpop.eup %4059  ;;  %v1472_v21 = vmul.f32 1.442695, %v1441_v37 }
 0x335   : > { %1488 = vadd.xlane.f32.xlu0 %v5187_v39  ;;  %v5193_v16 = vpop.eup %4061  ;;  %v1466_v17 = vmul.f32 1.442695, %v1438_v50  ;;  %v1421_v24 = vpop.xlane.xlu0 %1420 }
 0x336   : > { %1494 = vadd.xlane.f32.xlu1 %v5189_v20  ;;  %v1439_v47 = vsub.f32 %v5085_v44, %v1421_v24 }
 0x337   : > { %4071 = vpow2.f32 %v1466_v17 }
 0x338   : > { %v5196_v29 = vpop.eup %4063  ;;  %4073 = vpow2.f32 %v1472_v21  ;;  %v1468_v14 = vmul.f32 1.442695, %v1439_v47 }
 0x339   : > { %1484 = vadd.xlane.f32.xlu0 %v5193_v16  ;;  %v5205_v22 = vpop.eup %4065 }
 0x33a   : > { %1490 = vadd.xlane.f32.xlu1 %v5196_v29  ;;  %v5201_v7 = vpop.f32.mrb[80].mxu0  ;;  %4075 = vpow2.f32 %v1468_v14 }
 0x33b   : > { %v5203_v55 = vpop.f32.mrb[81].mxu0 }
 0x33c   : > { %v5207_v27 = vpop.f32.mrb[82].mxu0  ;;  %v5214_v18 = vpop.eup %4067 }
 0x33d   : > { %v5209_v41 = vpop.f32.mrb[83].mxu0  ;;  %1496 = vadd.xlane.f32.xlu0 %v5205_v22  ;;  %v5224_v59 = vpop.eup %4069 }
 0x33e   : > { %2363 = vmax.xlane.f32.xlu1 %v5201_v7 }
 0x341   : > { %1492 = vadd.xlane.f32.xlu0 %v5214_v18  ;;  %v5230_v53 = vpop.eup %4071 }
 0x342   : > { %2359 = vmax.xlane.f32.xlu1 %v5203_v55  ;;  %v5218_v36 = vpop.f32.mrb[84].mxu0  ;;  %v5238_v37 = vpop.eup %4073 }
 0x343   : > { %5981 = vst [vmem:[#allocation33_spill] sm:$0xff] %v5218_v36  ;;  %v5220_v49 = vpop.f32.mrb[85].mxu0 }
 0x344   : > { %v5222_v48 = vpop.f32.mrb[86].mxu0  ;;  %v5246_v21 = vpop.eup %4075 }
 0x345   : > { %v5226_v44 = vpop.f32.mrb[87].mxu0  ;;  %2365 = vmax.xlane.f32.xlu0 %v5207_v27 }
 0x346   : > { %5982 = vst [vmem:[#allocation34_spill] sm:$0xff] %v5226_v44  ;;  %1502 = vadd.xlane.f32.xlu1 %v5224_v59 }
 0x349   : > { %2361 = vmax.xlane.f32.xlu0 %v5209_v41 }
 0x34a   : > { %1498 = vadd.xlane.f32.xlu1 %v5230_v53  ;;  %v5234_v1 = vpop.f32.mrb[88].mxu0 }
 0x34b   : > { %v5236_v50 = vpop.f32.mrb[89].mxu0 }
 0x34c   : > { %v5240_v17 = vpop.f32.mrb[90].mxu0 }
 0x34d   : > { %5983 = vst [vmem:[#allocation35_spill] sm:$0xff] %v5240_v17  ;;  %v5242_v24 = vpop.f32.mrb[91].mxu0  ;;  %1504 = vadd.xlane.f32.xlu0 %v5238_v37 }
 0x34e   : > { %5984 = vst [vmem:[#allocation36_spill] sm:$0xff] %v5242_v24  ;;  %2371 = vmax.xlane.f32.xlu1 %v5218_v36 }
 0x351   : > { %1500 = vadd.xlane.f32.xlu0 %v5246_v21 }
 0x352   : > { %2367 = vmax.xlane.f32.xlu1 %v5220_v49  ;;  %v5250_v47 = vpop.f32.mrb[92].mxu0 }
 0x353   : > { %5985 = vst [vmem:[#allocation37_spill] sm:$0xff] %v5250_v47  ;;  %v5252_v14 = vpop.f32.mrb[93].mxu0 }
 0x354   : > { %5986 = vst [vmem:[#allocation38_spill] sm:$0xff] %v5252_v14  ;;  %v5254_v61 = vpop.f32.mrb[94].mxu0 }
 0x355   : > { %5987 = vst [vmem:[#allocation39_spill] sm:$0xff] %v5254_v61  ;;  %v5256_v9 = vpop.f32.mrb[95].mxu0  ;;  %2373 = vmax.xlane.f32.xlu0 %v5222_v48 }
 0x356   : > { %5988 = vst [vmem:[#allocation40_spill] sm:$0xff] %v5256_v9  ;;  %2387 = vmax.xlane.f32.xlu1 %v5250_v47 }
 0x359   : > { %2369 = vmax.xlane.f32.xlu0 %v5226_v44 }
 0x35a   : > { %2383 = vmax.xlane.f32.xlu1 %v5252_v14 }
 0x35d   : > { %2379 = vmax.xlane.f32.xlu0 %v5234_v1 }
 0x35e   : > { %2389 = vmax.xlane.f32.xlu1 %v5254_v61 }
 0x361   : > { %2375 = vmax.xlane.f32.xlu0 %v5236_v50 }
 0x365   : > { %2381 = vmax.xlane.f32.xlu0 %v5240_v17 }
 0x369   : > { %2377 = vmax.xlane.f32.xlu0 %v5242_v24 }
 0x36d   : > { %2385 = vmax.xlane.f32.xlu0 %v5256_v9 }
 0x388   : > { %v1857_v25 = vpop.xlane.xlu1 %1856 }
 0x389   : > { %v1886_v28 = vsub.f32 %v5090_v45, %v1857_v25 }
 0x38a   : > { %v1859_v40 = vpop.xlane.xlu0 %1858 }
 0x38b   : > { %v1904_v56 = vmul.f32 1.442695, %v1886_v28  ;;  %v1887_v30 = vsub.f32 %v5097_v5, %v1859_v40 }
 0x38c   : > { %v1853_v14 = vpop.xlane.xlu1 %1852 }
 0x38d   : > { %4077 = vpow2.f32 %v1904_v56  ;;  %v1906_v47 = vmul.f32 1.442695, %v1887_v30  ;;  %v1884_v61 = vsub.f32 %v5094_v46, %v1853_v14 }
 0x38e   : > { %v1855_v44 = vpop.xlane.xlu0 %1854 }
 0x38f   : > { %v1900_v36 = vmul.f32 1.442695, %v1884_v61  ;;  %v1885_v3 = vsub.f32 %v5099_v31, %v1855_v44  ;;  %4079 = vpow2.f32 %v1906_v47 }
 0x390   : > { %v1865_v24 = vpop.xlane.xlu1 %1864 }
 0x391   : > { %4081 = vpow2.f32 %v1900_v36  ;;  %v1902_v9 = vmul.f32 1.442695, %v1885_v3  ;;  %v1890_v17 = vsub.f32 %v5106_v15, %v1865_v24 }
 0x392   : > { %v1867_v25 = vpop.xlane.xlu0 %1866 }
 0x393   : > { %v1912_v45 = vmul.f32 1.442695, %v1890_v17  ;;  %v1891_v28 = vsub.f32 %v5111_v52, %v1867_v25  ;;  %4083 = vpow2.f32 %v1902_v9 }
 0x394   : > { %v1861_v40 = vpop.xlane.xlu1 %1860 }
 0x395   : > { %v1888_v56 = vsub.f32 %v5108_v51, %v1861_v40  ;;  %4085 = vpow2.f32 %v1912_v45  ;;  %v1914_v31 = vmul.f32 1.442695, %v1891_v28 }
 0x396   : > { %v1863_v30 = vpop.xlane.xlu0 %1862 }
 0x397   : > { %v5275_v46 = vpop.eup %4077  ;;  %v1908_v61 = vmul.f32 1.442695, %v1888_v56  ;;  %v1889_v5 = vsub.f32 %v5115_v12, %v1863_v30 }
 0x398   : > { %v1873_v36 = vpop.xlane.xlu1 %1872  ;;  %1936 = vadd.xlane.f32.xlu0 %v5275_v46 }
 0x399   : > { %4087 = vpow2.f32 %v1908_v61  ;;  %v1910_v3 = vmul.f32 1.442695, %v1889_v5  ;;  %v1894_v15 = vsub.f32 %v5122_v38, %v1873_v36  ;;  %v5280_v52 = vpop.eup %4079 }
 0x39a   : > { %v1875_v9 = vpop.xlane.xlu0 %1874  ;;  %4089 = vpow2.f32 %v1914_v31 }
 0x39b   : > { %v5282_v44 = vpop.eup %4081  ;;  %v1920_v51 = vmul.f32 1.442695, %v1894_v15  ;;  %v1895_v17 = vsub.f32 %v5129_v4, %v1875_v9  ;;  %4091 = vpow2.f32 %v1910_v3 }
 0x39c   : > { %1932 = vadd.xlane.f32.xlu1 %v5282_v44  ;;  %v1869_v12 = vpop.xlane.xlu1 %1868  ;;  %1938 = vadd.xlane.f32.xlu0 %v5280_v52 }
 0x39d   : > { %v1892_v24 = vsub.f32 %v5124_v62, %v1869_v12  ;;  %v5288_v14 = vpop.eup %4083  ;;  %4093 = vpow2.f32 %v1920_v51  ;;  %v1922_v45 = vmul.f32 1.442695, %v1895_v17 }
 0x39e   : > { %v1871_v47 = vpop.xlane.xlu0 %1870 }
 0x39f   : > { %v1916_v38 = vmul.f32 1.442695, %v1892_v24  ;;  %v1893_v25 = vsub.f32 %v5133_v8, %v1871_v47  ;;  %v5293_v56 = vpop.eup %4085 }
 0x3a0   : > { %v1881_v28 = vpop.xlane.xlu1 %1880  ;;  %1934 = vadd.xlane.f32.xlu0 %v5288_v14 }
 0x3a1   : > { %4095 = vpow2.f32 %v1916_v38  ;;  %v1918_v4 = vmul.f32 1.442695, %v1893_v25  ;;  %v1898_v40 = vsub.f32 %v5142_v58, %v1881_v28 }
 0x3a2   : > { %v1883_v30 = vpop.xlane.xlu0 %1882  ;;  %4097 = vpow2.f32 %v1922_v45 }
 0x3a3   : > { %v5295_v61 = vpop.eup %4087  ;;  %v1928_v62 = vmul.f32 1.442695, %v1898_v40  ;;  %4099 = vpow2.f32 %v1918_v4  ;;  %v1899_v8 = vsub.f32 %v5149_v13, %v1883_v30 }
 0x3a4   : > { %1940 = vadd.xlane.f32.xlu1 %v5295_v61  ;;  %v1877_v5 = vpop.xlane.xlu1 %1876  ;;  %1944 = vadd.xlane.f32.xlu0 %v5293_v56  ;;  %v5301_v36 = vpop.eup %4089 }
 0x3a5   : > { %v1896_v31 = vsub.f32 %v5144_v19, %v1877_v5  ;;  %v5303_v3 = vpop.eup %4091  ;;  %4101 = vpow2.f32 %v1928_v62  ;;  %v1930_v9 = vmul.f32 1.442695, %v1899_v8 }
 0x3a6   : > { %v1879_v58 = vpop.xlane.xlu0 %1878 }
 0x3a7   : > { %v1924_v15 = vmul.f32 1.442695, %v1896_v31  ;;  %v1897_v51 = vsub.f32 %v5152_v34, %v1879_v58  ;;  %v5308_v17 = vpop.eup %4093 }
 0x3a8   : > { %1946 = vadd.xlane.f32.xlu1 %v5301_v36  ;;  %1942 = vadd.xlane.f32.xlu0 %v5303_v3 }
 0x3a9   : > { %4103 = vpow2.f32 %v1924_v15  ;;  %v1926_v19 = vmul.f32 1.442695, %v1897_v51 }
 0x3aa   : > { %4105 = vpow2.f32 %v1930_v9 }
 0x3ab   : > { %v5310_v13 = vpop.eup %4095  ;;  %4107 = vpow2.f32 %v1926_v19 }
 0x3ac   : > { %1948 = vadd.xlane.f32.xlu1 %v5310_v13  ;;  %1952 = vadd.xlane.f32.xlu0 %v5308_v17  ;;  %v5314_v12 = vpop.eup %4097 }
 0x3ad   : > { %v5316_v24 = vpop.eup %4099 }
 0x3af   : > { %v5320_v34 = vpop.eup %4101 }
 0x3b0   : > { %1954 = vadd.xlane.f32.xlu1 %v5314_v12  ;;  %1950 = vadd.xlane.f32.xlu0 %v5316_v24  ;;  %5989 = vst [vmem:[#allocation41_spill] sm:$0xff] %v5320_v34 }
 0x3b2   : > { %v1479_v47 = vpop.xlane.xlu1 %1478 }
 0x3b3   : > { %v5322_v38 = vpop.eup %4103 }
 0x3b4   : > { %5990 = vst [vmem:[#allocation42_spill] sm:$0xff] %v5322_v38  ;;  %1956 = vadd.xlane.f32.xlu1 %v5322_v38  ;;  %1960 = vadd.xlane.f32.xlu0 %v5320_v34  ;;  %v5326_v45 = vpop.eup %4105 }
 0x3b5   : > { %v5329_v4 = vpop.eup %4107 }
 0x3b6   : > { %v1475_v25 = vpop.xlane.xlu1 %1474  ;;  %5991 = vst [vmem:[#allocation43_spill] sm:$0xff] %v5329_v4 }
 0x3b8   : > { %1962 = vadd.xlane.f32.xlu0 %v5326_v45 }
 0x3ba   : > { %v1481_v28 = vpop.xlane.xlu0 %1480 }
 0x3bb   : > { %v1487_v40 = vpop.xlane.xlu1 %1486  ;;  %4109 = vrcp.f32 %v1481_v28 }
 0x3bc   : > { %1958 = vadd.xlane.f32.xlu0 %v5329_v4  ;;  %4111 = vrcp.f32 %v1475_v25 }
 0x3bd   : > { %4113 = vrcp.f32 %v1479_v47 }
 0x3be   : > { %v1477_v30 = vpop.xlane.xlu0 %1476 }
 0x3bf   : > { %v1483_v62 = vpop.xlane.xlu1 %1482  ;;  %4115 = vrcp.f32 %v1477_v30 }
 0x3c2   : > { %v1489_v5 = vpop.xlane.xlu0 %1488 }
 0x3c3   : > { %v1495_v8 = vpop.xlane.xlu1 %1494  ;;  %4117 = vrcp.f32 %v1489_v5 }
 0x3c4   : > { %4119 = vrcp.f32 %v1483_v62 }
 0x3c5   : > { %2662 = vrot.lane.b32.xlu1 %v4788_v43, %s4437_s4  ;;  %v4110_v31 = vpop.eup %4109  ;;  %4121 = vrcp.f32 %v1487_v40 }
 0x3c6   : > { %v1485_v58 = vpop.xlane.xlu0 %1484  ;;  %v4112_v15 = vpop.eup %4111  ;;  %v1525_v47 = vmul.f32 %v4110_v31, %v5173_v23 }
 0x3c7   : > { %v1491_v9 = vpop.xlane.xlu1 %1490  ;;  %4123 = vrcp.f32 %v1485_v58  ;;  %v4114_v51 = vpop.eup %4113  ;;  %v1522_v28 = vmul.f32 %v4112_v15, %v5168_v2 }
 0x3c8   : > { %v1524_v62 = vmul.f32 %v4114_v51, %v5163_v42 }
 0x3c9   : > { %v4116_v19 = vpop.eup %4115 }
 0x3ca   : > { %v1497_v25 = vpop.xlane.xlu0 %1496  ;;  %v1523_v30 = vmul.f32 %v4116_v19, %v5180_v33  ;;  %v1539_v34 = vpack.c.bf16 %v1525_v47, %v1524_v62 }
 0x3cb   : > { %v2364_v5 = vpop.xlane.xlu1 %2363  ;;  %4125 = vrcp.f32 %v1497_v25 }
 0x3cc   : > { %v2393_v43 = vsub.f32 %v5201_v7, %v2364_v5  ;;  %v1538_v40 = vpack.c.bf16 %v1523_v30, %v1522_v28  ;;  %4127 = vrcp.f32 %v1491_v9 }
 0x3cd   : > { %v4118_v4 = vpop.eup %4117  ;;  %4129 = vrcp.f32 %v1495_v8 }
 0x3ce   : > { %v2411_v58 = vmul.f32 1.442695, %v2393_v43  ;;  %3597 = vmatprep.mubr.bf16.mxu1 %v1538_v40  ;;  %v1493_v38 = vpop.xlane.xlu0 %1492  ;;  %v4120_v23 = vpop.eup %4119  ;;  %v1529_v7 = vmul.f32 %v4118_v4, %v5187_v39 }
 0x3cf   : > { %v2360_v31 = vpop.xlane.xlu1 %2359  ;;  %4131 = vrcp.f32 %v1493_v38  ;;  %3598 = vmatmul.mubr.bf16.vlgmr.msra.gmra.mrb[48].mxu1 %v1539_v34  ;;  %v4122_v2 = vpop.eup %4121  ;;  %v1526_v9 = vmul.f32 %v4120_v23, %v5182_v35 }
 0x3d0   : > { %4133 = vpow2.f32 %v2411_v58  ;;  %v2391_v42 = vsub.f32 %v5203_v55, %v2360_v31  ;;  %3646 = vmatpush3.bf16.msra.mxu1 %v4998_v63  ;;  %v1528_v38 = vmul.f32 %v4122_v2, %v5175_v32 }
 0x3d1   : > { %v4124_v33 = vpop.eup %4123  ;;  %3647 = vmatprep.subr.bf16.mxu1 %v5113_v54 }
 0x3d2   : > { %v2407_v15 = vmul.f32 1.442695, %v2391_v42  ;;  %v2366_v8 = vpop.xlane.xlu0 %2365  ;;  %v1527_v51 = vmul.f32 %v4124_v33, %v5193_v16  ;;  %v1541_v47 = vpack.c.bf16 %v1529_v7, %v1528_v38 }
 0x3d3   : > { %v1503_v19 = vpop.xlane.xlu1 %1502  ;;  %v2394_v34 = vsub.f32 %v5207_v27, %v2366_v8 }
 0x3d4   : > { %4135 = vpow2.f32 %v2407_v15  ;;  %3648 = vmatpush3.bf16.msra.mxu1 %v5113_v54  ;;  %v1540_v63 = vpack.c.bf16 %v1527_v51, %v1526_v9 }
 0x3d5   : > { %v2413_v55 = vmul.f32 1.442695, %v2394_v34  ;;  %3649 = vmatprep.subr.bf16.mxu1 %v5119_v60  ;;  %v4126_v39 = vpop.eup %4125 }
 0x3d6   : > { %3601 = vmatprep.mubr.bf16.mxu1 %v1540_v63  ;;  %v2362_v4 = vpop.xlane.xlu0 %2361  ;;  %v4128_v25 = vpop.eup %4127  ;;  %v1533_v54 = vmul.f32 %v4126_v39, %v5205_v22 }
 0x3d7   : > { %4137 = vpow2.f32 %v2413_v55  ;;  %v1499_v35 = vpop.xlane.xlu1 %1498  ;;  %v2392_v16 = vsub.f32 %v5209_v41, %v2362_v4  ;;  %3602 = vmatmul.mubr.bf16.gmra.mrb[52].mxu1 %v1541_v47  ;;  %v4130_v27 = vpop.eup %4129  ;;  %v1530_v5 = vmul.f32 %v4128_v25, %v5196_v29  ;;  %v5993_v25 = vld [vmem:[#allocation36_spill] sm:$0xff] }
 0x3d8   : > { %3650 = vmatpush3.bf16.msra.mxu1 %v5119_v60  ;;  %v1532_v60 = vmul.f32 %v4130_v27, %v5189_v20 }
 0x3d9   : > { %v4132_v32 = vpop.eup %4131  ;;  %v2409_v28 = vmul.f32 1.442695, %v2392_v16  ;;  %3651 = vmatprep.subr.bf16.mxu1 %v5127_v0 }
 0x3da   : > { %v5353_v30 = vpop.eup %4133  ;;  %v1505_v62 = vpop.xlane.xlu0 %1504  ;;  %v1531_v43 = vmul.f32 %v4132_v32, %v5214_v18  ;;  %v1543_v22 = vpack.c.bf16 %v1533_v54, %v1532_v60  ;;  %v5994_v32 = vld [vmem:[#allocation40_spill] sm:$0xff] }
 0x3db   : > { %4139 = vpow2.f32 %v2409_v28  ;;  %v5357_v40 = vpop.xlane.xlu1 %2371  ;;  %2443 = vadd.xlane.f32.xlu0 %v5353_v30 }
 0x3dc   : > { %4141 = vrcp.f32 %v1505_v62  ;;  %3652 = vmatpush3.bf16.msra.mxu1 %v5127_v0  ;;  %v1542_v41 = vpack.c.bf16 %v1531_v43, %v1530_v5  ;;  %v5995_v5 = vld [vmem:[#allocation15_spill] sm:$0xff] }
 0x3dd   : > { %4143 = vrcp.f32 %v1499_v35  ;;  %3653 = vmatprep.subr.bf16.mxu1 %v5131_v6 }
 0x3de   : > { %v5363_v58 = vpop.eup %4135  ;;  %4145 = vrcp.f32 %v1503_v19  ;;  %3605 = vmatprep.mubr.bf16.mxu1 %v1542_v41  ;;  %v1501_v29 = vpop.xlane.xlu0 %1500 }
 0x3df   : > { %v2368_v18 = vpop.xlane.xlu1 %2367  ;;  %2439 = vadd.xlane.f32.xlu0 %v5363_v58  ;;  %4147 = vrcp.f32 %v1501_v29  ;;  %3606 = vmatmul.mubr.bf16.gmra.mrb[56].mxu1 %v1543_v22  ;;  %v5996_v22 = vld [vmem:[#allocation33_spill] sm:$0xff] }
 0x3e0   : > { %v2395_v20 = vsub.f32 %v5220_v49, %v2368_v18  ;;  %3654 = vmatpush3.bf16.msra.mxu1 %v5131_v6  ;;  %v2397_v29 = vsub.f32 %v5996_v22, %v5357_v40 }
 0x3e1   : > { %v5368_v0 = vpop.eup %4137  ;;  %3655 = vmatprep.subr.bf16.mxu1 %v5137_v10 }
 0x3e2   : > { %v2415_v23 = vmul.f32 1.442695, %v2395_v20  ;;  %v2374_v31 = vpop.xlane.xlu0 %2373  ;;  %v2419_v20 = vmul.f32 1.442695, %v2397_v29 }
 0x3e3   : > { %2445 = vadd.xlane.f32.xlu0 %v5368_v0  ;;  %v2398_v2 = vsub.f32 %v5222_v48, %v2374_v31  ;;  %v2388_v18 = vpop.xlane.xlu1 %2387 }
 0x3e4   : > { %4149 = vpow2.f32 %v2415_v23  ;;  %3656 = vmatpush3.bf16.msra.mxu1 %v5137_v10  ;;  %v5997_v23 = vld [vmem:[#allocation34_spill] sm:$0xff] }
 0x3e5   : > { %v5374_v42 = vpop.eup %4139  ;;  %v2421_v33 = vmul.f32 1.442695, %v2398_v2  ;;  %3657 = vmatprep.subr.bf16.mxu1 %v5139_v26 }
 0x3e6   : > { %v4142_v49 = vpop.eup %4141  ;;  %v2370_v6 = vpop.xlane.xlu0 %2369 }
 0x3e7   : > { %v4144_v7 = vpop.eup %4143  ;;  %4151 = vpow2.f32 %v2421_v33  ;;  %2441 = vadd.xlane.f32.xlu0 %v5374_v42  ;;  %v1537_v48 = vmul.f32 %v4142_v49, %v5238_v37  ;;  %v2396_v31 = vsub.f32 %v5997_v23, %v2370_v6  ;;  %v2384_v2 = vpop.xlane.xlu1 %2383  ;;  %v5998_v33 = vld [vmem:[#allocation37_spill] sm:$0xff] }
 0x3e8   : > { %v4146_v15 = vpop.eup %4145  ;;  %3658 = vmatpush3.bf16.msra.mxu1 %v5139_v26  ;;  %v1534_v9 = vmul.f32 %v4144_v7, %v5230_v53  ;;  %v2405_v49 = vsub.f32 %v5998_v33, %v2388_v18 }
 0x3e9   : > { %v4148_v8 = vpop.eup %4147  ;;  %3659 = vmatprep.subr.bf16.mxu1 %v5147_v11  ;;  %v1536_v34 = vmul.f32 %v4146_v15, %v5224_v59  ;;  %v2417_v7 = vmul.f32 1.442695, %v2396_v31 }
 0x3ea   : > { %v2380_v10 = vpop.xlane.xlu0 %2379  ;;  %v1535_v51 = vmul.f32 %v4148_v8, %v5246_v21  ;;  %v2435_v15 = vmul.f32 1.442695, %v2405_v49  ;;  %v5999_v8 = vld [vmem:[#allocation38_spill] sm:$0xff] }
 0x3eb   : > { %v2401_v19 = vsub.f32 %v5234_v1, %v2380_v10  ;;  %v1545_v26 = vpack.c.bf16 %v1537_v48, %v1536_v34  ;;  %v2403_v48 = vsub.f32 %v5999_v8, %v2384_v2  ;;  %v2390_v10 = vpop.xlane.xlu1 %2389  ;;  %v6001_v34 = vld [vmem:[#allocation17_spill] sm:$0xff] }
 0x3ec   : > { %3660 = vmatpush3.bf16.msra.mxu1 %v5147_v11  ;;  %v1544_v38 = vpack.c.bf16 %v1535_v51, %v1534_v9  ;;  %v5992_v11 = vld [vmem:[#allocation35_spill] sm:$0xff] }
 0x3ed   : > { %v2427_v63 = vmul.f32 1.442695, %v2401_v19  ;;  %3709 = vmatprep.subr.bf16.mxu1 %v4899_v57  ;;  %v2431_v9 = vmul.f32 1.442695, %v2403_v48  ;;  %v6000_v51 = vld [vmem:[#allocation39_spill] sm:$0xff] }
 0x3ee   : > { %v5387_v55 = vpop.eup %4149  ;;  %3609 = vmatprep.mubr.bf16.mxu1 %v1544_v38  ;;  %v2376_v37 = vpop.xlane.xlu0 %2375  ;;  %v2406_v40 = vsub.f32 %v6000_v51, %v2390_v10  ;;  %v6007_v51 = vld [vmem:[#allocation19_spill] sm:$0xff] }
 0x3ef   : > { %4153 = vpow2.f32 %v2427_v63  ;;  %2447 = vadd.xlane.f32.xlu1 %v5387_v55  ;;  %v2399_v53 = vsub.f32 %v5236_v50, %v2376_v37  ;;  %3610 = vmatmul.mubr.bf16.gmra.mrb[60].mxu1 %v1545_v26  ;;  %v6002_v63 = vld [vmem:[#allocation11_spill] sm:$0xff]  ;;  %v6003_v37 = vld [vmem:[#allocation13_spill] sm:$0xff] }
 0x3f0   : > { %v2437_v6 = vmul.f32 1.442695, %v2406_v40 }
 0x3f1   : > { %v5391_v1 = vpop.eup %4151  ;;  %v2423_v59 = vmul.f32 1.442695, %v2399_v53 }
 0x3f2   : > { %v2382_v21 = vpop.xlane.xlu0 %2381 }
 0x3f3   : > { %4155 = vpow2.f32 %v2423_v59  ;;  %2453 = vadd.xlane.f32.xlu1 %v5391_v1  ;;  %v2402_v47 = vsub.f32 %v5992_v11, %v2382_v21  ;;  %v6004_v21 = vld [vmem:[#allocation16_spill] sm:$0xff] }
 0x3f5   : > { %v2429_v39 = vmul.f32 1.442695, %v2402_v47 }
 0x3f6   : > { %v2378_v4 = vpop.xlane.xlu0 %2377 }
 0x3f7   : > { %4157 = vpow2.f32 %v2429_v39  ;;  %v2400_v35 = vsub.f32 %v5993_v25, %v2378_v4  ;;  %v6005_v4 = vld [vmem:[#allocation20_spill] sm:$0xff] }
 0x3f9   : > { %v5396_v16 = vpop.eup %4153  ;;  %v2425_v27 = vmul.f32 1.442695, %v2400_v35  ;;  %v6006_v35 = vld [vmem:[#allocation23_spill] sm:$0xff] }
 0x3fa   : > { %2459 = vadd.xlane.f32.xlu1 %v5396_v16  ;;  %v2386_v50 = vpop.xlane.xlu0 %2385 }
 0x3fb   : > { %4159 = vpow2.f32 %v2425_v27  ;;  %v2404_v28 = vsub.f32 %v5994_v32, %v2386_v50 }
 0x3fd   : > { %v5400_v54 = vpop.eup %4155  ;;  %v2433_v62 = vmul.f32 1.442695, %v2404_v28  ;;  %2664 = vrot.lane.b32.xlu0 %v5995_v5, %s4437_s4 }
 0x3fe   : > { %2455 = vadd.xlane.f32.xlu1 %v5400_v54 }
 0x3ff   : > { %4161 = vpow2.f32 %v2433_v62 }
 0x400   : > { %4163 = vpow2.f32 %v2419_v20 }
 0x401   : > { %v5405_v43 = vpop.eup %4157  ;;  %4165 = vpow2.f32 %v2417_v7 }
 0x402   : > { %2461 = vadd.xlane.f32.xlu1 %v5405_v43  ;;  %4167 = vpow2.f32 %v2435_v15 }
 0x403   : > { %4169 = vpow2.f32 %v2431_v9 }
 0x404   : > { %4171 = vpow2.f32 %v2437_v6 }
 0x405   : > { %v5408_v60 = vpop.eup %4159 }
 0x406   : > { %2457 = vadd.xlane.f32.xlu1 %v5408_v60 }
 0x409   : > { %v5411_v41 = vpop.eup %4161 }
 0x40a   : > { %2465 = vadd.xlane.f32.xlu1 %v5411_v41  ;;  %v5420_v19 = vpop.eup %4163 }
 0x40b   : > { %v5425_v38 = vpop.eup %4165 }
 0x40c   : > { %v5430_v26 = vpop.eup %4167 }
 0x40d   : > { %v5435_v59 = vpop.eup %4169 }
 0x40e   : > { %v5440_v39 = vpop.eup %4171 }
 0x41b   : > { %2666 = vrot.lane.b32.xlu1 %v6001_v34, %s4437_s4 }
 0x41c   : > { %2451 = vadd.xlane.f32.xlu0 %v5420_v19 }
 0x41f   : > { %2632 = vrot.lane.b32.xlu1 %v6002_v63, %s4437_s4  ;;  %v6008_v63 = vld [vmem:[#allocation24_spill] sm:$0xff] }
 0x420   : > { %2449 = vadd.xlane.f32.xlu0 %v5425_v38 }
 0x423   : > { %2636 = vrot.lane.b32.xlu1 %v6003_v37, %s4437_s4 }
 0x424   : > { %2467 = vadd.xlane.f32.xlu0 %v5430_v26 }
 0x425   : > { %v1937_v53 = vpop.xlane.xlu0 %1936 }
 0x427   : > { %2640 = vrot.lane.b32.xlu1 %v6004_v21, %s4437_s4 }
 0x428   : > { %2463 = vadd.xlane.f32.xlu0 %v5435_v59 }
 0x429   : > { %v1933_v11 = vpop.xlane.xlu1 %1932  ;;  %v1939_v47 = vpop.xlane.xlu0 %1938 }
 0x42a   : > { %4173 = vrcp.f32 %v1939_v47 }
 0x42b   : > { %2644 = vrot.lane.b32.xlu1 %v6005_v4, %s4437_s4  ;;  %4175 = vrcp.f32 %v1933_v11 }
 0x42c   : > { %2469 = vadd.xlane.f32.xlu0 %v5440_v39  ;;  %4177 = vrcp.f32 %v1937_v53 }
 0x42d   : > { %v1935_v25 = vpop.xlane.xlu0 %1934 }
 0x42e   : > { %4179 = vrcp.f32 %v1935_v25 }
 0x42f   : > { %2979 = vrot.lane.b32.xlu1 %v6006_v35, %s4437_s4 }
 0x431   : > { %v1941_v27 = vpop.xlane.xlu1 %1940  ;;  %v1945_v50 = vpop.xlane.xlu0 %1944 }
 0x432   : > { %4181 = vrcp.f32 %v1945_v50 }
 0x433   : > { %4183 = vrcp.f32 %v1941_v27  ;;  %v6011_v27 = vld [vmem:[#allocation12_spill] sm:$0xff] }
 0x434   : > { %v4174_v32 = vpop.eup %4173 }
 0x435   : > { %v1947_v28 = vpop.xlane.xlu1 %1946  ;;  %v1943_v62 = vpop.xlane.xlu0 %1942  ;;  %v1983_v18 = vmul.f32 %v4174_v32, %v5280_v52 }
 0x436   : > { %v4176_v5 = vpop.eup %4175  ;;  %4185 = vrcp.f32 %v1947_v28 }
 0x437   : > { %v4178_v22 = vpop.eup %4177  ;;  %4187 = vrcp.f32 %v1943_v62  ;;  %v1980_v31 = vmul.f32 %v4176_v5, %v5282_v44  ;;  %v6012_v5 = vld [vmem:[#allocation26_spill] sm:$0xff] }
 0x438   : > { %v4180_v29 = vpop.eup %4179  ;;  %v1982_v33 = vmul.f32 %v4178_v22, %v5275_v46  ;;  %v6013_v22 = vld [vmem:[#allocation14_spill] sm:$0xff] }
 0x439   : > { %v1949_v20 = vpop.xlane.xlu1 %1948  ;;  %v1953_v23 = vpop.xlane.xlu0 %1952  ;;  %v1981_v2 = vmul.f32 %v4180_v29, %v5288_v14 }
 0x43a   : > { %4189 = vrcp.f32 %v1953_v23  ;;  %v1997_v7 = vpack.c.bf16 %v1983_v18, %v1982_v33  ;;  %v6016_v23 = vld [vmem:[#allocation28_spill] sm:$0xff]  ;;  %v6018_v33 = vld [vmem:[#allocation43_spill] sm:$0xff] }
 0x43b   : > { %v1996_v49 = vpack.c.bf16 %v1981_v2, %v1980_v31  ;;  %4191 = vrcp.f32 %v1949_v20  ;;  %v6017_v31 = vld [vmem:[#allocation42_spill] sm:$0xff] }
 0x43c   : > { %v4182_v48 = vpop.eup %4181 }
 0x43d   : > { %v1955_v15 = vpop.xlane.xlu1 %1954  ;;  %3661 = vmatprep.mubr.bf16.mxu1 %v1996_v49  ;;  %v1951_v8 = vpop.xlane.xlu0 %1950  ;;  %v1986_v46 = vmul.f32 %v4182_v48, %v5293_v56  ;;  %v6009_v56 = vld [vmem:[#allocation21_spill] sm:$0xff] }
 0x43e   : > { %4193 = vrcp.f32 %v1955_v15  ;;  %3662 = vmatmul.mubr.bf16.vlgmr.msra.gmra.mrb[64].mxu1 %v1997_v7  ;;  %v4184_v10 = vpop.eup %4183  ;;  %v6019_v7 = vld [vmem:[#allocation22_spill] sm:$0xff]  ;;  %v6020_v15 = vld [vmem:[#allocation41_spill] sm:$0xff] }
 0x43f   : > { %4195 = vrcp.f32 %v1951_v8  ;;  %3710 = vmatpush3.bf16.msra.mxu1 %v4899_v57  ;;  %v1984_v40 = vmul.f32 %v4184_v10, %v5295_v61 }
 0x440   : > { %v4186_v52 = vpop.eup %4185  ;;  %3711 = vmatprep.subr.bf16.mxu1 %v6006_v35 }
 0x441   : > { %v4188_v44 = vpop.eup %4187  ;;  %v1961_v14 = vpop.xlane.xlu0 %1960  ;;  %v1987_v9 = vmul.f32 %v4186_v52, %v5301_v36  ;;  %v6021_v52 = vld [vmem:[#allocation29_spill] sm:$0xff] }
 0x442   : > { %2668 = vrot.lane.b32.xlu0 %v6007_v51, %s4437_s4  ;;  %v1985_v34 = vmul.f32 %v4188_v44, %v5303_v3  ;;  %v1957_v53 = vpop.xlane.xlu1 %1956  ;;  %v6010_v3 = vld [vmem:[#allocation25_spill] sm:$0xff] }
 0x443   : > { %3712 = vmatpush3.bf16.msra.mxu1 %v6006_v35  ;;  %v1999_v6 = vpack.c.bf16 %v1987_v9, %v1986_v46 }
 0x444   : > { %3713 = vmatprep.subr.bf16.mxu1 %v6008_v63  ;;  %v1998_v37 = vpack.c.bf16 %v1985_v34, %v1984_v40  ;;  %v4190_v11 = vpop.eup %4189 }
 0x445   : > { %v1963_v21 = vpop.xlane.xlu0 %1962  ;;  %v4192_v36 = vpop.eup %4191  ;;  %v1990_v25 = vmul.f32 %v4190_v11, %v5308_v17 }
 0x446   : > { %2670 = vrot.lane.b32.xlu0 %v6009_v56, %s4437_s4  ;;  %3665 = vmatprep.mubr.bf16.mxu1 %v1998_v37  ;;  %4197 = vrcp.f32 %v1963_v21  ;;  %v1988_v50 = vmul.f32 %v4192_v36, %v5310_v13  ;;  %v6015_v13 = vld [vmem:[#allocation18_spill] sm:$0xff]  ;;  %v2663_v51 = vpop.permute.xlu1 %2662 }
 0x447   : > { %3666 = vmatmul.mubr.bf16.gmra.mrb[68].mxu1 %v1999_v6  ;;  %4199 = vrcp.f32 %v1957_v53 }
 0x448   : > { %v4194_v47 = vpop.eup %4193  ;;  %3714 = vmatpush3.bf16.msra.mxu1 %v6008_v63  ;;  %4201 = vrcp.f32 %v1961_v14 }
 0x449   : > { %v4196_v61 = vpop.eup %4195  ;;  %3715 = vmatprep.subr.bf16.mxu1 %v6010_v3  ;;  %v1959_v4 = vpop.xlane.xlu0 %1958  ;;  %v1991_v35 = vmul.f32 %v4194_v47, %v5314_v12  ;;  %v6014_v12 = vld [vmem:[#allocation27_spill] sm:$0xff] }
 0x44a   : > { %2634 = vrot.lane.b32.xlu0 %v6011_v27, %s4437_s4  ;;  %4203 = vrcp.f32 %v1959_v4  ;;  %v1989_v32 = vmul.f32 %v4196_v61, %v5316_v24 }
 0x44b   : > { %v2001_v28 = vpack.c.bf16 %v1991_v35, %v1990_v25  ;;  %v6023_v25 = vld [vmem:[#allocation30_spill] sm:$0xff] }
 0x44c   : > { %3716 = vmatpush3.bf16.msra.mxu1 %v6010_v3  ;;  %v2000_v62 = vpack.c.bf16 %v1989_v32, %v1988_v50  ;;  %v2706_v32 = vsel %vm1248_vm0, %v2663_v51, 0 }
 0x44d   : > { %3717 = vmatprep.subr.bf16.mxu1 %v6012_v5 }
 0x44e   : > { %2638 = vrot.lane.b32.xlu0 %v6013_v22, %s4437_s4  ;;  %3669 = vmatprep.mubr.bf16.mxu1 %v2000_v62 }
 0x44f   : > { %3670 = vmatmul.mubr.bf16.gmra.mrb[72].mxu1 %v2001_v28 }
 0x450   : > { %3718 = vmatpush3.bf16.msra.mxu1 %v6012_v5  ;;  %v4198_v17 = vpop.eup %4197 }
 0x451   : > { %3719 = vmatprep.subr.bf16.mxu1 %v6014_v12  ;;  %v4200_v29 = vpop.eup %4199  ;;  %v1995_v20 = vmul.f32 %v4198_v17, %v5326_v45  ;;  %v6022_v45 = vld [vmem:[#allocation31_spill] sm:$0xff] }
 0x452   : > { %2642 = vrot.lane.b32.xlu0 %v6015_v13, %s4437_s4  ;;  %v4202_v24 = vpop.eup %4201  ;;  %v1992_v2 = vmul.f32 %v4200_v29, %v6017_v31  ;;  %v2697_v4 = vsel %vm1248_vm0, %v6022_v45, 0 }
 0x453   : > { %v1994_v8 = vmul.f32 %v4202_v24, %v6020_v15 }
 0x454   : > { %v4204_v18 = vpop.eup %4203  ;;  %3720 = vmatpush3.bf16.msra.mxu1 %v6014_v12 }
 0x455   : > { %3721 = vmatprep.subr.bf16.mxu1 %v6016_v23  ;;  %v1993_v49 = vmul.f32 %v4204_v18, %v6018_v33  ;;  %v2003_v10 = vpack.c.bf16 %v1995_v20, %v1994_v8 }
 0x456   : > { %2646 = vrot.lane.b32.xlu0 %v6019_v7, %s4437_s4 }
 0x457   : > { %v2002_v48 = vpack.c.bf16 %v1993_v49, %v1992_v2 }
 0x458   : > { %3722 = vmatpush3.bf16.msra.mxu1 %v6016_v23 }
 0x459   : > { %3723 = vmatprep.subr.bf16.mxu1 %v6021_v52  ;;  %3673 = vmatprep.mubr.bf16.mxu1 %v2002_v48 }
 0x45a   : > { %2977 = vrot.lane.b32.xlu0 %v4899_v57, %s4437_s4  ;;  %3674 = vmatmul.mubr.bf16.gmra.mrb[76].mxu1 %v2003_v10 }
 0x45c   : > { %3724 = vmatpush3.bf16.msra.mxu1 %v6021_v52 }
 0x45d   : > { %3829 = vmatprep.subr.msk.bf16.mxu1 %vm1248_vm0, %v6022_v45 }
 0x468   : > { %v2444_v44 = vpop.xlane.xlu0 %2443 }
 0x46c   : > { %v2440_v14 = vpop.xlane.xlu0 %2439 }
 0x470   : > { %v2446_v46 = vpop.xlane.xlu0 %2445 }
 0x471   : > { %4205 = vrcp.f32 %v2446_v46 }
 0x472   : > { %4207 = vrcp.f32 %v2440_v14 }
 0x473   : > { %4209 = vrcp.f32 %v2444_v44 }
 0x474   : > { %v2442_v9 = vpop.xlane.xlu0 %2441 }
 0x475   : > { %4211 = vrcp.f32 %v2442_v9 }
 0x478   : > { %v2665_v28 = vpop.permute.xlu0 %2664 }
 0x479   : > { %v2709_v13 = vsel %vm1248_vm0, %v2665_v28, 0 }
 0x47b   : > { %v4206_v40 = vpop.eup %4205 }
 0x47c   : > { %v4208_v34 = vpop.eup %4207  ;;  %v2448_v37 = vpop.xlane.xlu1 %2447  ;;  %v2490_v53 = vmul.f32 %v4206_v40, %v5368_v0 }
 0x47d   : > { %v4210_v6 = vpop.eup %4209  ;;  %v2487_v21 = vmul.f32 %v4208_v34, %v5363_v58  ;;  %v2700_v58 = vsel %vm1248_vm0, %v6023_v25, 0  ;;  %4213 = vrcp.f32 %v2448_v37 }
 0x47e   : > { %v2489_v56 = vmul.f32 %v4210_v6, %v5353_v30  ;;  %v6024_v30 = vld [vmem:[#allocation32_spill] sm:$0xff] }
 0x47f   : > { %v4212_v57 = vpop.eup %4211  ;;  %v2703_v27 = vsel %vm1248_vm0, %v6024_v30, 0 }
 0x480   : > { %v2488_v11 = vmul.f32 %v4212_v57, %v5374_v42  ;;  %v2504_v47 = vpack.c.bf16 %v2490_v53, %v2489_v56  ;;  %v2454_v61 = vpop.xlane.xlu1 %2453 }
 0x481   : > { %4215 = vrcp.f32 %v2454_v61 }
 0x482   : > { %v2503_v36 = vpack.c.bf16 %v2488_v11, %v2487_v21 }
 0x484   : > { %3725 = vmatprep.mubr.bf16.mxu1 %v2503_v36 }
 0x485   : > { %3726 = vmatmul.mubr.bf16.vlgmr.msra.gmra.mrb[80].mxu1 %v2504_v47 }
 0x486   : > { %3742 = vmatpush3.bf16.xpose.msra.mxu1 %v2697_v4 }
 0x487   : > { %3830 = vmatprep.subr.msk.bf16.mxu1 %vm1248_vm0, %v6023_v25  ;;  %v2460_v35 = vpop.xlane.xlu1 %2459  ;;  %v4214_v10 = vpop.eup %4213 }
 0x488   : > { %v2491_v53 = vmul.f32 %v4214_v10, %v5387_v55 }
 0x48b   : > { %v2456_v0 = vpop.xlane.xlu1 %2455  ;;  %v4216_v44 = vpop.eup %4215 }
 0x48c   : > { %v2494_v56 = vmul.f32 %v4216_v44, %v5391_v1 }
 0x48e   : > { %3744 = vmatpush3.bf16.xpose.msra.mxu1 %v2700_v58 }
 0x48f   : > { %3831 = vmatprep.subr.msk.bf16.mxu1 %vm1248_vm0, %v6024_v30  ;;  %v2462_v42 = vpop.xlane.xlu1 %2461 }
 0x493   : > { %v2458_v50 = vpop.xlane.xlu1 %2457 }
 0x496   : > { %3746 = vmatpush3.bf16.xpose.msra.mxu1 %v2703_v27 }
 0x497   : > { %3832 = vmatprep.subr.msk.bf16.mxu1 %vm1248_vm0, %v2663_v51  ;;  %v2466_v62 = vpop.xlane.xlu1 %2465 }
 0x49b   : > { %v2667_v18 = vpop.permute.xlu1 %2666 }
 0x49c   : > { %v2712_v49 = vsel %vm1248_vm0, %v2667_v18, 0 }
 0x49e   : > { %3748 = vmatpush3.bf16.xpose.msra.mxu1 %v2706_v32 }
 0x49f   : > { %3833 = vmatprep.subr.msk.bf16.mxu1 %vm1248_vm0, %v2665_v28  ;;  %v2633_v58 = vpop.permute.xlu1 %2632 }
 0x4a2   : > { %v3599_v22 = vpop.f32.mrb[48].mxu1 }
 0x4a3   : > { %1645 = vst.msk [vmem:[%s5513_s25 + $0x20] sm:$0xff] %vm1248_vm0, %v3599_v22  ;;  %v1580_v17 = vpop.f32.mrb[49].mxu1  ;;  %v2637_v32 = vpop.permute.xlu1 %2636 }
 0x4a4   : > { %1643 = vst.msk [vmem:[%s5513_s25] sm:$0xff] %vm1248_vm0, %v1580_v17  ;;  %v3600_v29 = vpop.f32.mrb[50].mxu1 }
 0x4a5   : > { %1646 = vst.msk [vmem:[%s5513_s25 + $0x30] sm:$0xff] %vm1248_vm0, %v3600_v29  ;;  %v1583_v24 = vpop.f32.mrb[51].mxu1 }
 0x4a6   : > { %3750 = vmatpush3.bf16.xpose.msra.mxu1 %v2709_v13  ;;  %1644 = vst.msk [vmem:[%s5513_s25 + $0x10] sm:$0xff] %vm1248_vm0, %v1583_v24 }
 0x4a7   : > { %3834 = vmatprep.subr.msk.bf16.mxu1 %vm1248_vm0, %v2667_v18  ;;  %v2641_v18 = vpop.permute.xlu1 %2640 }
 0x4a9   : > { %v2452_v20 = vpop.xlane.xlu0 %2451 }
 0x4aa   : > { %v3603_v31 = vpop.f32.mrb[52].mxu1  ;;  %4217 = vrcp.f32 %v2452_v20 }
 0x4ab   : > { %1649 = vst.msk [vmem:[%s5513_s25 + $0x60] sm:$0xff] %vm1248_vm0, %v3603_v31  ;;  %v1596_v2 = vpop.f32.mrb[53].mxu1  ;;  %4219 = vrcp.f32 %v2458_v50 }
 0x4ac   : > { %1647 = vst.msk [vmem:[%s5513_s25 + $0x40] sm:$0xff] %vm1248_vm0, %v1596_v2  ;;  %v3604_v33 = vpop.f32.mrb[54].mxu1  ;;  %4221 = vrcp.f32 %v2456_v0  ;;  %v2645_v2 = vpop.permute.xlu1 %2644 }
 0x4ad   : > { %1650 = vst.msk [vmem:[%s5513_s25 + $0x70] sm:$0xff] %vm1248_vm0, %v3604_v33  ;;  %v2450_v7 = vpop.xlane.xlu0 %2449  ;;  %v1599_v15 = vpop.f32.mrb[55].mxu1 }
 0x4ae   : > { %3752 = vmatpush3.bf16.xpose.msra.mxu1 %v2712_v49  ;;  %4223 = vrcp.f32 %v2450_v7  ;;  %1648 = vst.msk [vmem:[%s5513_s25 + $0x50] sm:$0xff] %vm1248_vm0, %v1599_v15 }
 0x4af   : > { %4225 = vrcp.f32 %v2462_v42 }
 0x4b0   : > { %4227 = vrcp.f32 %v2460_v35  ;;  %v2980_v7 = vpop.permute.xlu1 %2979 }
 0x4b1   : > { %v2468_v8 = vpop.xlane.xlu0 %2467  ;;  %4229 = vrcp.f32 %v2466_v62 }
 0x4b2   : > { %v3607_v48 = vpop.f32.mrb[56].mxu1 }
 0x4b3   : > { %1653 = vst.msk [vmem:[%s5513_s25 + $0xa0] sm:$0xff] %vm1248_vm0, %v3607_v48  ;;  %v1612_v45 = vpop.f32.mrb[57].mxu1 }
 0x4b4   : > { %1651 = vst.msk [vmem:[%s5513_s25 + $0x80] sm:$0xff] %vm1248_vm0, %v1612_v45  ;;  %v3608_v14 = vpop.f32.mrb[58].mxu1  ;;  %v4218_v46 = vpop.eup %4217 }
 0x4b5   : > { %1654 = vst.msk [vmem:[%s5513_s25 + $0xb0] sm:$0xff] %vm1248_vm0, %v3608_v14  ;;  %v2464_v9 = vpop.xlane.xlu0 %2463  ;;  %v1615_v51 = vpop.f32.mrb[59].mxu1  ;;  %v2493_v37 = vmul.f32 %v4218_v46, %v5420_v19 }
 0x4b6   : > { %v4220_v40 = vpop.eup %4219  ;;  %4231 = vrcp.f32 %v2464_v9  ;;  %1652 = vst.msk [vmem:[%s5513_s25 + $0x90] sm:$0xff] %vm1248_vm0, %v1615_v51 }
 0x4b7   : > { %v4222_v34 = vpop.eup %4221  ;;  %v2496_v11 = vmul.f32 %v4220_v40, %v5408_v60  ;;  %v2506_v61 = vpack.c.bf16 %v2494_v56, %v2493_v37 }
 0x4b8   : > { %v4224_v6 = vpop.eup %4223  ;;  %v2495_v47 = vmul.f32 %v4222_v34, %v5400_v54 }
 0x4b9   : > { %v2470_v57 = vpop.xlane.xlu0 %2469  ;;  %v2492_v21 = vmul.f32 %v4224_v6, %v5425_v38  ;;  %v4226_v4 = vpop.eup %4225 }
 0x4ba   : > { %4233 = vrcp.f32 %v2470_v57  ;;  %v2507_v35 = vpack.c.bf16 %v2496_v11, %v2495_v47  ;;  %v4228_v19 = vpop.eup %4227  ;;  %v2498_v60 = vmul.f32 %v4226_v4, %v5405_v43 }
 0x4bb   : > { %v2505_v36 = vpack.c.bf16 %v2492_v21, %v2491_v53  ;;  %4235 = vrcp.f32 %v2468_v8  ;;  %v4230_v1 = vpop.eup %4229  ;;  %v2497_v42 = vmul.f32 %v4228_v19, %v5396_v16 }
 0x4bc   : > { %v2500_v50 = vmul.f32 %v4230_v1, %v5411_v41 }
 0x4bd   : > { %3729 = vmatprep.mubr.bf16.mxu1 %v2505_v36  ;;  %v2669_v25 = vpop.permute.xlu0 %2668  ;;  %v2508_v62 = vpack.c.bf16 %v2498_v60, %v2497_v42 }
 0x4be   : > { %v2715_v55 = vsel %vm1248_vm0, %v2669_v25, 0  ;;  %3730 = vmatmul.mubr.bf16.gmra.mrb[84].mxu1 %v2506_v61  ;;  %3835 = vmatprep.subr.msk.bf16.mxu1 %vm1248_vm0, %v2669_v25 }
 0x4bf   : > { %3733 = vmatprep.mubr.bf16.mxu1 %v2507_v35  ;;  %3754 = vmatpush3.bf16.xpose.msra.mxu1 %v2715_v55 }
 0x4c0   : > { %v4232_v54 = vpop.eup %4231 }
 0x4c1   : > { %v2671_v38 = vpop.permute.xlu0 %2670  ;;  %v2499_v0 = vmul.f32 %v4232_v54, %v5435_v59 }
 0x4c2   : > { %3836 = vmatprep.subr.msk.bf16.mxu1 %vm1248_vm0, %v2671_v38  ;;  %v3611_v30 = vpop.f32.mrb[60].mxu1  ;;  %v2718_v29 = vsel %vm1248_vm0, %v2671_v38, 0 }
 0x4c3   : > { %1657 = vst.msk [vmem:[%s5513_s25 + $0xe0] sm:$0xff] %vm1248_vm0, %v3611_v30  ;;  %v1628_v27 = vpop.f32.mrb[61].mxu1  ;;  %v2509_v17 = vpack.c.bf16 %v2500_v50, %v2499_v0 }
 0x4c4   : > { %1655 = vst.msk [vmem:[%s5513_s25 + $0xc0] sm:$0xff] %vm1248_vm0, %v1628_v27  ;;  %v3612_v28 = vpop.f32.mrb[62].mxu1  ;;  %v4234_v43 = vpop.eup %4233 }
 0x4c5   : > { %1658 = vst.msk [vmem:[%s5513_s25 + $0xf0] sm:$0xff] %vm1248_vm0, %v3612_v28  ;;  %v2635_v59 = vpop.permute.xlu0 %2634  ;;  %v1631_v22 = vpop.f32.mrb[63].mxu1  ;;  %v2502_v41 = vmul.f32 %v4234_v43, %v5440_v39 }
 0x4c6   : > { %1656 = vst.msk [vmem:[%s5513_s25 + $0xd0] sm:$0xff] %vm1248_vm0, %v1631_v22  ;;  %3734 = vmatmul.mubr.bf16.gmra.mrb[88].mxu1 %v2508_v62  ;;  %v4236_v16 = vpop.eup %4235 }
 0x4c7   : > { %3737 = vmatprep.mubr.bf16.mxu1 %v2509_v17  ;;  %3756 = vmatpush3.bf16.xpose.msra.mxu1 %v2718_v29  ;;  %v2501_v24 = vmul.f32 %v4236_v16, %v5430_v26 }
 0x4c9   : > { %v2639_v13 = vpop.permute.xlu0 %2638  ;;  %v2510_v20 = vpack.c.bf16 %v2502_v41, %v2501_v24 }
 0x4cd   : > { %v2643_v31 = vpop.permute.xlu0 %2642 }
 0x4ce   : > { %3738 = vmatmul.mubr.bf16.gmra.mrb[92].mxu1 %v2510_v20 }
 0x4cf   : > { %3757 = vmatprep.mubr.msk.bf16.mxu1 %vm1248_vm0, %v2633_v58 }
 0x4d1   : > { %v2647_v33 = vpop.permute.xlu0 %2646 }
 0x4d5   : > { %v2978_v49 = vpop.permute.xlu0 %2977 }
 0x4d6   : > { %3758 = vmatmul.mubr.msk.bf16.vlgmr.msra.gmra.mrb[96].mxu1 %vm1248_vm0, %v2635_v59  ;;  %3773 = vmatprep.subr.bf16.mxu0 %v2978_v49 }
 0x4d7   : > { %3761 = vmatprep.mubr.msk.bf16.mxu1 %vm1248_vm0, %v2637_v32  ;;  %3774 = vmatpush3.bf16.msra.mxu0 %v2978_v49 }
 0x4d8   : > { %3775 = vmatprep.subr.bf16.mxu0 %v2980_v7 }
 0x4db   : > { %3776 = vmatpush3.bf16.msra.mxu0 %v2980_v7 }
 0x4de   : > { %3762 = vmatmul.mubr.msk.bf16.gmra.mrb[100].mxu1 %vm1248_vm0, %v2639_v13 }
 0x4df   : > { %3765 = vmatprep.mubr.msk.bf16.mxu1 %vm1248_vm0, %v2641_v18 }
 0x4e6   : > { %3766 = vmatmul.mubr.msk.bf16.gmra.mrb[104].mxu1 %vm1248_vm0, %v2643_v31 }
 0x4e7   : > { %3769 = vmatprep.mubr.msk.bf16.mxu1 %vm1248_vm0, %v2645_v2 }
 0x4ee   : > { %3770 = vmatmul.mubr.msk.bf16.gmra.mrb[108].mxu1 %vm1248_vm0, %v2647_v33 }
 0x511   : > { %v5574_v26 = vpop.f32.mrb[64].mxu1 }
 0x512   : > { %v5576_v39 = vpop.f32.mrb[65].mxu1 }
 0x513   : > { %v5578_v15 = vpop.f32.mrb[66].mxu1 }
 0x514   : > { %v5580_v8 = vpop.f32.mrb[67].mxu1 }
 0x51a   : > { %v5582_v48 = vpop.f32.mrb[68].mxu1 }
 0x51b   : > { %v5584_v10 = vpop.f32.mrb[69].mxu1 }
 0x51c   : > { %v5586_v45 = vpop.f32.mrb[70].mxu1 }
 0x51d   : > { %v5588_v44 = vpop.f32.mrb[71].mxu1 }
 0x522   : > { %v5590_v14 = vpop.f32.mrb[72].mxu1 }
 0x523   : > { %v5592_v46 = vpop.f32.mrb[73].mxu1 }
 0x524   : > { %v5594_v9 = vpop.f32.mrb[74].mxu1 }
 0x525   : > { %v5596_v51 = vpop.f32.mrb[75].mxu1 }
 0x52d   : > { %v5598_v40 = vpop.f32.mrb[76].mxu1 }
 0x52e   : > { %v5600_v34 = vpop.f32.mrb[77].mxu1 }
 0x52f   : > { %v5602_v6 = vpop.f32.mrb[78].mxu1 }
 0x530   : > { %v5604_v37 = vpop.f32.mrb[79].mxu1 }
 0x558   : > { %v3727_v57 = vpop.f32.mrb[80].mxu1 }
 0x559   : > { %2610 = vst.msk [vmem:[%s5513_s25 + $0x28] sm:$0xff] %vm1248_vm0, %v3727_v57  ;;  %v2545_v53 = vpop.f32.mrb[81].mxu1 }
 0x55a   : > { %2608 = vst.msk [vmem:[%s5513_s25 + $0x8] sm:$0xff] %vm1248_vm0, %v2545_v53  ;;  %v3728_v21 = vpop.f32.mrb[82].mxu1 }
 0x55b   : > { %2611 = vst.msk [vmem:[%s5513_s25 + $0x38] sm:$0xff] %vm1248_vm0, %v3728_v21  ;;  %v2548_v11 = vpop.f32.mrb[83].mxu1 }
 0x55c   : > { %2609 = vst.msk [vmem:[%s5513_s25 + $0x18] sm:$0xff] %vm1248_vm0, %v2548_v11 }
 0x591   : > { %v3731_v56 = vpop.f32.mrb[84].mxu1 }
 0x592   : > { %2614 = vst.msk [vmem:[%s5513_s25 + $0x68] sm:$0xff] %vm1248_vm0, %v3731_v56  ;;  %v2561_v36 = vpop.f32.mrb[85].mxu1 }
 0x593   : > { %2612 = vst.msk [vmem:[%s5513_s25 + $0x48] sm:$0xff] %vm1248_vm0, %v2561_v36  ;;  %v3732_v47 = vpop.f32.mrb[86].mxu1 }
 0x594   : > { %2615 = vst.msk [vmem:[%s5513_s25 + $0x78] sm:$0xff] %vm1248_vm0, %v3732_v47  ;;  %v2564_v61 = vpop.f32.mrb[87].mxu1 }
 0x595   : > { %2613 = vst.msk [vmem:[%s5513_s25 + $0x58] sm:$0xff] %vm1248_vm0, %v2564_v61 }
 0x599   : > { %v3735_v4 = vpop.f32.mrb[88].mxu1 }
 0x59a   : > { %2618 = vst.msk [vmem:[%s5513_s25 + $0xa8] sm:$0xff] %vm1248_vm0, %v3735_v4  ;;  %v2577_v25 = vpop.f32.mrb[89].mxu1 }
 0x59b   : > { %2616 = vst.msk [vmem:[%s5513_s25 + $0x88] sm:$0xff] %vm1248_vm0, %v2577_v25  ;;  %v3736_v35 = vpop.f32.mrb[90].mxu1 }
 0x59c   : > { %2619 = vst.msk [vmem:[%s5513_s25 + $0xb8] sm:$0xff] %vm1248_vm0, %v3736_v35  ;;  %v2580_v19 = vpop.f32.mrb[91].mxu1 }
 0x59d   : > { %2617 = vst.msk [vmem:[%s5513_s25 + $0x98] sm:$0xff] %vm1248_vm0, %v2580_v19 }
 0x5a1   : > { %v3739_v58 = vpop.f32.mrb[92].mxu1 }
 0x5a2   : > { %2622 = vst.msk [vmem:[%s5513_s25 + $0xe8] sm:$0xff] %vm1248_vm0, %v3739_v58  ;;  %v2593_v55 = vpop.f32.mrb[93].mxu1 }
 0x5a3   : > { %2620 = vst.msk [vmem:[%s5513_s25 + $0xc8] sm:$0xff] %vm1248_vm0, %v2593_v55  ;;  %v3740_v1 = vpop.f32.mrb[94].mxu1 }
 0x5a4   : > { %2623 = vst.msk [vmem:[%s5513_s25 + $0xf8] sm:$0xff] %vm1248_vm0, %v3740_v1  ;;  %v2596_v54 = vpop.f32.mrb[95].mxu1 }
 0x5a5   : > { %2621 = vst.msk [vmem:[%s5513_s25 + $0xd8] sm:$0xff] %vm1248_vm0, %v2596_v54 }
 0x5a9   : > { %v3759_v60 = vpop.f32.mrb[96].mxu1 }
 0x5aa   : > { %2821 = vmax.xlane.f32.xlu0 %v3759_v60  ;;  %v2754_v38 = vpop.f32.mrb[97].mxu1 }
 0x5ab   : > { %2817 = vmax.xlane.f32.xlu1 %v2754_v38  ;;  %v3760_v0 = vpop.f32.mrb[98].mxu1 }
 0x5ac   : > { %v2757_v30 = vpop.f32.mrb[99].mxu1 }
 0x5ae   : > { %2819 = vmax.xlane.f32.xlu0 %v2757_v30 }
 0x5af   : > { %2823 = vmax.xlane.f32.xlu1 %v3760_v0 }
 0x5b1   : > { %v3763_v42 = vpop.f32.mrb[100].mxu1 }
 0x5b2   : > { %2829 = vmax.xlane.f32.xlu0 %v3763_v42  ;;  %v2770_v27 = vpop.f32.mrb[101].mxu1 }
 0x5b3   : > { %v3764_v50 = vpop.f32.mrb[102].mxu1 }
 0x5b4   : > { %2831 = vmax.xlane.f32.xlu1 %v3764_v50  ;;  %v2773_v32 = vpop.f32.mrb[103].mxu1 }
 0x5b6   : > { %2825 = vmax.xlane.f32.xlu0 %v2770_v27 }
 0x5b8   : > { %2827 = vmax.xlane.f32.xlu1 %v2773_v32 }
 0x5b9   : > { %v3767_v28 = vpop.f32.mrb[104].mxu1 }
 0x5ba   : > { %2837 = vmax.xlane.f32.xlu0 %v3767_v28  ;;  %v5638_v62 = vpop.f32.mrb[105].mxu1 }
 0x5bb   : > { %v5640_v43 = vpop.f32.mrb[106].mxu1 }
 0x5bc   : > { %2839 = vmax.xlane.f32.xlu1 %v5640_v43  ;;  %v5643_v59 = vpop.f32.mrb[107].mxu1 }
 0x5be   : > { %2833 = vmax.xlane.f32.xlu0 %v5638_v62 }
 0x5c0   : > { %2835 = vmax.xlane.f32.xlu1 %v5643_v59 }
 0x5c1   : > { %v5647_v22 = vpop.f32.mrb[108].mxu1 }
 0x5c2   : > { %2845 = vmax.xlane.f32.xlu0 %v5647_v22  ;;  %v5650_v17 = vpop.f32.mrb[109].mxu1 }
 0x5c3   : > { %v5652_v29 = vpop.f32.mrb[110].mxu1 }
 0x5c4   : > { %v5654_v16 = vpop.f32.mrb[111].mxu1 }
 0x5c6   : > { %2841 = vmax.xlane.f32.xlu0 %v5650_v17 }
 0x5d1   : > { %2985 = vrot.lane.b32.xlu1 %v6012_v5, %s4437_s4 }
 0x5dc   : > { %2981 = vrot.lane.b32.xlu0 %v6008_v63, %s4437_s4 }
 0x5e0   : > { %2983 = vrot.lane.b32.xlu0 %v6010_v3, %s4437_s4 }
 0x5e4   : > { %2989 = vrot.lane.b32.xlu0 %v6016_v23, %s4437_s4 }
 0x5f5   : > { %2847 = vmax.xlane.f32.xlu1 %v5652_v29 }
 0x5f9   : > { %2843 = vmax.xlane.f32.xlu1 %v5654_v16 }
 0x60a   : > { %2987 = vrot.lane.b32.xlu1 %v6014_v12, %s4437_s4 }
 0x637   : > { %v2822_v41 = vpop.xlane.xlu0 %2821 }
 0x638   : > { %v2851_v13 = vsub.f32 %v3759_v60, %v2822_v41  ;;  %v2818_v24 = vpop.xlane.xlu1 %2817 }
 0x639   : > { %v2849_v5 = vsub.f32 %v2754_v38, %v2818_v24 }
 0x63a   : > { %v2869_v18 = vmul.f32 1.442695, %v2851_v13 }
 0x63b   : > { %v2820_v20 = vpop.xlane.xlu0 %2819  ;;  %v2865_v63 = vmul.f32 1.442695, %v2849_v5 }
 0x63c   : > { %4237 = vpow2.f32 %v2869_v18  ;;  %v2824_v31 = vpop.xlane.xlu1 %2823  ;;  %v2850_v2 = vsub.f32 %v2757_v30, %v2820_v20 }
 0x63d   : > { %v2852_v3 = vsub.f32 %v3760_v0, %v2824_v31  ;;  %4239 = vpow2.f32 %v2865_v63 }
 0x63e   : > { %v2867_v53 = vmul.f32 1.442695, %v2850_v2 }
 0x63f   : > { %v2871_v33 = vmul.f32 1.442695, %v2852_v3  ;;  %v2830_v23 = vpop.xlane.xlu0 %2829 }
 0x640   : > { %v2855_v49 = vsub.f32 %v3763_v42, %v2830_v23 }
 0x641   : > { %v2832_v7 = vpop.xlane.xlu1 %2831  ;;  %4241 = vpow2.f32 %v2871_v33 }
 0x642   : > { %v2877_v57 = vmul.f32 1.442695, %v2855_v49  ;;  %v2856_v12 = vsub.f32 %v3764_v50, %v2832_v7 }
 0x643   : > { %v2826_v21 = vpop.xlane.xlu0 %2825 }
 0x644   : > { %4243 = vpow2.f32 %v2877_v57  ;;  %v2853_v11 = vsub.f32 %v2770_v27, %v2826_v21  ;;  %v2879_v4 = vmul.f32 1.442695, %v2856_v12 }
 0x645   : > { %v2828_v56 = vpop.xlane.xlu1 %2827  ;;  %4245 = vpow2.f32 %v2867_v53 }
 0x646   : > { %v5669_v36 = vpop.eup %4237  ;;  %v2873_v47 = vmul.f32 1.442695, %v2853_v11  ;;  %v2854_v61 = vsub.f32 %v2773_v32, %v2828_v56 }
 0x647   : > { %2901 = vadd.xlane.f32.xlu1 %v5669_v36  ;;  %v2838_v25 = vpop.xlane.xlu0 %2837  ;;  %v5672_v55 = vpop.eup %4239 }
 0x648   : > { %4247 = vpow2.f32 %v2873_v47  ;;  %v2875_v35 = vmul.f32 1.442695, %v2854_v61  ;;  %v2859_v19 = vsub.f32 %v3767_v28, %v2838_v25 }
 0x649   : > { %v2840_v58 = vpop.xlane.xlu1 %2839  ;;  %4249 = vpow2.f32 %v2879_v4 }
 0x64a   : > { %4251 = vpow2.f32 %v2875_v35  ;;  %v2885_v54 = vmul.f32 1.442695, %v2859_v19  ;;  %v2860_v27 = vsub.f32 %v5640_v43, %v2840_v58 }
 0x64b   : > { %2897 = vadd.xlane.f32.xlu1 %v5672_v55  ;;  %v2834_v1 = vpop.xlane.xlu0 %2833  ;;  %v5676_v38 = vpop.eup %4241 }
 0x64c   : > { %v2857_v60 = vsub.f32 %v5638_v62, %v2834_v1  ;;  %4253 = vpow2.f32 %v2885_v54 }
 0x64d   : > { %v2836_v0 = vpop.xlane.xlu1 %2835 }
 0x64e   : > { %v5678_v30 = vpop.eup %4243  ;;  %v2858_v42 = vsub.f32 %v5643_v59, %v2836_v0  ;;  %v2881_v32 = vmul.f32 1.442695, %v2857_v60  ;;  %v2887_v59 = vmul.f32 1.442695, %v2860_v27 }
 0x64f   : > { %2903 = vadd.xlane.f32.xlu1 %v5676_v38  ;;  %2909 = vadd.xlane.f32.xlu0 %v5678_v30  ;;  %v2846_v50 = vpop.xlane.xlu0 %2845  ;;  %v5685_v62 = vpop.eup %4245 }
 0x650   : > { %v2883_v28 = vmul.f32 1.442695, %v2858_v42  ;;  %v2863_v41 = vsub.f32 %v5647_v22, %v2846_v50 }
 0x651   : > { %v2986_v2 = vpop.permute.xlu1 %2985 }
 0x652   : > { %v5687_v13 = vpop.eup %4247  ;;  %4255 = vpow2.f32 %v2883_v28  ;;  %v2893_v24 = vmul.f32 1.442695, %v2863_v41 }
 0x653   : > { %2899 = vadd.xlane.f32.xlu1 %v5685_v62  ;;  %2905 = vadd.xlane.f32.xlu0 %v5687_v13  ;;  %v2842_v43 = vpop.xlane.xlu0 %2841  ;;  %4257 = vpow2.f32 %v2881_v32  ;;  %v5692_v18 = vpop.eup %4249 }
 0x654   : > { %v2861_v5 = vsub.f32 %v5650_v17, %v2842_v43  ;;  %v5694_v20 = vpop.eup %4251  ;;  %4259 = vpow2.f32 %v2893_v24 }
 0x655   : > { %4261 = vpow2.f32 %v2887_v59 }
 0x656   : > { %v2889_v22 = vmul.f32 1.442695, %v2861_v5  ;;  %v5698_v31 = vpop.eup %4253 }
 0x657   : > { %2907 = vadd.xlane.f32.xlu1 %v5694_v20  ;;  %2911 = vadd.xlane.f32.xlu0 %v5692_v18  ;;  %v2982_v63 = vpop.permute.xlu0 %2981 }
 0x658   : > { %3777 = vmatprep.subr.bf16.mxu0 %v2982_v63  ;;  %4263 = vpow2.f32 %v2889_v22 }
 0x659   : > { %3778 = vmatpush3.bf16.msra.mxu0 %v2982_v63 }
 0x65b   : > { %2917 = vadd.xlane.f32.xlu0 %v5698_v31  ;;  %v2984_v17 = vpop.permute.xlu0 %2983 }
 0x65c   : > { %v5701_v3 = vpop.eup %4255  ;;  %3779 = vmatprep.subr.bf16.mxu0 %v2984_v17 }
 0x65d   : > { %2915 = vadd.xlane.f32.xlu1 %v5701_v3  ;;  %3780 = vmatpush3.bf16.msra.mxu0 %v2984_v17  ;;  %v5704_v33 = vpop.eup %4257 }
 0x65e   : > { %3781 = vmatprep.subr.bf16.mxu0 %v2986_v2  ;;  %v5707_v23 = vpop.eup %4259 }
 0x65f   : > { %2913 = vadd.xlane.f32.xlu0 %v5704_v33  ;;  %v5710_v49 = vpop.eup %4261 }
 0x661   : > { %2925 = vadd.xlane.f32.xlu1 %v5707_v23  ;;  %3782 = vmatpush3.bf16.msra.mxu0 %v2986_v2 }
 0x662   : > { %v5713_v7 = vpop.eup %4263 }
 0x663   : > { %2919 = vadd.xlane.f32.xlu0 %v5710_v49 }
 0x665   : > { %2921 = vadd.xlane.f32.xlu1 %v5713_v7 }
 0x676   : > { %2991 = vrot.lane.b32.xlu1 %v6021_v52, %s4437_s4 }
 0x67a   : > { %2151 = vrot.lane.b32.xlu1 %v5580_v8, %s4437_s4 }
 0x67e   : > { %2153 = vrot.lane.b32.xlu1 %v5574_v26, %s4437_s4  ;;  %v2990_v26 = vpop.permute.xlu0 %2989 }
 0x682   : > { %v2848_v57 = vpop.xlane.xlu1 %2847  ;;  %2157 = vrot.lane.b32.xlu1 %v5584_v10, %s4437_s4 }
 0x683   : > { %v2864_v12 = vsub.f32 %v5652_v29, %v2848_v57 }
 0x685   : > { %v2895_v8 = vmul.f32 1.442695, %v2864_v12 }
 0x686   : > { %v2844_v53 = vpop.xlane.xlu1 %2843  ;;  %2161 = vrot.lane.b32.xlu1 %v5582_v48, %s4437_s4 }
 0x687   : > { %v2862_v21 = vsub.f32 %v5654_v16, %v2844_v53 }
 0x689   : > { %v2891_v11 = vmul.f32 1.442695, %v2862_v21 }
 0x68a   : > { %v2988_v52 = vpop.permute.xlu1 %2987  ;;  %2165 = vrot.lane.b32.xlu1 %v5592_v46, %s4437_s4 }
 0x68b   : > { %4265 = vpow2.f32 %v2891_v11  ;;  %3783 = vmatprep.subr.bf16.mxu0 %v2988_v52 }
 0x68c   : > { %3784 = vmatpush3.bf16.msra.mxu0 %v2988_v52  ;;  %4267 = vpow2.f32 %v2895_v8 }
 0x68d   : > { %3785 = vmatprep.subr.bf16.mxu0 %v2990_v26 }
 0x68e   : > { %2169 = vrot.lane.b32.xlu1 %v5590_v14, %s4437_s4 }
 0x690   : > { %3786 = vmatpush3.bf16.msra.mxu0 %v2990_v26 }
 0x692   : > { %2173 = vrot.lane.b32.xlu1 %v5600_v34, %s4437_s4 }
 0x695   : > { %v5734_v48 = vpop.eup %4265 }
 0x696   : > { %2923 = vadd.xlane.f32.xlu0 %v5734_v48  ;;  %2177 = vrot.lane.b32.xlu1 %v5598_v40, %s4437_s4  ;;  %v5739_v10 = vpop.eup %4267 }
 0x69a   : > { %2927 = vadd.xlane.f32.xlu0 %v5739_v10 }
 0x6b0   : > { %2149 = vrot.lane.b32.xlu0 %v5576_v39, %s4437_s4 }
 0x6b4   : > { %2155 = vrot.lane.b32.xlu0 %v5578_v15, %s4437_s4 }
 0x6b8   : > { %2159 = vrot.lane.b32.xlu0 %v5588_v44, %s4437_s4 }
 0x6bc   : > { %2163 = vrot.lane.b32.xlu0 %v5586_v45, %s4437_s4 }
 0x6c0   : > { %2167 = vrot.lane.b32.xlu0 %v5596_v51, %s4437_s4 }
 0x6c4   : > { %2171 = vrot.lane.b32.xlu0 %v5594_v9, %s4437_s4 }
 0x6c8   : > { %2175 = vrot.lane.b32.xlu0 %v5604_v37, %s4437_s4 }
 0x6cc   : > { %2179 = vrot.lane.b32.xlu0 %v5602_v6, %s4437_s4 }
 0x6d4   : > { %v2902_v39 = vpop.xlane.xlu1 %2901 }
 0x6d8   : > { %v2898_v15 = vpop.xlane.xlu1 %2897 }
 0x6d9   : > { %4269 = vrcp.f32 %v2898_v15 }
 0x6dc   : > { %v2904_v14 = vpop.xlane.xlu1 %2903  ;;  %v2910_v46 = vpop.xlane.xlu0 %2909 }
 0x6e0   : > { %v2900_v44 = vpop.xlane.xlu1 %2899  ;;  %v2906_v40 = vpop.xlane.xlu0 %2905 }
 0x6e1   : > { %4271 = vrcp.f32 %v2900_v44 }
 0x6e2   : > { %4273 = vrcp.f32 %v2904_v14 }
 0x6e3   : > { %v4270_v29 = vpop.eup %4269 }
 0x6e4   : > { %v2912_v45 = vpop.xlane.xlu0 %2911  ;;  %v2908_v34 = vpop.xlane.xlu1 %2907  ;;  %v2945_v6 = vmul.f32 %v4270_v29, %v5672_v55 }
 0x6e5   : > { %4275 = vrcp.f32 %v2908_v34 }
 0x6e6   : > { %4277 = vrcp.f32 %v2902_v39 }
 0x6e7   : > { %4279 = vrcp.f32 %v2906_v40 }
 0x6e8   : > { %v2918_v51 = vpop.xlane.xlu0 %2917  ;;  %4281 = vrcp.f32 %v2912_v45 }
 0x6ea   : > { %v2916_v9 = vpop.xlane.xlu1 %2915 }
 0x6eb   : > { %v4272_v37 = vpop.eup %4271 }
 0x6ec   : > { %v2946_v16 = vmul.f32 %v4272_v37, %v5685_v62  ;;  %v2914_v56 = vpop.xlane.xlu0 %2913  ;;  %v4274_v4 = vpop.eup %4273 }
 0x6ed   : > { %4283 = vrcp.f32 %v2914_v56  ;;  %v2948_v1 = vmul.f32 %v4274_v4, %v5676_v38 }
 0x6ee   : > { %v5760_v47 = vpop.xlane.xlu1 %2925  ;;  %v2961_v61 = vpack.c.bf16 %v2946_v16, %v2945_v6  ;;  %4285 = vrcp.f32 %v2910_v46 }
 0x6ef   : > { %v4276_v35 = vpop.eup %4275  ;;  %4287 = vrcp.f32 %v2916_v9 }
 0x6f0   : > { %3789 = vmatprep.mubr.bf16.mxu0 %v2961_v61  ;;  %v4278_v19 = vpop.eup %4277  ;;  %v2920_v55 = vpop.xlane.xlu0 %2919  ;;  %v2950_v60 = vmul.f32 %v4276_v35, %v5694_v20 }
 0x6f1   : > { %v4280_v58 = vpop.eup %4279  ;;  %v2947_v0 = vmul.f32 %v4278_v19, %v5669_v36  ;;  %4289 = vrcp.f32 %v2920_v55 }
 0x6f2   : > { %v2922_v25 = vpop.xlane.xlu1 %2921  ;;  %v2949_v42 = vmul.f32 %v4280_v58, %v5687_v13  ;;  %v4282_v50 = vpop.eup %4281  ;;  %4291 = vrcp.f32 %v2918_v51 }
 0x6f3   : > { %v2962_v27 = vpack.c.bf16 %v2948_v1, %v2947_v0  ;;  %v2952_v62 = vmul.f32 %v4282_v50, %v5692_v18  ;;  %4293 = vrcp.f32 %v2922_v25 }
 0x6f4   : > { %v2963_v28 = vpack.c.bf16 %v2950_v60, %v2949_v42 }
 0x6f6   : > { %v2992_v54 = vpop.permute.xlu1 %2991 }
 0x6f7   : > { %3787 = vmatprep.subr.bf16.mxu0 %v2992_v54  ;;  %v4284_v38 = vpop.eup %4283 }
 0x6f8   : > { %3788 = vmatpush3.bf16.msra.mxu0 %v2992_v54  ;;  %v4286_v41 = vpop.eup %4285  ;;  %v2953_v43 = vmul.f32 %v4284_v38, %v5704_v33 }
 0x6f9   : > { %v4288_v36 = vpop.eup %4287  ;;  %v2951_v13 = vmul.f32 %v4286_v41, %v5678_v30 }
 0x6fa   : > { %v2152_v32 = vpop.permute.xlu1 %2151  ;;  %v2954_v59 = vmul.f32 %v4288_v36, %v5701_v3 }
 0x6fb   : > { %2199 = vst.msk [vmem:[%s5513_s25 + $0x10] sm:$0xff] %vm2197_vm1, %v2152_v32  ;;  %3790 = vmatmul.mubr.bf16.vlgmr.msra.gmra.mrb[96].mxu0 %v2962_v27  ;;  %v2964_v5 = vpack.c.bf16 %v2952_v62, %v2951_v13  ;;  %v4290_v20 = vpop.eup %4289 }
 0x6fc   : > { %3793 = vmatprep.mubr.bf16.mxu0 %v2963_v28  ;;  %v2965_v63 = vpack.c.bf16 %v2954_v59, %v2953_v43  ;;  %v4292_v18 = vpop.eup %4291  ;;  %v2956_v17 = vmul.f32 %v4290_v20, %v5710_v49 }
 0x6fd   : > { %v2955_v30 = vmul.f32 %v4292_v18, %v5698_v31  ;;  %v4294_v11 = vpop.eup %4293 }
 0x6fe   : > { %v2154_v24 = vpop.permute.xlu1 %2153  ;;  %v2957_v26 = vmul.f32 %v4294_v11, %v5713_v7 }
 0x6ff   : > { %2200 = vst.msk [vmem:[%s5513_s25 + $0x20] sm:$0xff] %vm2197_vm1, %v2154_v24  ;;  %v2966_v3 = vpack.c.bf16 %v2956_v17, %v2955_v30 }
 0x702   : > { %v2158_v22 = vpop.permute.xlu1 %2157 }
 0x703   : > { %2202 = vst.msk [vmem:[%s5513_s25 + $0x40] sm:$0xff] %vm2197_vm1, %v2158_v22  ;;  %3794 = vmatmul.mubr.bf16.gmra.mrb[100].mxu0 %v2964_v5 }
 0x704   : > { %3797 = vmatprep.mubr.bf16.mxu0 %v2965_v63 }
 0x706   : > { %v2162_v2 = vpop.permute.xlu1 %2161 }
 0x707   : > { %2204 = vst.msk [vmem:[%s5513_s25 + $0x60] sm:$0xff] %vm2197_vm1, %v2162_v2 }
 0x70a   : > { %v2166_v33 = vpop.permute.xlu1 %2165 }
 0x70b   : > { %2206 = vst.msk [vmem:[%s5513_s25 + $0x80] sm:$0xff] %vm2197_vm1, %v2166_v33  ;;  %3798 = vmatmul.mubr.bf16.gmra.mrb[104].mxu0 %v2966_v3 }
 0x70e   : > { %v2170_v57 = vpop.permute.xlu1 %2169 }
 0x70f   : > { %2208 = vst.msk [vmem:[%s5513_s25 + $0xa0] sm:$0xff] %vm2197_vm1, %v2170_v57 }
 0x712   : > { %v2174_v53 = vpop.permute.xlu1 %2173 }
 0x713   : > { %2210 = vst.msk [vmem:[%s5513_s25 + $0xc0] sm:$0xff] %vm2197_vm1, %v2174_v53 }
 0x716   : > { %v2178_v12 = vpop.permute.xlu1 %2177 }
 0x717   : > { %2212 = vst.msk [vmem:[%s5513_s25 + $0xe0] sm:$0xff] %vm2197_vm1, %v2178_v12 }
 0x723   : > { %v2924_v49 = vpop.xlane.xlu0 %2923 }
 0x724   : > { %4295 = vrcp.f32 %v2924_v49 }
 0x725   : > { %4297 = vrcp.f32 %v5760_v47 }
 0x727   : > { %v2928_v31 = vpop.xlane.xlu0 %2927 }
 0x728   : > { %4299 = vrcp.f32 %v2928_v31 }
 0x72b   : > { %v2150_v21 = vpop.permute.xlu0 %2149 }
 0x72c   : > { %2198 = vst.msk [vmem:[%s5513_s25] sm:$0xff] %vm2197_vm1, %v2150_v21 }
 0x72e   : > { %v4296_v52 = vpop.eup %4295 }
 0x72f   : > { %v2156_v8 = vpop.permute.xlu0 %2155  ;;  %v2958_v39 = vmul.f32 %v4296_v52, %v5734_v48  ;;  %v4298_v15 = vpop.eup %4297 }
 0x730   : > { %2201 = vst.msk [vmem:[%s5513_s25 + $0x30] sm:$0xff] %vm2197_vm1, %v2156_v8  ;;  %v2959_v40 = vmul.f32 %v4298_v15, %v5707_v23 }
 0x731   : > { %v2967_v14 = vpack.c.bf16 %v2958_v39, %v2957_v26 }
 0x732   : > { %v4300_v46 = vpop.eup %4299 }
 0x733   : > { %3801 = vmatprep.mubr.bf16.mxu0 %v2967_v14  ;;  %v2160_v44 = vpop.permute.xlu0 %2159  ;;  %v2960_v45 = vmul.f32 %v4300_v46, %v5739_v10 }
 0x734   : > { %2203 = vst.msk [vmem:[%s5513_s25 + $0x50] sm:$0xff] %vm2197_vm1, %v2160_v44 }
 0x735   : > { %v2968_v7 = vpack.c.bf16 %v2960_v45, %v2959_v40 }
 0x737   : > { %3802 = vmatmul.mubr.bf16.gmra.mrb[108].mxu0 %v2968_v7  ;;  %v2164_v34 = vpop.permute.xlu0 %2163 }
 0x738   : > { %2205 = vst.msk [vmem:[%s5513_s25 + $0x70] sm:$0xff] %vm2197_vm1, %v2164_v34 }
 0x73b   : > { %v2168_v48 = vpop.permute.xlu0 %2167 }
 0x73c   : > { %2207 = vst.msk [vmem:[%s5513_s25 + $0x90] sm:$0xff] %vm2197_vm1, %v2168_v48 }
 0x73f   : > { %v2172_v51 = vpop.permute.xlu0 %2171 }
 0x740   : > { %2209 = vst.msk [vmem:[%s5513_s25 + $0xb0] sm:$0xff] %vm2197_vm1, %v2172_v51 }
 0x743   : > { %v2176_v29 = vpop.permute.xlu0 %2175 }
 0x744   : > { %2211 = vst.msk [vmem:[%s5513_s25 + $0xd0] sm:$0xff] %vm2197_vm1, %v2176_v29 }
 0x747   : > { %v2180_v9 = vpop.permute.xlu0 %2179 }
 0x748   : > { %2213 = vst.msk [vmem:[%s5513_s25 + $0xf0] sm:$0xff] %vm2197_vm1, %v2180_v9 }
 0x7ce   : > { %v3791_v23 = vpop.f32.mrb[96].mxu0 }
 0x7cf   : > { %3118 = vrot.lane.b32.xlu1 %v3791_v23, %s4437_s4  ;;  %v3035_v10 = vpop.f32.mrb[97].mxu0 }
 0x7d0   : > { %v3792_v37 = vpop.f32.mrb[98].mxu0 }
 0x7d1   : > { %3120 = vrot.lane.b32.xlu0 %v3792_v37, %s4437_s4  ;;  %v3038_v6 = vpop.f32.mrb[99].mxu0 }
 0x7d3   : > { %3114 = vrot.lane.b32.xlu1 %v3035_v10, %s4437_s4 }
 0x7d5   : > { %3116 = vrot.lane.b32.xlu0 %v3038_v6, %s4437_s4 }
 0x7d6   : > { %v3795_v16 = vpop.f32.mrb[100].mxu0 }
 0x7d7   : > { %3126 = vrot.lane.b32.xlu1 %v3795_v16, %s4437_s4  ;;  %v3051_v56 = vpop.f32.mrb[101].mxu0 }
 0x7d8   : > { %v3796_v47 = vpop.f32.mrb[102].mxu0 }
 0x7d9   : > { %3128 = vrot.lane.b32.xlu0 %v3796_v47, %s4437_s4  ;;  %v3054_v61 = vpop.f32.mrb[103].mxu0 }
 0x7db   : > { %3122 = vrot.lane.b32.xlu1 %v3051_v56, %s4437_s4 }
 0x7dd   : > { %3124 = vrot.lane.b32.xlu0 %v3054_v61, %s4437_s4 }
 0x7de   : > { %v3799_v4 = vpop.f32.mrb[104].mxu0 }
 0x7df   : > { %3134 = vrot.lane.b32.xlu1 %v3799_v4, %s4437_s4  ;;  %v3067_v25 = vpop.f32.mrb[105].mxu0 }
 0x7e0   : > { %v3800_v35 = vpop.f32.mrb[106].mxu0 }
 0x7e1   : > { %3136 = vrot.lane.b32.xlu0 %v3800_v35, %s4437_s4  ;;  %v3070_v19 = vpop.f32.mrb[107].mxu0 }
 0x7e3   : > { %3130 = vrot.lane.b32.xlu1 %v3067_v25, %s4437_s4 }
 0x7e5   : > { %3132 = vrot.lane.b32.xlu0 %v3070_v19, %s4437_s4 }
 0x80a   : > { %v3803_v58 = vpop.f32.mrb[108].mxu0 }
 0x80b   : > { %v3083_v1 = vpop.f32.mrb[109].mxu0 }
 0x80c   : > { %3138 = vrot.lane.b32.xlu1 %v3083_v1, %s4437_s4  ;;  %v3804_v55 = vpop.f32.mrb[110].mxu0 }
 0x80d   : > { %v3086_v54 = vpop.f32.mrb[111].mxu0 }
 0x80e   : > { %3140 = vrot.lane.b32.xlu0 %v3086_v54, %s4437_s4 }
 0x810   : > { %3142 = vrot.lane.b32.xlu1 %v3803_v58, %s4437_s4 }
 0x812   : > { %3144 = vrot.lane.b32.xlu0 %v3804_v55, %s4437_s4 }
 0x841   : > { %v3119_v60 = vpop.permute.xlu1 %3118 }
 0x842   : > { %3164 = vst.msk [vmem:[%s5513_s25 + $0x28] sm:$0xff] %vm2197_vm1, %v3119_v60 }
 0x843   : > { %v3121_v0 = vpop.permute.xlu0 %3120 }
 0x844   : > { %3165 = vst.msk [vmem:[%s5513_s25 + $0x38] sm:$0xff] %vm2197_vm1, %v3121_v0 }
 0x845   : > { %v3115_v42 = vpop.permute.xlu1 %3114 }
 0x846   : > { %3162 = vst.msk [vmem:[%s5513_s25 + $0x8] sm:$0xff] %vm2197_vm1, %v3115_v42 }
 0x847   : > { %v3117_v27 = vpop.permute.xlu0 %3116 }
 0x848   : > { %3163 = vst.msk [vmem:[%s5513_s25 + $0x18] sm:$0xff] %vm2197_vm1, %v3117_v27 }
 0x849   : > { %v3127_v50 = vpop.permute.xlu1 %3126 }
 0x84a   : > { %3168 = vst.msk [vmem:[%s5513_s25 + $0x68] sm:$0xff] %vm2197_vm1, %v3127_v50 }
 0x84b   : > { %v3129_v32 = vpop.permute.xlu0 %3128 }
 0x84c   : > { %3169 = vst.msk [vmem:[%s5513_s25 + $0x78] sm:$0xff] %vm2197_vm1, %v3129_v32 }
 0x84d   : > { %v3123_v28 = vpop.permute.xlu1 %3122 }
 0x84e   : > { %3166 = vst.msk [vmem:[%s5513_s25 + $0x48] sm:$0xff] %vm2197_vm1, %v3123_v28 }
 0x84f   : > { %v3125_v38 = vpop.permute.xlu0 %3124 }
 0x850   : > { %3167 = vst.msk [vmem:[%s5513_s25 + $0x58] sm:$0xff] %vm2197_vm1, %v3125_v38 }
 0x851   : > { %v3135_v41 = vpop.permute.xlu1 %3134 }
 0x852   : > { %3172 = vst.msk [vmem:[%s5513_s25 + $0xa8] sm:$0xff] %vm2197_vm1, %v3135_v41 }
 0x853   : > { %v3137_v36 = vpop.permute.xlu0 %3136 }
 0x854   : > { %3173 = vst.msk [vmem:[%s5513_s25 + $0xb8] sm:$0xff] %vm2197_vm1, %v3137_v36 }
 0x855   : > { %v3131_v62 = vpop.permute.xlu1 %3130 }
 0x856   : > { %3170 = vst.msk [vmem:[%s5513_s25 + $0x88] sm:$0xff] %vm2197_vm1, %v3131_v62 }
 0x857   : > { %v3133_v24 = vpop.permute.xlu0 %3132 }
 0x858   : > { %3171 = vst.msk [vmem:[%s5513_s25 + $0x98] sm:$0xff] %vm2197_vm1, %v3133_v24 }
 0x87e   : > { %v3139_v43 = vpop.permute.xlu1 %3138 }
 0x87f   : > { %3174 = vst.msk [vmem:[%s5513_s25 + $0xc8] sm:$0xff] %vm2197_vm1, %v3139_v43 }
 0x880   : > { %v3141_v13 = vpop.permute.xlu0 %3140 }
 0x881   : > { %3175 = vst.msk [vmem:[%s5513_s25 + $0xd8] sm:$0xff] %vm2197_vm1, %v3141_v13 }
 0x882   : > { %v3143_v59 = vpop.permute.xlu1 %3142 }
 0x883   : > { %3176 = vst.msk [vmem:[%s5513_s25 + $0xe8] sm:$0xff] %vm2197_vm1, %v3143_v59 }
 0x884   : > { %v3145_v5 = vpop.permute.xlu0 %3144 }
 0x885   : > { %3177 = vst.msk [vmem:[%s5513_s25 + $0xf8] sm:$0xff] %vm2197_vm1, %v3145_v5 }
 0x886   : > { %4372 = shalt.err (!%p4369_p7)
}
 0x887   : > { %s4373_s22 = scalar_lea.hbm %s5858_s27, 4096  ;;  %s4377_s9 = scalar_lea.hbm %s5911_s3, 8192 }
 0x888   : > { %p4374_p9 = scmp.ne.s32.totalorder %s5858_s27, %s4373_s22  ;;  %p4378_p5 = scmp.lt.u32.totalorder %s5858_s27, %s5911_s3 }
 0x889   : > { %p4379_p11 = scmp.lt.u32.totalorder %s4377_s9, %s4373_s22  ;;  %p4381_p4 = scmp.lt.u32.totalorder %s4373_s22, %s5858_s27 }
 0x88a   : > { %p4375_p2 = pnand %p4374_p9, %p4552_p12 }
 0x88b   : > { %p4380_p1 = por %p4379_p11, %p4378_p5 }
 0x88c   : > { %p4376_p0 = pneg %p4375_p2 }
 0x88d   : > { %p4382_p6 = por %p4381_p4, %p4380_p1 }
 0x88f   : > { %p4383_p8 = pnand %p4382_p6, %p4376_p0 }
 0x891   : > { %4386 = shalt.err (!%p4383_p8)
}
 0x892   : > { %s4439_s4 = smov 256   ;;  %s4440_s25 = smov 16  }
 0x893   : > { %3843 = dma.vmem_to_hbm [thread:$0]  (%p4552_p12), %s5860_s5, 4096, %s5858_s27, %s3179_s16, %s4439_s4, %s4439_s4, %s4440_s25  }
 0x894 PF: > { %s3207_s26 = sand.u32 1, %s4417_s12   ;;  %p6025_p10 = scmp.ne.s32.totalorder %s5949_s19, 0 }
 0x895   : > { %p6026_p13 = scmp.ge.s32.totalorder %s4429_s15, 2  ;;  %s3208_s10 = scalar_lea.sflag [#allocation4], %s3207_s26 }
 0x897   : > { %p3854_p3 = pnand %p6026_p13, %p6025_p10 }
 0x899   : > { %4412 = dma.done.wait (!%p3854_p3), %s3208_s10, 4096  }
 0x89a   : > { %4414 = vsyncadd (!%p3854_p3), %s3208_s10, 4294963200  ;;  %p17_p7 = scmp.ge.s32.totalorder %s4517_s24, 4   ;;  %s6027_s12 = smov %s4421_s13 }
 0x89b   : > { %s6028_s13 = smov %s4425_s14  ;;  %s6029_s14 = smov %s4548_s17 }
 0x89c   : > { %s6030_s15 = smov %s4517_s24  ;;  %19 = sbr.rel (!%p17_p7) target bundleno = 6 (0x6), region = 81 }
 0x8a3   :  { %3213 = vsyncpa [#allocation3], 1 }
 0x8a4   :  { %3215 = vsyncpa [#allocation3 + $0x1], 1 }
 0x8a5   :  { %3216 = vsyncpa [#allocation6], 1 }
 0x8a6   :  { %3217 = vsyncpa [#allocation4], 1 }
 0x8a7   :  { %3219 = vsyncpa [#allocation4 + $0x1], 1 }

</bundles_post_ra>
